<compile_context>
chip_gen: v7x
topology: tpu7x:2x2x1
jax: 0.10.0
libtpu: 0.0.40
codegen_flags: <defaults>
</compile_context>

<pallas_src>
import jax
import jax.numpy as jnp
from jax.experimental import pallas as pl
from jax.experimental.pallas import tpu as pltpu


# ---------------------------------------------------------------------------
# helpers
# ---------------------------------------------------------------------------
def _round_up(x, m):
    return (x + m - 1) // m * m


def _pick_row_tile(H, W, Cp, budget=8 << 20):
    """Largest multiple-of-8 divisor of H with >=2 tiles whose double-buffered
    halo tile fits `budget` bytes (safe on v5e's 16 MiB scoped default and
    v7x's 64 MiB physical VMEM). Falls back to one tile per image."""
    cand = [t for t in range(8, H // 2 + 1, 8)
            if H % t == 0 and 2 * (t + 2) * (W + 2) * Cp * 4 <= budget]
    return max(cand) if cand else H


def _pack_weights(w_oihw, cin_p, cout_p):
    """(Cout, Cin, 3, 3) torch layout -> (9, Cin_p, Cout_p) bf16, tap-major."""
    cout, cin, _, _ = w_oihw.shape
    w = jnp.transpose(w_oihw, (2, 3, 1, 0)).reshape(9, cin, cout)
    w = jnp.pad(w, ((0, 0), (0, cin_p - cin), (0, cout_p - cout)))
    return w.astype(jnp.bfloat16)


def _bn_affine(stats, gamma, beta, cnt, cp, eps):
    """Reduce per-tile partial sums -> per-channel scale/shift (padded to cp)."""
    cout = gamma.shape[0]
    s = jnp.sum(stats[:, :, 0, :cout], axis=(0, 1))
    sq = jnp.sum(stats[:, :, 1, :cout], axis=(0, 1))
    mean = s / cnt
    # clamp guards the f32 E[x^2]-E[x]^2 cancellation (bias is dropped so the
    # per-channel mean is already small).
    var = jnp.maximum(sq / cnt - mean * mean, 0.0)
    scale = gamma / jnp.sqrt(var + eps)
    shift = beta - mean * scale
    scale = jnp.pad(scale, (0, cp - cout)).reshape(1, cp)   # padded chans -> 0
    shift = jnp.pad(shift, (0, cp - cout)).reshape(1, cp)
    return scale, shift


# ---------------------------------------------------------------------------
# Kernel 1: 3x3 conv as 9 shifted sub-matmuls on a manually-DMA'd halo tile,
#           with optional fused input BN+ReLU and fused per-tile BN statistics.
# ---------------------------------------------------------------------------
def _make_conv_kernel(H, W, TH, cp_in, cp_out, fuse_preact):
    thp2, wp2 = TH + 2, W + 2

    def kernel(scale_ref, shift_ref, w_ref, x_hbm, y_ref, st_ref, xbuf, sem):
        n = pl.program_id(0)
        h = pl.program_id(1)
        n_h = pl.num_programs(1)
        slot = h % 2

        def fetch(row_tile, s):
            pltpu.make_async_copy(
                x_hbm.at[n, pl.ds(row_tile * TH, thp2)],
                xbuf.at[s], sem.at[s]).start()

        # Prime the double buffer at the first row-tile of each image. The row
        # axis is "arbitrary" (sequential per core), so this is safe under
        # megacore sharding of the N axis.
        @pl.when(h == 0)
        def _():
            fetch(0, slot)

        # Wait for the current halo tile, then prefetch the next one.
        pltpu.make_async_copy(
            x_hbm.at[n, pl.ds(h * TH, thp2)], xbuf.at[slot], sem.at[slot]).wait()

        @pl.when(h + 1 < n_h)
        def _():
            fetch(h + 1, 1 - slot)

        xt = xbuf[slot]                                  # (TH+2, W+2, cp_in) f32

        if fuse_preact:
            # Layer-1 BN + ReLU applied to the freshly loaded raw conv1 output.
            a = jnp.maximum(xt * scale_ref[...] + shift_ref[...], 0.0)
            # Force the zero-padded spatial border back to exactly 0 (padding is
            # applied to the *activated* tensor in the reference module).
            gr = h * TH + jax.lax.broadcasted_iota(jnp.int32, (thp2, wp2, cp_in), 0)
            gc = jax.lax.broadcasted_iota(jnp.int32, (thp2, wp2, cp_in), 1)
            interior = (gr >= 1) & (gr <= H) & (gc >= 1) & (gc <= W)
            xt = jnp.where(interior, a, 0.0)

        xb = xt.astype(jnp.bfloat16)                     # bf16 MXU operands

        # 9 shifted sub-matmuls, f32 accumulation. TODO(synk): for very large
        # Cin add a K grid axis with a VMEM accumulator instead of one slab.
        acc = jnp.zeros((TH * W, cp_out), jnp.float32)
        for kh in range(3):
            for kw in range(3):
                patch = xb[kh:kh + TH, kw:kw + W, :].reshape(TH * W, cp_in)
                acc = acc + jnp.dot(patch, w_ref[kh * 3 + kw],
                                    preferred_element_type=jnp.float32)

        y_ref[0] = acc.reshape(TH, W, cp_out)            # lane-dense (128) store

        # Fused per-tile BN statistics (row 0 = sum, row 1 = sum of squares).
        s1 = jnp.sum(acc, axis=0, keepdims=True)
        s2 = jnp.sum(acc * acc, axis=0, keepdims=True)
        st_ref[0, 0] = jnp.concatenate(
            [s1, s2, jnp.zeros((6, cp_out), jnp.float32)], axis=0)

    return kernel


def conv3x3_fused(x_pad, w_packed, scale, shift, *, H, W, TH, fuse_preact):
    """x_pad: (N, H+2, W+2, cp_in) f32, zero padded (halo + lane padding).
    Returns conv output (N, H, W, cp_out) f32 and per-tile stats
    (N, H//TH, 8, cp_out)."""
    N = x_pad.shape[0]
    cp_in = x_pad.shape[-1]
    cp_out = w_packed.shape[-1]
    n_h = H // TH

    kernel = _make_conv_kernel(H, W, TH, cp_in, cp_out, fuse_preact)
    return pl.pallas_call(
        kernel,
        out_shape=(jax.ShapeDtypeStruct((N, H, W, cp_out), jnp.float32),
                   jax.ShapeDtypeStruct((N, n_h, 8, cp_out), jnp.float32)),
        grid=(N, n_h),
        in_specs=[
            pl.BlockSpec((1, cp_in), lambda n, h: (0, 0)),            # scale
            pl.BlockSpec((1, cp_in), lambda n, h: (0, 0)),            # shift
            pl.BlockSpec((9, cp_in, cp_out), lambda n, h: (0, 0, 0)),  # weights
            pl.BlockSpec(memory_space=pl.ANY),                        # x (manual DMA)
        ],
        out_specs=(
            pl.BlockSpec((1, TH, W, cp_out), lambda n, h: (n, h, 0, 0)),
            pl.BlockSpec((1, 1, 8, cp_out), lambda n, h: (n, h, 0, 0)),
        ),
        scratch_shapes=[
            pltpu.VMEM((2, TH + 2, W + 2, cp_in), jnp.float32),  # halo double buffer
            pltpu.SemaphoreType.DMA((2,)),
        ],
        compiler_params=pltpu.CompilerParams(
            dimension_semantics=("parallel", "arbitrary"),
            vmem_limit_bytes=32 * 1024 * 1024),
    )(scale, shift, w_packed, x_pad)


# ---------------------------------------------------------------------------
# Kernel 2: final fused BN (precomputed scale/shift) + ReLU, lane-dense tiles.
# ---------------------------------------------------------------------------
def _bn_relu_kernel(y_ref, scale_ref, shift_ref, o_ref):
    o_ref[0] = jnp.maximum(y_ref[0] * scale_ref[...] + shift_ref[...], 0.0)


def bn_relu(y, scale, shift, *, TH):
    N, H, W, cp = y.shape
    n_h = H // TH
    return pl.pallas_call(
        _bn_relu_kernel,
        out_shape=jax.ShapeDtypeStruct((N, H, W, cp), jnp.float32),
        grid=(N, n_h),
        in_specs=[
            pl.BlockSpec((1, TH, W, cp), lambda n, h: (n, h, 0, 0)),
            pl.BlockSpec((1, cp), lambda n, h: (0, 0)),
            pl.BlockSpec((1, cp), lambda n, h: (0, 0)),
        ],
        out_specs=pl.BlockSpec((1, TH, W, cp), lambda n, h: (n, h, 0, 0)),
        compiler_params=pltpu.CompilerParams(
            dimension_semantics=("parallel", "parallel"),
            vmem_limit_bytes=32 * 1024 * 1024),
    )(y, scale, shift)


# ---------------------------------------------------------------------------
# DoubleConv forward
# ---------------------------------------------------------------------------
def double_conv(x_nchw, params, eps=1e-5):
    N, Cin, H, W = x_nchw.shape
    Cout = params["w1"].shape[0]
    cin_p = _round_up(Cin, 128)
    cout_p = _round_up(Cout, 128)
    TH = _pick_row_tile(H, W, max(cin_p, cout_p))
    cnt = float(N * H * W)

    # NCHW <-> NHWC only at the module boundary (PyTorch interface).
    # TODO(synk): keep the surrounding model in NHWC to drop these transposes.
    x = jnp.transpose(x_nchw, (0, 2, 3, 1)).astype(jnp.float32)
    # zero pad: 1-pixel spatial halo (conv padding=1) + channel pad to 128 lanes.
    xp = jnp.pad(x, ((0, 0), (1, 1), (1, 1), (0, cin_p - Cin)))

    w1 = _pack_weights(params["w1"], cin_p, cout_p)
    w2 = _pack_weights(params["w2"], cout_p, cout_p)
    zeros_in = jnp.zeros((1, cin_p), jnp.float32)   # unused preact for layer 1

    # ---- layer 1: conv + fused per-tile BN statistics (no pre-activation) ----
    y1, st1 = conv3x3_fused(xp, w1, zeros_in, zeros_in,
                            H=H, W=W, TH=TH, fuse_preact=False)
    scale1, shift1 = _bn_affine(st1, params["gamma1"], params["beta1"],
                                cnt, cout_p, eps)

    # ---- layer 2: layer-1 BN+ReLU fused into the conv input path ----
    # TODO(synk): the jnp.pad halo materialization could be removed by handling
    # image-edge tiles directly in the kernel's DMA/mask logic.
    y1p = jnp.pad(y1, ((0, 0), (1, 1), (1, 1), (0, 0)))
    y2, st2 = conv3x3_fused(y1p, w2, scale1, shift1,
                            H=H, W=W, TH=TH, fuse_preact=True)
    scale2, shift2 = _bn_affine(st2, params["gamma2"], params["beta2"],
                                cnt, cout_p, eps)

    # ---- final fused BN + ReLU ----
    out = bn_relu(y2, scale2, shift2, TH=TH)
    out = out[..., :Cout]
    return jnp.transpose(out, (0, 3, 1, 2))  # NHWC -> NCHW


# ---------------------------------------------------------------------------
# Deterministic parameter init (mirrors PyTorch default Conv2d/BatchNorm2d init)
# ---------------------------------------------------------------------------
def init_params(key, in_channels, out_channels):
    def conv_init(k, cin, cout):
        kw, kb = jax.random.split(k)
        bound = 1.0 / (cin * 9) ** 0.5
        w = jax.random.uniform(kw, (cout, cin, 3, 3), jnp.float32, -bound, bound)
        b = jax.random.uniform(kb, (cout,), jnp.float32, -bound, bound)
        return w, b

    k1, k2 = jax.random.split(key)
    w1, b1 = conv_init(k1, in_channels, out_channels)
    w2, b2 = conv_init(k2, out_channels, out_channels)
    # b1/b2 are initialized for parity with the torch module but never applied:
    # training-mode BatchNorm subtracts the per-channel mean, which cancels the
    # conv bias exactly, so the forward output is identical without it.
    return dict(
        w1=w1, b1=b1,
        gamma1=jnp.ones((out_channels,), jnp.float32),
        beta1=jnp.zeros((out_channels,), jnp.float32),
        w2=w2, b2=b2,
        gamma2=jnp.ones((out_channels,), jnp.float32),
        beta2=jnp.zeros((out_channels,), jnp.float32),
    )


if __name__ == "__main__":
    key = jax.random.PRNGKey(0)
    kx, kp = jax.random.split(key)

    N, Cin, H, W = 2, 4, 16, 16
    Cout = 8

    x = jax.random.normal(kx, (N, Cin, H, W), jnp.float32)  # NCHW like PyTorch
    params = init_params(kp, Cin, Cout)

    fwd = jax.jit(lambda xx: double_conv(xx, params))
    out = jax.block_until_ready(fwd(x))
    assert out.shape == (N, Cout, H, W)
    print("KERNEL_OK")
</pallas_src>

<mosaic_0001>
module attributes {stable_mosaic.version = 11 : i64} {
  func.func @kernel(%arg0: i32, %arg1: i32, %arg2: memref<1x128xf32, #tpu.memory_space<vmem>>, %arg3: memref<1x128xf32, #tpu.memory_space<vmem>>, %arg4: memref<9x128x128xbf16, #tpu.memory_space<vmem>>, %arg5: memref<2x18x18x128xf32, #tpu.memory_space<any>>, %arg6: memref<1x8x16x128xf32, #tpu.memory_space<vmem>>, %arg7: memref<1x1x8x128xf32, #tpu.memory_space<vmem>>, %arg8: memref<2x10x18x128xf32, #tpu.memory_space<vmem>>, %arg9: memref<2x!tpu.dma_semaphore, #tpu.memory_space<semaphore_mem>>) attributes {dimension_semantics = [#tpu.dimension_semantics<parallel>, #tpu.dimension_semantics<arbitrary>], iteration_bounds = array<i64: 2, 2>, scalar_prefetch = 0 : i64, scratch_operands = 2 : i64, tpu.core_type = #tpu.core_type<tc>, window_params = [{pipeline_mode = #tpu.pipeline_mode<synchronous>, transform_indices = @transform_0, window_bounds = array<i64: 1, 128>}, {pipeline_mode = #tpu.pipeline_mode<synchronous>, transform_indices = @transform_1, window_bounds = array<i64: 1, 128>}, {pipeline_mode = #tpu.pipeline_mode<synchronous>, transform_indices = @transform_2, window_bounds = array<i64: 9, 128, 128>}, {}, {transform_indices = @transform_4, window_bounds = array<i64: 1, 8, 16, 128>}, {transform_indices = @transform_5, window_bounds = array<i64: 1, 1, 8, 128>}]} {
    %c2_i32 = arith.constant 2 : i32
    %c0_i32 = arith.constant 0 : i32
    %0 = arith.cmpi eq, %c2_i32, %c0_i32 : i32
    %c1_i32 = arith.constant 1 : i32
    %1 = arith.select %0, %c1_i32, %c2_i32 : i32
    %2 = arith.remsi %arg1, %1 : i32
    %c0_i32_0 = arith.constant 0 : i32
    %3 = arith.cmpi ne, %2, %c0_i32_0 : i32
    %c0_i32_1 = arith.constant 0 : i32
    %4 = arith.cmpi slt, %2, %c0_i32_1 : i32
    %c0_i32_2 = arith.constant 0 : i32
    %5 = arith.cmpi slt, %1, %c0_i32_2 : i32
    %6 = arith.xori %4, %5 : i1
    %7 = arith.andi %6, %3 : i1
    %8 = arith.addi %2, %1 : i32
    %9 = arith.select %7, %8, %2 : i32
    %c0_i32_3 = arith.constant 0 : i32
    %10 = arith.cmpi eq, %arg1, %c0_i32_3 : i32
    %11 = arith.extui %10 : i1 to i32
    %c0_i32_4 = arith.constant 0 : i32
    %12 = arith.cmpi ne, %11, %c0_i32_4 : i32
    scf.if %12 {
      %c0_i32_54 = arith.constant 0 : i32
      %c0_i32_55 = arith.constant 0 : i32
      %c0_i32_56 = arith.constant 0 : i32
      %97 = tpu.memref_slice %arg5[%arg0, %c0_i32_54, %c0_i32_55, %c0_i32_56] : memref<2x18x18x128xf32, #tpu.memory_space<any>> -> memref<1x10x18x128xf32, #tpu.memory_space<any>>
      %98 = tpu.memref_squeeze %97 : memref<1x10x18x128xf32, #tpu.memory_space<any>> -> memref<10x18x128xf32, #tpu.memory_space<any>>
      %c0_i32_57 = arith.constant 0 : i32
      %c0_i32_58 = arith.constant 0 : i32
      %c0_i32_59 = arith.constant 0 : i32
      %99 = tpu.memref_slice %arg8[%9, %c0_i32_57, %c0_i32_58, %c0_i32_59] : memref<2x10x18x128xf32, #tpu.memory_space<vmem>> -> memref<1x10x18x128xf32, #tpu.memory_space<vmem>>
      %100 = tpu.memref_squeeze %99 : memref<1x10x18x128xf32, #tpu.memory_space<vmem>> -> memref<10x18x128xf32, #tpu.memory_space<vmem>>
      %101 = tpu.memref_slice %arg9[%9] : memref<2x!tpu.dma_semaphore, #tpu.memory_space<semaphore_mem>> -> memref<1x!tpu.dma_semaphore, #tpu.memory_space<semaphore_mem>>
      %102 = tpu.memref_squeeze %101 : memref<1x!tpu.dma_semaphore, #tpu.memory_space<semaphore_mem>> -> memref<!tpu.dma_semaphore, #tpu.memory_space<semaphore_mem>>
      tpu.enqueue_dma source(%98 : memref<10x18x128xf32, #tpu.memory_space<any>>) target(%100 : memref<10x18x128xf32, #tpu.memory_space<vmem>>) target_semaphore(%102 : memref<!tpu.dma_semaphore, #tpu.memory_space<semaphore_mem>>)
    } else {
    }
    %c8_i32 = arith.constant 8 : i32
    %13 = arith.muli %arg1, %c8_i32 : i32
    %c0_i32_5 = arith.constant 0 : i32
    %c0_i32_6 = arith.constant 0 : i32
    %14 = tpu.memref_slice %arg5[%arg0, %13, %c0_i32_5, %c0_i32_6] : memref<2x18x18x128xf32, #tpu.memory_space<any>> -> memref<1x10x18x128xf32, #tpu.memory_space<any>>
    %15 = tpu.memref_squeeze %14 : memref<1x10x18x128xf32, #tpu.memory_space<any>> -> memref<10x18x128xf32, #tpu.memory_space<any>>
    %c0_i32_7 = arith.constant 0 : i32
    %c0_i32_8 = arith.constant 0 : i32
    %c0_i32_9 = arith.constant 0 : i32
    %16 = tpu.memref_slice %arg8[%9, %c0_i32_7, %c0_i32_8, %c0_i32_9] : memref<2x10x18x128xf32, #tpu.memory_space<vmem>> -> memref<1x10x18x128xf32, #tpu.memory_space<vmem>>
    %17 = tpu.memref_squeeze %16 : memref<1x10x18x128xf32, #tpu.memory_space<vmem>> -> memref<10x18x128xf32, #tpu.memory_space<vmem>>
    %18 = tpu.memref_slice %arg9[%9] : memref<2x!tpu.dma_semaphore, #tpu.memory_space<semaphore_mem>> -> memref<1x!tpu.dma_semaphore, #tpu.memory_space<semaphore_mem>>
    %19 = tpu.memref_squeeze %18 : memref<1x!tpu.dma_semaphore, #tpu.memory_space<semaphore_mem>> -> memref<!tpu.dma_semaphore, #tpu.memory_space<semaphore_mem>>
    tpu.wait_dma2 semaphore(%19 : memref<!tpu.dma_semaphore, #tpu.memory_space<semaphore_mem>>) src(%15 : memref<10x18x128xf32, #tpu.memory_space<any>>) dst(%17 : memref<10x18x128xf32, #tpu.memory_space<vmem>>)
    %c1_i32_10 = arith.constant 1 : i32
    %20 = arith.addi %arg1, %c1_i32_10 : i32
    %c2_i32_11 = arith.constant 2 : i32
    %21 = arith.cmpi slt, %20, %c2_i32_11 : i32
    %22 = arith.extui %21 : i1 to i32
    %c0_i32_12 = arith.constant 0 : i32
    %23 = arith.cmpi ne, %22, %c0_i32_12 : i32
    scf.if %23 {
      %c1_i32_54 = arith.constant 1 : i32
      %97 = arith.addi %arg1, %c1_i32_54 : i32
      %c1_i32_55 = arith.constant 1 : i32
      %98 = arith.subi %c1_i32_55, %9 : i32
      %c8_i32_56 = arith.constant 8 : i32
      %99 = arith.muli %97, %c8_i32_56 : i32
      %c0_i32_57 = arith.constant 0 : i32
      %c0_i32_58 = arith.constant 0 : i32
      %100 = tpu.memref_slice %arg5[%arg0, %99, %c0_i32_57, %c0_i32_58] : memref<2x18x18x128xf32, #tpu.memory_space<any>> -> memref<1x10x18x128xf32, #tpu.memory_space<any>>
      %101 = tpu.memref_squeeze %100 : memref<1x10x18x128xf32, #tpu.memory_space<any>> -> memref<10x18x128xf32, #tpu.memory_space<any>>
      %c0_i32_59 = arith.constant 0 : i32
      %c0_i32_60 = arith.constant 0 : i32
      %c0_i32_61 = arith.constant 0 : i32
      %102 = tpu.memref_slice %arg8[%98, %c0_i32_59, %c0_i32_60, %c0_i32_61] : memref<2x10x18x128xf32, #tpu.memory_space<vmem>> -> memref<1x10x18x128xf32, #tpu.memory_space<vmem>>
      %103 = tpu.memref_squeeze %102 : memref<1x10x18x128xf32, #tpu.memory_space<vmem>> -> memref<10x18x128xf32, #tpu.memory_space<vmem>>
      %104 = tpu.memref_slice %arg9[%98] : memref<2x!tpu.dma_semaphore, #tpu.memory_space<semaphore_mem>> -> memref<1x!tpu.dma_semaphore, #tpu.memory_space<semaphore_mem>>
      %105 = tpu.memref_squeeze %104 : memref<1x!tpu.dma_semaphore, #tpu.memory_space<semaphore_mem>> -> memref<!tpu.dma_semaphore, #tpu.memory_space<semaphore_mem>>
      tpu.enqueue_dma source(%101 : memref<10x18x128xf32, #tpu.memory_space<any>>) target(%103 : memref<10x18x128xf32, #tpu.memory_space<vmem>>) target_semaphore(%105 : memref<!tpu.dma_semaphore, #tpu.memory_space<semaphore_mem>>)
    } else {
    }
    %24 = arith.index_cast %9 : i32 to index
    %c0 = arith.constant 0 : index
    %c0_13 = arith.constant 0 : index
    %c0_14 = arith.constant 0 : index
    %25 = vector.load %arg8[%24, %c0, %c0_13, %c0_14] : memref<2x10x18x128xf32, #tpu.memory_space<vmem>>, vector<1x10x18x128xf32>
    %26 = vector.shape_cast %25 : vector<1x10x18x128xf32> to vector<10x18x128xf32>
    %27 = arith.truncf %26 : vector<10x18x128xf32> to vector<10x18x128xbf16>
    %cst = arith.constant 0.000000e+00 : f32
    %28 = vector.broadcast %cst : f32 to vector<128x128xf32>
    %29 = vector.extract_strided_slice %27 {offsets = [0, 0, 0], sizes = [8, 16, 128], strides = [1, 1, 1]} : vector<10x18x128xbf16> to vector<8x16x128xbf16>
    %30 = vector.shape_cast %29 : vector<8x16x128xbf16> to vector<128x128xbf16>
    %c0_15 = arith.constant 0 : index
    %c0_16 = arith.constant 0 : index
    %c0_17 = arith.constant 0 : index
    %31 = vector.load %arg4[%c0_15, %c0_16, %c0_17] : memref<9x128x128xbf16, #tpu.memory_space<vmem>>, vector<1x128x128xbf16>
    %32 = vector.shape_cast %31 : vector<1x128x128xbf16> to vector<128x128xbf16>
    %cst_18 = arith.constant dense<0.000000e+00> : vector<128x128xf32>
    %33 = tpu.matmul %30, %32, %cst_18 {dimension_numbers = #tpu.dot_dimension_numbers<[1], [0], [0], [1], [0, 0, 1, 1], [], []>} : vector<128x128xbf16>, vector<128x128xbf16>, vector<128x128xf32> -> vector<128x128xf32>
    %34 = arith.addf %28, %33 : vector<128x128xf32>
    %35 = vector.extract_strided_slice %27 {offsets = [0, 1, 0], sizes = [8, 16, 128], strides = [1, 1, 1]} : vector<10x18x128xbf16> to vector<8x16x128xbf16>
    %36 = vector.shape_cast %35 : vector<8x16x128xbf16> to vector<128x128xbf16>
    %c1 = arith.constant 1 : index
    %c0_19 = arith.constant 0 : index
    %c0_20 = arith.constant 0 : index
    %37 = vector.load %arg4[%c1, %c0_19, %c0_20] : memref<9x128x128xbf16, #tpu.memory_space<vmem>>, vector<1x128x128xbf16>
    %38 = vector.shape_cast %37 : vector<1x128x128xbf16> to vector<128x128xbf16>
    %cst_21 = arith.constant dense<0.000000e+00> : vector<128x128xf32>
    %39 = tpu.matmul %36, %38, %cst_21 {dimension_numbers = #tpu.dot_dimension_numbers<[1], [0], [0], [1], [0, 0, 1, 1], [], []>} : vector<128x128xbf16>, vector<128x128xbf16>, vector<128x128xf32> -> vector<128x128xf32>
    %40 = arith.addf %34, %39 : vector<128x128xf32>
    %41 = vector.extract_strided_slice %27 {offsets = [0, 2, 0], sizes = [8, 16, 128], strides = [1, 1, 1]} : vector<10x18x128xbf16> to vector<8x16x128xbf16>
    %42 = vector.shape_cast %41 : vector<8x16x128xbf16> to vector<128x128xbf16>
    %c2 = arith.constant 2 : index
    %c0_22 = arith.constant 0 : index
    %c0_23 = arith.constant 0 : index
    %43 = vector.load %arg4[%c2, %c0_22, %c0_23] : memref<9x128x128xbf16, #tpu.memory_space<vmem>>, vector<1x128x128xbf16>
    %44 = vector.shape_cast %43 : vector<1x128x128xbf16> to vector<128x128xbf16>
    %cst_24 = arith.constant dense<0.000000e+00> : vector<128x128xf32>
    %45 = tpu.matmul %42, %44, %cst_24 {dimension_numbers = #tpu.dot_dimension_numbers<[1], [0], [0], [1], [0, 0, 1, 1], [], []>} : vector<128x128xbf16>, vector<128x128xbf16>, vector<128x128xf32> -> vector<128x128xf32>
    %46 = arith.addf %40, %45 : vector<128x128xf32>
    %47 = vector.extract_strided_slice %27 {offsets = [1, 0, 0], sizes = [8, 16, 128], strides = [1, 1, 1]} : vector<10x18x128xbf16> to vector<8x16x128xbf16>
    %48 = vector.shape_cast %47 : vector<8x16x128xbf16> to vector<128x128xbf16>
    %c3 = arith.constant 3 : index
    %c0_25 = arith.constant 0 : index
    %c0_26 = arith.constant 0 : index
    %49 = vector.load %arg4[%c3, %c0_25, %c0_26] : memref<9x128x128xbf16, #tpu.memory_space<vmem>>, vector<1x128x128xbf16>
    %50 = vector.shape_cast %49 : vector<1x128x128xbf16> to vector<128x128xbf16>
    %cst_27 = arith.constant dense<0.000000e+00> : vector<128x128xf32>
    %51 = tpu.matmul %48, %50, %cst_27 {dimension_numbers = #tpu.dot_dimension_numbers<[1], [0], [0], [1], [0, 0, 1, 1], [], []>} : vector<128x128xbf16>, vector<128x128xbf16>, vector<128x128xf32> -> vector<128x128xf32>
    %52 = arith.addf %46, %51 : vector<128x128xf32>
    %53 = vector.extract_strided_slice %27 {offsets = [1, 1, 0], sizes = [8, 16, 128], strides = [1, 1, 1]} : vector<10x18x128xbf16> to vector<8x16x128xbf16>
    %54 = vector.shape_cast %53 : vector<8x16x128xbf16> to vector<128x128xbf16>
    %c4 = arith.constant 4 : index
    %c0_28 = arith.constant 0 : index
    %c0_29 = arith.constant 0 : index
    %55 = vector.load %arg4[%c4, %c0_28, %c0_29] : memref<9x128x128xbf16, #tpu.memory_space<vmem>>, vector<1x128x128xbf16>
    %56 = vector.shape_cast %55 : vector<1x128x128xbf16> to vector<128x128xbf16>
    %cst_30 = arith.constant dense<0.000000e+00> : vector<128x128xf32>
    %57 = tpu.matmul %54, %56, %cst_30 {dimension_numbers = #tpu.dot_dimension_numbers<[1], [0], [0], [1], [0, 0, 1, 1], [], []>} : vector<128x128xbf16>, vector<128x128xbf16>, vector<128x128xf32> -> vector<128x128xf32>
    %58 = arith.addf %52, %57 : vector<128x128xf32>
    %59 = vector.extract_strided_slice %27 {offsets = [1, 2, 0], sizes = [8, 16, 128], strides = [1, 1, 1]} : vector<10x18x128xbf16> to vector<8x16x128xbf16>
    %60 = vector.shape_cast %59 : vector<8x16x128xbf16> to vector<128x128xbf16>
    %c5 = arith.constant 5 : index
    %c0_31 = arith.constant 0 : index
    %c0_32 = arith.constant 0 : index
    %61 = vector.load %arg4[%c5, %c0_31, %c0_32] : memref<9x128x128xbf16, #tpu.memory_space<vmem>>, vector<1x128x128xbf16>
    %62 = vector.shape_cast %61 : vector<1x128x128xbf16> to vector<128x128xbf16>
    %cst_33 = arith.constant dense<0.000000e+00> : vector<128x128xf32>
    %63 = tpu.matmul %60, %62, %cst_33 {dimension_numbers = #tpu.dot_dimension_numbers<[1], [0], [0], [1], [0, 0, 1, 1], [], []>} : vector<128x128xbf16>, vector<128x128xbf16>, vector<128x128xf32> -> vector<128x128xf32>
    %64 = arith.addf %58, %63 : vector<128x128xf32>
    %65 = vector.extract_strided_slice %27 {offsets = [2, 0, 0], sizes = [8, 16, 128], strides = [1, 1, 1]} : vector<10x18x128xbf16> to vector<8x16x128xbf16>
    %66 = vector.shape_cast %65 : vector<8x16x128xbf16> to vector<128x128xbf16>
    %c6 = arith.constant 6 : index
    %c0_34 = arith.constant 0 : index
    %c0_35 = arith.constant 0 : index
    %67 = vector.load %arg4[%c6, %c0_34, %c0_35] : memref<9x128x128xbf16, #tpu.memory_space<vmem>>, vector<1x128x128xbf16>
    %68 = vector.shape_cast %67 : vector<1x128x128xbf16> to vector<128x128xbf16>
    %cst_36 = arith.constant dense<0.000000e+00> : vector<128x128xf32>
    %69 = tpu.matmul %66, %68, %cst_36 {dimension_numbers = #tpu.dot_dimension_numbers<[1], [0], [0], [1], [0, 0, 1, 1], [], []>} : vector<128x128xbf16>, vector<128x128xbf16>, vector<128x128xf32> -> vector<128x128xf32>
    %70 = arith.addf %64, %69 : vector<128x128xf32>
    %71 = vector.extract_strided_slice %27 {offsets = [2, 1, 0], sizes = [8, 16, 128], strides = [1, 1, 1]} : vector<10x18x128xbf16> to vector<8x16x128xbf16>
    %72 = vector.shape_cast %71 : vector<8x16x128xbf16> to vector<128x128xbf16>
    %c7 = arith.constant 7 : index
    %c0_37 = arith.constant 0 : index
    %c0_38 = arith.constant 0 : index
    %73 = vector.load %arg4[%c7, %c0_37, %c0_38] : memref<9x128x128xbf16, #tpu.memory_space<vmem>>, vector<1x128x128xbf16>
    %74 = vector.shape_cast %73 : vector<1x128x128xbf16> to vector<128x128xbf16>
    %cst_39 = arith.constant dense<0.000000e+00> : vector<128x128xf32>
    %75 = tpu.matmul %72, %74, %cst_39 {dimension_numbers = #tpu.dot_dimension_numbers<[1], [0], [0], [1], [0, 0, 1, 1], [], []>} : vector<128x128xbf16>, vector<128x128xbf16>, vector<128x128xf32> -> vector<128x128xf32>
    %76 = arith.addf %70, %75 : vector<128x128xf32>
    %77 = vector.extract_strided_slice %27 {offsets = [2, 2, 0], sizes = [8, 16, 128], strides = [1, 1, 1]} : vector<10x18x128xbf16> to vector<8x16x128xbf16>
    %78 = vector.shape_cast %77 : vector<8x16x128xbf16> to vector<128x128xbf16>
    %c8 = arith.constant 8 : index
    %c0_40 = arith.constant 0 : index
    %c0_41 = arith.constant 0 : index
    %79 = vector.load %arg4[%c8, %c0_40, %c0_41] : memref<9x128x128xbf16, #tpu.memory_space<vmem>>, vector<1x128x128xbf16>
    %80 = vector.shape_cast %79 : vector<1x128x128xbf16> to vector<128x128xbf16>
    %cst_42 = arith.constant dense<0.000000e+00> : vector<128x128xf32>
    %81 = tpu.matmul %78, %80, %cst_42 {dimension_numbers = #tpu.dot_dimension_numbers<[1], [0], [0], [1], [0, 0, 1, 1], [], []>} : vector<128x128xbf16>, vector<128x128xbf16>, vector<128x128xf32> -> vector<128x128xf32>
    %82 = arith.addf %76, %81 : vector<128x128xf32>
    %83 = vector.shape_cast %82 : vector<128x128xf32> to vector<8x16x128xf32>
    %c0_43 = arith.constant 0 : index
    %c0_44 = arith.constant 0 : index
    %c0_45 = arith.constant 0 : index
    %c0_46 = arith.constant 0 : index
    %84 = vector.load %arg6[%c0_43, %c0_44, %c0_45, %c0_46] : memref<1x8x16x128xf32, #tpu.memory_space<vmem>>, vector<1x8x16x128xf32>
    %85 = vector.shape_cast %84 : vector<1x8x16x128xf32> to vector<8x16x128xf32>
    %86 = vector.shape_cast %83 : vector<8x16x128xf32> to vector<1x8x16x128xf32>
    tpu.vector_store %arg6[%c0_43, %c0_44, %c0_45, %c0_46], %86 {strides = array<i32>} : memref<1x8x16x128xf32, #tpu.memory_space<vmem>>, vector<1x8x16x128xf32>,
    %cst_47 = arith.constant dense<0.000000e+00> : vector<128xf32>
    %87 = vector.multi_reduction <add>, %82, %cst_47 [0] : vector<128x128xf32> to vector<128xf32>
    %88 = vector.shape_cast %87 : vector<128xf32> to vector<1x128xf32>
    %89 = arith.mulf %82, %82 : vector<128x128xf32>
    %cst_48 = arith.constant dense<0.000000e+00> : vector<128xf32>
    %90 = vector.multi_reduction <add>, %89, %cst_48 [0] : vector<128x128xf32> to vector<128xf32>
    %91 = vector.shape_cast %90 : vector<128xf32> to vector<1x128xf32>
    %cst_49 = arith.constant 0.000000e+00 : f32
    %92 = vector.broadcast %cst_49 : f32 to vector<6x128xf32>
    %93 = tpu.concatenate %88, %91, %92 in 0 : vector<1x128xf32>, vector<1x128xf32>, vector<6x128xf32> -> vector<8x128xf32>
    %c0_50 = arith.constant 0 : index
    %c0_51 = arith.constant 0 : index
    %c0_52 = arith.constant 0 : index
    %c0_53 = arith.constant 0 : index
    %94 = vector.load %arg7[%c0_50, %c0_51, %c0_52, %c0_53] : memref<1x1x8x128xf32, #tpu.memory_space<vmem>>, vector<1x1x8x128xf32>
    %95 = vector.shape_cast %94 : vector<1x1x8x128xf32> to vector<8x128xf32>
    %96 = vector.shape_cast %93 : vector<8x128xf32> to vector<1x1x8x128xf32>
    tpu.vector_store %arg7[%c0_50, %c0_51, %c0_52, %c0_53], %96 {strides = array<i32>} : memref<1x1x8x128xf32, #tpu.memory_space<vmem>>, vector<1x1x8x128xf32>,
    return
  }
  func.func @transform_0(%arg0: i32, %arg1: i32) -> (i32, i32) {
    %c0_i32 = arith.constant 0 : i32
    %c0_i32_0 = arith.constant 0 : i32
    %c0_i32_1 = arith.constant 0 : i32
    return %c0_i32, %c0_i32_0 : i32, i32
  }
  func.func @transform_1(%arg0: i32, %arg1: i32) -> (i32, i32) {
    %c0_i32 = arith.constant 0 : i32
    %c0_i32_0 = arith.constant 0 : i32
    %c0_i32_1 = arith.constant 0 : i32
    return %c0_i32, %c0_i32_0 : i32, i32
  }
  func.func @transform_2(%arg0: i32, %arg1: i32) -> (i32, i32, i32) {
    %c0_i32 = arith.constant 0 : i32
    %c0_i32_0 = arith.constant 0 : i32
    %c0_i32_1 = arith.constant 0 : i32
    %c0_i32_2 = arith.constant 0 : i32
    return %c0_i32, %c0_i32_0, %c0_i32_1 : i32, i32, i32
  }
  func.func @transform_4(%arg0: i32, %arg1: i32) -> (i32, i32, i32, i32) {
    %c0_i32 = arith.constant 0 : i32
    %c0_i32_0 = arith.constant 0 : i32
    %c0_i32_1 = arith.constant 0 : i32
    return %arg0, %arg1, %c0_i32, %c0_i32_0 : i32, i32, i32, i32
  }
  func.func @transform_5(%arg0: i32, %arg1: i32) -> (i32, i32, i32, i32) {
    %c0_i32 = arith.constant 0 : i32
    %c0_i32_0 = arith.constant 0 : i32
    %c0_i32_1 = arith.constant 0 : i32
    return %arg0, %arg1, %c0_i32, %c0_i32_0 : i32, i32, i32, i32
  }
}

module attributes {stable_mosaic.version = 11 : i64} {
  func.func @_bn_relu_kernel(%arg0: i32, %arg1: i32, %arg2: memref<1x8x16x128xf32, #tpu.memory_space<vmem>>, %arg3: memref<1x128xf32, #tpu.memory_space<vmem>>, %arg4: memref<1x128xf32, #tpu.memory_space<vmem>>, %arg5: memref<1x8x16x128xf32, #tpu.memory_space<vmem>>) attributes {dimension_semantics = [#tpu.dimension_semantics<parallel>, #tpu.dimension_semantics<parallel>], iteration_bounds = array<i64: 2, 2>, scalar_prefetch = 0 : i64, scratch_operands = 0 : i64, tpu.core_type = #tpu.core_type<tc>, window_params = [{transform_indices = @transform_0, window_bounds = array<i64: 1, 8, 16, 128>}, {pipeline_mode = #tpu.pipeline_mode<synchronous>, transform_indices = @transform_1, window_bounds = array<i64: 1, 128>}, {pipeline_mode = #tpu.pipeline_mode<synchronous>, transform_indices = @transform_2, window_bounds = array<i64: 1, 128>}, {transform_indices = @transform_3, window_bounds = array<i64: 1, 8, 16, 128>}]} {
    %c0 = arith.constant 0 : index
    %c0_0 = arith.constant 0 : index
    %c0_1 = arith.constant 0 : index
    %c0_2 = arith.constant 0 : index
    %0 = vector.load %arg2[%c0, %c0_0, %c0_1, %c0_2] : memref<1x8x16x128xf32, #tpu.memory_space<vmem>>, vector<1x8x16x128xf32>
    %1 = vector.shape_cast %0 : vector<1x8x16x128xf32> to vector<8x16x128xf32>
    %c0_3 = arith.constant 0 : index
    %c0_4 = arith.constant 0 : index
    %2 = vector.load %arg3[%c0_3, %c0_4] : memref<1x128xf32, #tpu.memory_space<vmem>>, vector<1x128xf32>
    %3 = vector.shape_cast %2 : vector<1x128xf32> to vector<1x1x128xf32>
    %4 = vector.broadcast %3 : vector<1x1x128xf32> to vector<8x16x128xf32>
    %5 = arith.mulf %1, %4 : vector<8x16x128xf32>
    %c0_5 = arith.constant 0 : index
    %c0_6 = arith.constant 0 : index
    %6 = vector.load %arg4[%c0_5, %c0_6] : memref<1x128xf32, #tpu.memory_space<vmem>>, vector<1x128xf32>
    %7 = vector.shape_cast %6 : vector<1x128xf32> to vector<1x1x128xf32>
    %8 = vector.broadcast %7 : vector<1x1x128xf32> to vector<8x16x128xf32>
    %9 = arith.addf %5, %8 : vector<8x16x128xf32>
    %cst = arith.constant 0.000000e+00 : f32
    %10 = vector.broadcast %cst : f32 to vector<8x16x128xf32>
    %11 = arith.maximumf %9, %10 : vector<8x16x128xf32>
    %c0_7 = arith.constant 0 : index
    %c0_8 = arith.constant 0 : index
    %c0_9 = arith.constant 0 : index
    %c0_10 = arith.constant 0 : index
    %12 = vector.load %arg5[%c0_7, %c0_8, %c0_9, %c0_10] : memref<1x8x16x128xf32, #tpu.memory_space<vmem>>, vector<1x8x16x128xf32>
    %13 = vector.shape_cast %12 : vector<1x8x16x128xf32> to vector<8x16x128xf32>
    %14 = vector.shape_cast %11 : vector<8x16x128xf32> to vector<1x8x16x128xf32>
    tpu.vector_store %arg5[%c0_7, %c0_8, %c0_9, %c0_10], %14 {strides = array<i32>} : memref<1x8x16x128xf32, #tpu.memory_space<vmem>>, vector<1x8x16x128xf32>,
    return
  }
  func.func @transform_0(%arg0: i32, %arg1: i32) -> (i32, i32, i32, i32) {
    %c0_i32 = arith.constant 0 : i32
    %c0_i32_0 = arith.constant 0 : i32
    %c0_i32_1 = arith.constant 0 : i32
    return %arg0, %arg1, %c0_i32, %c0_i32_0 : i32, i32, i32, i32
  }
  func.func @transform_1(%arg0: i32, %arg1: i32) -> (i32, i32) {
    %c0_i32 = arith.constant 0 : i32
    %c0_i32_0 = arith.constant 0 : i32
    %c0_i32_1 = arith.constant 0 : i32
    return %c0_i32, %c0_i32_0 : i32, i32
  }
  func.func @transform_2(%arg0: i32, %arg1: i32) -> (i32, i32) {
    %c0_i32 = arith.constant 0 : i32
    %c0_i32_0 = arith.constant 0 : i32
    %c0_i32_1 = arith.constant 0 : i32
    return %c0_i32, %c0_i32_0 : i32, i32
  }
  func.func @transform_3(%arg0: i32, %arg1: i32) -> (i32, i32, i32, i32) {
    %c0_i32 = arith.constant 0 : i32
    %c0_i32_0 = arith.constant 0 : i32
    %c0_i32_1 = arith.constant 0 : i32
    return %arg0, %arg1, %c0_i32, %c0_i32_0 : i32, i32, i32, i32
  }
}

module attributes {stable_mosaic.version = 11 : i64} {
  func.func @kernel(%arg0: i32, %arg1: i32, %arg2: memref<1x128xf32, #tpu.memory_space<vmem>>, %arg3: memref<1x128xf32, #tpu.memory_space<vmem>>, %arg4: memref<9x128x128xbf16, #tpu.memory_space<vmem>>, %arg5: memref<2x18x18x128xf32, #tpu.memory_space<any>>, %arg6: memref<1x8x16x128xf32, #tpu.memory_space<vmem>>, %arg7: memref<1x1x8x128xf32, #tpu.memory_space<vmem>>, %arg8: memref<2x10x18x128xf32, #tpu.memory_space<vmem>>, %arg9: memref<2x!tpu.dma_semaphore, #tpu.memory_space<semaphore_mem>>) attributes {dimension_semantics = [#tpu.dimension_semantics<parallel>, #tpu.dimension_semantics<arbitrary>], iteration_bounds = array<i64: 2, 2>, scalar_prefetch = 0 : i64, scratch_operands = 2 : i64, tpu.core_type = #tpu.core_type<tc>, window_params = [{pipeline_mode = #tpu.pipeline_mode<synchronous>, transform_indices = @transform_0, window_bounds = array<i64: 1, 128>}, {pipeline_mode = #tpu.pipeline_mode<synchronous>, transform_indices = @transform_1, window_bounds = array<i64: 1, 128>}, {pipeline_mode = #tpu.pipeline_mode<synchronous>, transform_indices = @transform_2, window_bounds = array<i64: 9, 128, 128>}, {}, {transform_indices = @transform_4, window_bounds = array<i64: 1, 8, 16, 128>}, {transform_indices = @transform_5, window_bounds = array<i64: 1, 1, 8, 128>}]} {
    %c2_i32 = arith.constant 2 : i32
    %c0_i32 = arith.constant 0 : i32
    %0 = arith.cmpi eq, %c2_i32, %c0_i32 : i32
    %c1_i32 = arith.constant 1 : i32
    %1 = arith.select %0, %c1_i32, %c2_i32 : i32
    %2 = arith.remsi %arg1, %1 : i32
    %c0_i32_0 = arith.constant 0 : i32
    %3 = arith.cmpi ne, %2, %c0_i32_0 : i32
    %c0_i32_1 = arith.constant 0 : i32
    %4 = arith.cmpi slt, %2, %c0_i32_1 : i32
    %c0_i32_2 = arith.constant 0 : i32
    %5 = arith.cmpi slt, %1, %c0_i32_2 : i32
    %6 = arith.xori %4, %5 : i1
    %7 = arith.andi %6, %3 : i1
    %8 = arith.addi %2, %1 : i32
    %9 = arith.select %7, %8, %2 : i32
    %c0_i32_3 = arith.constant 0 : i32
    %10 = arith.cmpi eq, %arg1, %c0_i32_3 : i32
    %11 = arith.extui %10 : i1 to i32
    %c0_i32_4 = arith.constant 0 : i32
    %12 = arith.cmpi ne, %11, %c0_i32_4 : i32
    scf.if %12 {
      %c0_i32_64 = arith.constant 0 : i32
      %c0_i32_65 = arith.constant 0 : i32
      %c0_i32_66 = arith.constant 0 : i32
      %125 = tpu.memref_slice %arg5[%arg0, %c0_i32_64, %c0_i32_65, %c0_i32_66] : memref<2x18x18x128xf32, #tpu.memory_space<any>> -> memref<1x10x18x128xf32, #tpu.memory_space<any>>
      %126 = tpu.memref_squeeze %125 : memref<1x10x18x128xf32, #tpu.memory_space<any>> -> memref<10x18x128xf32, #tpu.memory_space<any>>
      %c0_i32_67 = arith.constant 0 : i32
      %c0_i32_68 = arith.constant 0 : i32
      %c0_i32_69 = arith.constant 0 : i32
      %127 = tpu.memref_slice %arg8[%9, %c0_i32_67, %c0_i32_68, %c0_i32_69] : memref<2x10x18x128xf32, #tpu.memory_space<vmem>> -> memref<1x10x18x128xf32, #tpu.memory_space<vmem>>
      %128 = tpu.memref_squeeze %127 : memref<1x10x18x128xf32, #tpu.memory_space<vmem>> -> memref<10x18x128xf32, #tpu.memory_space<vmem>>
      %129 = tpu.memref_slice %arg9[%9] : memref<2x!tpu.dma_semaphore, #tpu.memory_space<semaphore_mem>> -> memref<1x!tpu.dma_semaphore, #tpu.memory_space<semaphore_mem>>
      %130 = tpu.memref_squeeze %129 : memref<1x!tpu.dma_semaphore, #tpu.memory_space<semaphore_mem>> -> memref<!tpu.dma_semaphore, #tpu.memory_space<semaphore_mem>>
      tpu.enqueue_dma source(%126 : memref<10x18x128xf32, #tpu.memory_space<any>>) target(%128 : memref<10x18x128xf32, #tpu.memory_space<vmem>>) target_semaphore(%130 : memref<!tpu.dma_semaphore, #tpu.memory_space<semaphore_mem>>)
    } else {
    }
    %c8_i32 = arith.constant 8 : i32
    %13 = arith.muli %arg1, %c8_i32 : i32
    %c0_i32_5 = arith.constant 0 : i32
    %c0_i32_6 = arith.constant 0 : i32
    %14 = tpu.memref_slice %arg5[%arg0, %13, %c0_i32_5, %c0_i32_6] : memref<2x18x18x128xf32, #tpu.memory_space<any>> -> memref<1x10x18x128xf32, #tpu.memory_space<any>>
    %15 = tpu.memref_squeeze %14 : memref<1x10x18x128xf32, #tpu.memory_space<any>> -> memref<10x18x128xf32, #tpu.memory_space<any>>
    %c0_i32_7 = arith.constant 0 : i32
    %c0_i32_8 = arith.constant 0 : i32
    %c0_i32_9 = arith.constant 0 : i32
    %16 = tpu.memref_slice %arg8[%9, %c0_i32_7, %c0_i32_8, %c0_i32_9] : memref<2x10x18x128xf32, #tpu.memory_space<vmem>> -> memref<1x10x18x128xf32, #tpu.memory_space<vmem>>
    %17 = tpu.memref_squeeze %16 : memref<1x10x18x128xf32, #tpu.memory_space<vmem>> -> memref<10x18x128xf32, #tpu.memory_space<vmem>>
    %18 = tpu.memref_slice %arg9[%9] : memref<2x!tpu.dma_semaphore, #tpu.memory_space<semaphore_mem>> -> memref<1x!tpu.dma_semaphore, #tpu.memory_space<semaphore_mem>>
    %19 = tpu.memref_squeeze %18 : memref<1x!tpu.dma_semaphore, #tpu.memory_space<semaphore_mem>> -> memref<!tpu.dma_semaphore, #tpu.memory_space<semaphore_mem>>
    tpu.wait_dma2 semaphore(%19 : memref<!tpu.dma_semaphore, #tpu.memory_space<semaphore_mem>>) src(%15 : memref<10x18x128xf32, #tpu.memory_space<any>>) dst(%17 : memref<10x18x128xf32, #tpu.memory_space<vmem>>)
    %c1_i32_10 = arith.constant 1 : i32
    %20 = arith.addi %arg1, %c1_i32_10 : i32
    %c2_i32_11 = arith.constant 2 : i32
    %21 = arith.cmpi slt, %20, %c2_i32_11 : i32
    %22 = arith.extui %21 : i1 to i32
    %c0_i32_12 = arith.constant 0 : i32
    %23 = arith.cmpi ne, %22, %c0_i32_12 : i32
    scf.if %23 {
      %c1_i32_64 = arith.constant 1 : i32
      %125 = arith.addi %arg1, %c1_i32_64 : i32
      %c1_i32_65 = arith.constant 1 : i32
      %126 = arith.subi %c1_i32_65, %9 : i32
      %c8_i32_66 = arith.constant 8 : i32
      %127 = arith.muli %125, %c8_i32_66 : i32
      %c0_i32_67 = arith.constant 0 : i32
      %c0_i32_68 = arith.constant 0 : i32
      %128 = tpu.memref_slice %arg5[%arg0, %127, %c0_i32_67, %c0_i32_68] : memref<2x18x18x128xf32, #tpu.memory_space<any>> -> memref<1x10x18x128xf32, #tpu.memory_space<any>>
      %129 = tpu.memref_squeeze %128 : memref<1x10x18x128xf32, #tpu.memory_space<any>> -> memref<10x18x128xf32, #tpu.memory_space<any>>
      %c0_i32_69 = arith.constant 0 : i32
      %c0_i32_70 = arith.constant 0 : i32
      %c0_i32_71 = arith.constant 0 : i32
      %130 = tpu.memref_slice %arg8[%126, %c0_i32_69, %c0_i32_70, %c0_i32_71] : memref<2x10x18x128xf32, #tpu.memory_space<vmem>> -> memref<1x10x18x128xf32, #tpu.memory_space<vmem>>
      %131 = tpu.memref_squeeze %130 : memref<1x10x18x128xf32, #tpu.memory_space<vmem>> -> memref<10x18x128xf32, #tpu.memory_space<vmem>>
      %132 = tpu.memref_slice %arg9[%126] : memref<2x!tpu.dma_semaphore, #tpu.memory_space<semaphore_mem>> -> memref<1x!tpu.dma_semaphore, #tpu.memory_space<semaphore_mem>>
      %133 = tpu.memref_squeeze %132 : memref<1x!tpu.dma_semaphore, #tpu.memory_space<semaphore_mem>> -> memref<!tpu.dma_semaphore, #tpu.memory_space<semaphore_mem>>
      tpu.enqueue_dma source(%129 : memref<10x18x128xf32, #tpu.memory_space<any>>) target(%131 : memref<10x18x128xf32, #tpu.memory_space<vmem>>) target_semaphore(%133 : memref<!tpu.dma_semaphore, #tpu.memory_space<semaphore_mem>>)
    } else {
    }
    %24 = arith.index_cast %9 : i32 to index
    %c0 = arith.constant 0 : index
    %c0_13 = arith.constant 0 : index
    %c0_14 = arith.constant 0 : index
    %25 = vector.load %arg8[%24, %c0, %c0_13, %c0_14] : memref<2x10x18x128xf32, #tpu.memory_space<vmem>>, vector<1x10x18x128xf32>
    %26 = vector.shape_cast %25 : vector<1x10x18x128xf32> to vector<10x18x128xf32>
    %c0_15 = arith.constant 0 : index
    %c0_16 = arith.constant 0 : index
    %27 = vector.load %arg2[%c0_15, %c0_16] : memref<1x128xf32, #tpu.memory_space<vmem>>, vector<1x128xf32>
    %28 = vector.shape_cast %27 : vector<1x128xf32> to vector<1x1x128xf32>
    %29 = vector.broadcast %28 : vector<1x1x128xf32> to vector<10x18x128xf32>
    %30 = arith.mulf %26, %29 : vector<10x18x128xf32>
    %c0_17 = arith.constant 0 : index
    %c0_18 = arith.constant 0 : index
    %31 = vector.load %arg3[%c0_17, %c0_18] : memref<1x128xf32, #tpu.memory_space<vmem>>, vector<1x128xf32>
    %32 = vector.shape_cast %31 : vector<1x128xf32> to vector<1x1x128xf32>
    %33 = vector.broadcast %32 : vector<1x1x128xf32> to vector<10x18x128xf32>
    %34 = arith.addf %30, %33 : vector<10x18x128xf32>
    %cst = arith.constant 0.000000e+00 : f32
    %35 = vector.broadcast %cst : f32 to vector<10x18x128xf32>
    %36 = arith.maximumf %34, %35 : vector<10x18x128xf32>
    %c8_i32_19 = arith.constant 8 : i32
    %37 = arith.muli %arg1, %c8_i32_19 : i32
    %38 = tpu.iota {dimensions = array<i32: 0>} : vector<10x18x128xi32>
    %39 = vector.broadcast %37 : i32 to vector<10x18x128xi32>
    %40 = arith.addi %39, %38 : vector<10x18x128xi32>
    %41 = tpu.iota {dimensions = array<i32: 1>} : vector<10x18x128xi32>
    %c1_i32_20 = arith.constant 1 : i32
    %42 = vector.broadcast %c1_i32_20 : i32 to vector<10x18x128xi32>
    %43 = arith.cmpi sge, %40, %42 : vector<10x18x128xi32>
    %c16_i32 = arith.constant 16 : i32
    %44 = vector.broadcast %c16_i32 : i32 to vector<10x18x128xi32>
    %45 = arith.cmpi sle, %40, %44 : vector<10x18x128xi32>
    %46 = arith.andi %43, %45 : vector<10x18x128xi1>
    %c1_i32_21 = arith.constant 1 : i32
    %47 = vector.broadcast %c1_i32_21 : i32 to vector<10x18x128xi32>
    %48 = arith.cmpi sge, %41, %47 : vector<10x18x128xi32>
    %49 = arith.andi %46, %48 : vector<10x18x128xi1>
    %c16_i32_22 = arith.constant 16 : i32
    %50 = vector.broadcast %c16_i32_22 : i32 to vector<10x18x128xi32>
    %51 = arith.cmpi sle, %41, %50 : vector<10x18x128xi32>
    %52 = arith.andi %49, %51 : vector<10x18x128xi1>
    %cst_23 = arith.constant 0.000000e+00 : f32
    %53 = vector.broadcast %cst_23 : f32 to vector<10x18x128xf32>
    %54 = arith.select %52, %36, %53 : vector<10x18x128xi1>, vector<10x18x128xf32>
    %55 = arith.truncf %54 : vector<10x18x128xf32> to vector<10x18x128xbf16>
    %cst_24 = arith.constant 0.000000e+00 : f32
    %56 = vector.broadcast %cst_24 : f32 to vector<128x128xf32>
    %57 = vector.extract_strided_slice %55 {offsets = [0, 0, 0], sizes = [8, 16, 128], strides = [1, 1, 1]} : vector<10x18x128xbf16> to vector<8x16x128xbf16>
    %58 = vector.shape_cast %57 : vector<8x16x128xbf16> to vector<128x128xbf16>
    %c0_25 = arith.constant 0 : index
    %c0_26 = arith.constant 0 : index
    %c0_27 = arith.constant 0 : index
    %59 = vector.load %arg4[%c0_25, %c0_26, %c0_27] : memref<9x128x128xbf16, #tpu.memory_space<vmem>>, vector<1x128x128xbf16>
    %60 = vector.shape_cast %59 : vector<1x128x128xbf16> to vector<128x128xbf16>
    %cst_28 = arith.constant dense<0.000000e+00> : vector<128x128xf32>
    %61 = tpu.matmul %58, %60, %cst_28 {dimension_numbers = #tpu.dot_dimension_numbers<[1], [0], [0], [1], [0, 0, 1, 1], [], []>} : vector<128x128xbf16>, vector<128x128xbf16>, vector<128x128xf32> -> vector<128x128xf32>
    %62 = arith.addf %56, %61 : vector<128x128xf32>
    %63 = vector.extract_strided_slice %55 {offsets = [0, 1, 0], sizes = [8, 16, 128], strides = [1, 1, 1]} : vector<10x18x128xbf16> to vector<8x16x128xbf16>
    %64 = vector.shape_cast %63 : vector<8x16x128xbf16> to vector<128x128xbf16>
    %c1 = arith.constant 1 : index
    %c0_29 = arith.constant 0 : index
    %c0_30 = arith.constant 0 : index
    %65 = vector.load %arg4[%c1, %c0_29, %c0_30] : memref<9x128x128xbf16, #tpu.memory_space<vmem>>, vector<1x128x128xbf16>
    %66 = vector.shape_cast %65 : vector<1x128x128xbf16> to vector<128x128xbf16>
    %cst_31 = arith.constant dense<0.000000e+00> : vector<128x128xf32>
    %67 = tpu.matmul %64, %66, %cst_31 {dimension_numbers = #tpu.dot_dimension_numbers<[1], [0], [0], [1], [0, 0, 1, 1], [], []>} : vector<128x128xbf16>, vector<128x128xbf16>, vector<128x128xf32> -> vector<128x128xf32>
    %68 = arith.addf %62, %67 : vector<128x128xf32>
    %69 = vector.extract_strided_slice %55 {offsets = [0, 2, 0], sizes = [8, 16, 128], strides = [1, 1, 1]} : vector<10x18x128xbf16> to vector<8x16x128xbf16>
    %70 = vector.shape_cast %69 : vector<8x16x128xbf16> to vector<128x128xbf16>
    %c2 = arith.constant 2 : index
    %c0_32 = arith.constant 0 : index
    %c0_33 = arith.constant 0 : index
    %71 = vector.load %arg4[%c2, %c0_32, %c0_33] : memref<9x128x128xbf16, #tpu.memory_space<vmem>>, vector<1x128x128xbf16>
    %72 = vector.shape_cast %71 : vector<1x128x128xbf16> to vector<128x128xbf16>
    %cst_34 = arith.constant dense<0.000000e+00> : vector<128x128xf32>
    %73 = tpu.matmul %70, %72, %cst_34 {dimension_numbers = #tpu.dot_dimension_numbers<[1], [0], [0], [1], [0, 0, 1, 1], [], []>} : vector<128x128xbf16>, vector<128x128xbf16>, vector<128x128xf32> -> vector<128x128xf32>
    %74 = arith.addf %68, %73 : vector<128x128xf32>
    %75 = vector.extract_strided_slice %55 {offsets = [1, 0, 0], sizes = [8, 16, 128], strides = [1, 1, 1]} : vector<10x18x128xbf16> to vector<8x16x128xbf16>
    %76 = vector.shape_cast %75 : vector<8x16x128xbf16> to vector<128x128xbf16>
    %c3 = arith.constant 3 : index
    %c0_35 = arith.constant 0 : index
    %c0_36 = arith.constant 0 : index
    %77 = vector.load %arg4[%c3, %c0_35, %c0_36] : memref<9x128x128xbf16, #tpu.memory_space<vmem>>, vector<1x128x128xbf16>
    %78 = vector.shape_cast %77 : vector<1x128x128xbf16> to vector<128x128xbf16>
    %cst_37 = arith.constant dense<0.000000e+00> : vector<128x128xf32>
    %79 = tpu.matmul %76, %78, %cst_37 {dimension_numbers = #tpu.dot_dimension_numbers<[1], [0], [0], [1], [0, 0, 1, 1], [], []>} : vector<128x128xbf16>, vector<128x128xbf16>, vector<128x128xf32> -> vector<128x128xf32>
    %80 = arith.addf %74, %79 : vector<128x128xf32>
    %81 = vector.extract_strided_slice %55 {offsets = [1, 1, 0], sizes = [8, 16, 128], strides = [1, 1, 1]} : vector<10x18x128xbf16> to vector<8x16x128xbf16>
    %82 = vector.shape_cast %81 : vector<8x16x128xbf16> to vector<128x128xbf16>
    %c4 = arith.constant 4 : index
    %c0_38 = arith.constant 0 : index
    %c0_39 = arith.constant 0 : index
    %83 = vector.load %arg4[%c4, %c0_38, %c0_39] : memref<9x128x128xbf16, #tpu.memory_space<vmem>>, vector<1x128x128xbf16>
    %84 = vector.shape_cast %83 : vector<1x128x128xbf16> to vector<128x128xbf16>
    %cst_40 = arith.constant dense<0.000000e+00> : vector<128x128xf32>
    %85 = tpu.matmul %82, %84, %cst_40 {dimension_numbers = #tpu.dot_dimension_numbers<[1], [0], [0], [1], [0, 0, 1, 1], [], []>} : vector<128x128xbf16>, vector<128x128xbf16>, vector<128x128xf32> -> vector<128x128xf32>
    %86 = arith.addf %80, %85 : vector<128x128xf32>
    %87 = vector.extract_strided_slice %55 {offsets = [1, 2, 0], sizes = [8, 16, 128], strides = [1, 1, 1]} : vector<10x18x128xbf16> to vector<8x16x128xbf16>
    %88 = vector.shape_cast %87 : vector<8x16x128xbf16> to vector<128x128xbf16>
    %c5 = arith.constant 5 : index
    %c0_41 = arith.constant 0 : index
    %c0_42 = arith.constant 0 : index
    %89 = vector.load %arg4[%c5, %c0_41, %c0_42] : memref<9x128x128xbf16, #tpu.memory_space<vmem>>, vector<1x128x128xbf16>
    %90 = vector.shape_cast %89 : vector<1x128x128xbf16> to vector<128x128xbf16>
    %cst_43 = arith.constant dense<0.000000e+00> : vector<128x128xf32>
    %91 = tpu.matmul %88, %90, %cst_43 {dimension_numbers = #tpu.dot_dimension_numbers<[1], [0], [0], [1], [0, 0, 1, 1], [], []>} : vector<128x128xbf16>, vector<128x128xbf16>, vector<128x128xf32> -> vector<128x128xf32>
    %92 = arith.addf %86, %91 : vector<128x128xf32>
    %93 = vector.extract_strided_slice %55 {offsets = [2, 0, 0], sizes = [8, 16, 128], strides = [1, 1, 1]} : vector<10x18x128xbf16> to vector<8x16x128xbf16>
    %94 = vector.shape_cast %93 : vector<8x16x128xbf16> to vector<128x128xbf16>
    %c6 = arith.constant 6 : index
    %c0_44 = arith.constant 0 : index
    %c0_45 = arith.constant 0 : index
    %95 = vector.load %arg4[%c6, %c0_44, %c0_45] : memref<9x128x128xbf16, #tpu.memory_space<vmem>>, vector<1x128x128xbf16>
    %96 = vector.shape_cast %95 : vector<1x128x128xbf16> to vector<128x128xbf16>
    %cst_46 = arith.constant dense<0.000000e+00> : vector<128x128xf32>
    %97 = tpu.matmul %94, %96, %cst_46 {dimension_numbers = #tpu.dot_dimension_numbers<[1], [0], [0], [1], [0, 0, 1, 1], [], []>} : vector<128x128xbf16>, vector<128x128xbf16>, vector<128x128xf32> -> vector<128x128xf32>
    %98 = arith.addf %92, %97 : vector<128x128xf32>
    %99 = vector.extract_strided_slice %55 {offsets = [2, 1, 0], sizes = [8, 16, 128], strides = [1, 1, 1]} : vector<10x18x128xbf16> to vector<8x16x128xbf16>
    %100 = vector.shape_cast %99 : vector<8x16x128xbf16> to vector<128x128xbf16>
    %c7 = arith.constant 7 : index
    %c0_47 = arith.constant 0 : index
    %c0_48 = arith.constant 0 : index
    %101 = vector.load %arg4[%c7, %c0_47, %c0_48] : memref<9x128x128xbf16, #tpu.memory_space<vmem>>, vector<1x128x128xbf16>
    %102 = vector.shape_cast %101 : vector<1x128x128xbf16> to vector<128x128xbf16>
    %cst_49 = arith.constant dense<0.000000e+00> : vector<128x128xf32>
    %103 = tpu.matmul %100, %102, %cst_49 {dimension_numbers = #tpu.dot_dimension_numbers<[1], [0], [0], [1], [0, 0, 1, 1], [], []>} : vector<128x128xbf16>, vector<128x128xbf16>, vector<128x128xf32> -> vector<128x128xf32>
    %104 = arith.addf %98, %103 : vector<128x128xf32>
    %105 = vector.extract_strided_slice %55 {offsets = [2, 2, 0], sizes = [8, 16, 128], strides = [1, 1, 1]} : vector<10x18x128xbf16> to vector<8x16x128xbf16>
    %106 = vector.shape_cast %105 : vector<8x16x128xbf16> to vector<128x128xbf16>
    %c8 = arith.constant 8 : index
    %c0_50 = arith.constant 0 : index
    %c0_51 = arith.constant 0 : index
    %107 = vector.load %arg4[%c8, %c0_50, %c0_51] : memref<9x128x128xbf16, #tpu.memory_space<vmem>>, vector<1x128x128xbf16>
    %108 = vector.shape_cast %107 : vector<1x128x128xbf16> to vector<128x128xbf16>
    %cst_52 = arith.constant dense<0.000000e+00> : vector<128x128xf32>
    %109 = tpu.matmul %106, %108, %cst_52 {dimension_numbers = #tpu.dot_dimension_numbers<[1], [0], [0], [1], [0, 0, 1, 1], [], []>} : vector<128x128xbf16>, vector<128x128xbf16>, vector<128x128xf32> -> vector<128x128xf32>
    %110 = arith.addf %104, %109 : vector<128x128xf32>
    %111 = vector.shape_cast %110 : vector<128x128xf32> to vector<8x16x128xf32>
    %c0_53 = arith.constant 0 : index
    %c0_54 = arith.constant 0 : index
    %c0_55 = arith.constant 0 : index
    %c0_56 = arith.constant 0 : index
    %112 = vector.load %arg6[%c0_53, %c0_54, %c0_55, %c0_56] : memref<1x8x16x128xf32, #tpu.memory_space<vmem>>, vector<1x8x16x128xf32>
    %113 = vector.shape_cast %112 : vector<1x8x16x128xf32> to vector<8x16x128xf32>
    %114 = vector.shape_cast %111 : vector<8x16x128xf32> to vector<1x8x16x128xf32>
    tpu.vector_store %arg6[%c0_53, %c0_54, %c0_55, %c0_56], %114 {strides = array<i32>} : memref<1x8x16x128xf32, #tpu.memory_space<vmem>>, vector<1x8x16x128xf32>,
    %cst_57 = arith.constant dense<0.000000e+00> : vector<128xf32>
    %115 = vector.multi_reduction <add>, %110, %cst_57 [0] : vector<128x128xf32> to vector<128xf32>
    %116 = vector.shape_cast %115 : vector<128xf32> to vector<1x128xf32>
    %117 = arith.mulf %110, %110 : vector<128x128xf32>
    %cst_58 = arith.constant dense<0.000000e+00> : vector<128xf32>
    %118 = vector.multi_reduction <add>, %117, %cst_58 [0] : vector<128x128xf32> to vector<128xf32>
    %119 = vector.shape_cast %118 : vector<128xf32> to vector<1x128xf32>
    %cst_59 = arith.constant 0.000000e+00 : f32
    %120 = vector.broadcast %cst_59 : f32 to vector<6x128xf32>
    %121 = tpu.concatenate %116, %119, %120 in 0 : vector<1x128xf32>, vector<1x128xf32>, vector<6x128xf32> -> vector<8x128xf32>
    %c0_60 = arith.constant 0 : index
    %c0_61 = arith.constant 0 : index
    %c0_62 = arith.constant 0 : index
    %c0_63 = arith.constant 0 : index
    %122 = vector.load %arg7[%c0_60, %c0_61, %c0_62, %c0_63] : memref<1x1x8x128xf32, #tpu.memory_space<vmem>>, vector<1x1x8x128xf32>
    %123 = vector.shape_cast %122 : vector<1x1x8x128xf32> to vector<8x128xf32>
    %124 = vector.shape_cast %121 : vector<8x128xf32> to vector<1x1x8x128xf32>
    tpu.vector_store %arg7[%c0_60, %c0_61, %c0_62, %c0_63], %124 {strides = array<i32>} : memref<1x1x8x128xf32, #tpu.memory_space<vmem>>, vector<1x1x8x128xf32>,
    return
  }
  func.func @transform_0(%arg0: i32, %arg1: i32) -> (i32, i32) {
    %c0_i32 = arith.constant 0 : i32
    %c0_i32_0 = arith.constant 0 : i32
    %c0_i32_1 = arith.constant 0 : i32
    return %c0_i32, %c0_i32_0 : i32, i32
  }
  func.func @transform_1(%arg0: i32, %arg1: i32) -> (i32, i32) {
    %c0_i32 = arith.constant 0 : i32
    %c0_i32_0 = arith.constant 0 : i32
    %c0_i32_1 = arith.constant 0 : i32
    return %c0_i32, %c0_i32_0 : i32, i32
  }
  func.func @transform_2(%arg0: i32, %arg1: i32) -> (i32, i32, i32) {
    %c0_i32 = arith.constant 0 : i32
    %c0_i32_0 = arith.constant 0 : i32
    %c0_i32_1 = arith.constant 0 : i32
    %c0_i32_2 = arith.constant 0 : i32
    return %c0_i32, %c0_i32_0, %c0_i32_1 : i32, i32, i32
  }
  func.func @transform_4(%arg0: i32, %arg1: i32) -> (i32, i32, i32, i32) {
    %c0_i32 = arith.constant 0 : i32
    %c0_i32_0 = arith.constant 0 : i32
    %c0_i32_1 = arith.constant 0 : i32
    return %arg0, %arg1, %c0_i32, %c0_i32_0 : i32, i32, i32, i32
  }
  func.func @transform_5(%arg0: i32, %arg1: i32) -> (i32, i32, i32, i32) {
    %c0_i32 = arith.constant 0 : i32
    %c0_i32_0 = arith.constant 0 : i32
    %c0_i32_1 = arith.constant 0 : i32
    return %arg0, %arg1, %c0_i32, %c0_i32_0 : i32, i32, i32, i32
  }
}

</mosaic_0001>

<bundles_post_ra>
// kernel: _lambda_.5
= control target key start
LH: loop header
LB: loop body
LE: loop exit
PB: predicated region body
PF: predicated region fallthrough
CT: control target
= control target key end

     0   :  { %s525_s12 = smov 0   ;;  %s527_s13 = smov 0   ;;  %s654_s0 = inlined_call_operand.vmem [shape: f32[2,16,16,128], index: 0, kind: input, shape index: {}]   ;;  %s655_s1 = inlined_call_operand.vmem [shape: f32[1,128], index: 1, kind: input, shape index: {}]   ;;  %s656_s2 = inlined_call_operand.vmem [shape: f32[1,128], index: 2, kind: input, shape index: {}]   ;;  %s657_s3 = inlined_call_operand.vmem [shape: f32[2,16,16,128], index: 3, kind: output, shape index: {}]  }
   0x1   :  { %s529_s14 = smov 0   ;;  %s531_s15 = smov 0  }
   0x2   :  { %s533_s16 = smov 0  }
   0x3 LB: > { %s22_s17 = sadd.s32 1, %s495_s14  ;;  %s25_s18 = sadd.s32 1, %s499_s15  ;;  %s503_s16 = sphi %s533_s16, %s13_s16   ;;  %s499_s15 = sphi %s531_s15, %s661_s15   ;;  %s495_s14 = sphi %s529_s14, %s660_s14   ;;  %s491_s13 = sphi %s527_s13, %s659_s13   ;;  %s487_s12 = sphi %s525_s12, %s658_s12  }
   0x4   : > { %p23_p0 = scmp.ge.s32.totalorder %s22_s17, 2  ;;  %p412_p1 = scmp.ge.s32.totalorder %s503_s16, 1 }
   0x5   : > { %p159_p2 = scmp.lt.s32.totalorder %s503_s16, 5 }
   0x6   : > { %s663_s17 = smov (%p23_p0, %s22_s17), 0  ;;  %s665_s18 = smov (!%p23_p0, %s25_s18), %s499_s15 }
   0x7   : > { %p160_p3 = pnand %p412_p1, %p159_p2  ;;  %p27_p4 = scmp.ge.s32.totalorder %s665_s18, 2 }
   0x8   : > { %s413_s19 = sshll.u32 (!%p160_p3), %s487_s12, 3  ;;  %p194_p5 = scmp.lt.s32.totalorder (!%p160_p3), %s491_s13, 1  ;;  %v558_v0 = vld [vmem:[%s655_s1] ss:$0 sm:$0xff] (!%p160_p3) }
   0x9   : > { %s667_s18 = smov (%p27_p4, %s665_s18), 0  ;;  %163 = sbr.rel (%p160_p3) target bundleno = 39 (0x27), region = 32 }
   0xa   : > { %p196_p6 = scmp.lt.s32.totalorder (!%p160_p3), %s413_s19, 15  ;;  %v568_v1 = vld [vmem:[%s656_s2] ss:$0 sm:$0xff] (!%p160_p3) }
  0x10   : > { %s669_s13 = smov (!%p194_p5, %s491_s13), 1  ;;  %s671_s19 = smov (!%p196_p6, %s413_s19), 15 }
  0x11   : > { %s415_s20 = sshll.u32 %s669_s13, 5  ;;  %s414_s21 = sshll.u32 %s671_s19, 1 }
  0x12   : > { %s200_s22 = sadd.s32 %s415_s20, %s414_s21 }
  0x13   : > { %s416_s23 = sshll.u32 %s200_s22, 3 }
  0x14   : > { %s563_s28 = scalar_lea.vmem %s654_s0, %s416_s23  ;;  %s591_s6 = scalar_lea.vmem %s657_s3, %s416_s23 }
  0x15   : > { %v215_v2 = vld [vmem:[%s563_s28] sm:$0xff]  ;;  %v216_v3 = vld [vmem:[%s563_s28 + $0x8] sm:$0xff]  ;;  %v217_v4 = vld [vmem:[%s563_s28 + $0x10] sm:$0xff] }
  0x16   : > { %v238_v5 = vmul.f32 %v558_v0, %v215_v2  ;;  %v239_v6 = vmul.f32 %v558_v0, %v216_v3  ;;  %v240_v7 = vmul.f32 %v558_v0, %v217_v4  ;;  %v218_v8 = vld [vmem:[%s563_s28 + $0x18] sm:$0xff]  ;;  %v219_v9 = vld [vmem:[%s563_s28 + $0x20] sm:$0xff]  ;;  %v220_v10 = vld [vmem:[%s563_s28 + $0x28] sm:$0xff] }
  0x17   : > { %v241_v11 = vmul.f32 %v558_v0, %v218_v8  ;;  %v242_v12 = vmul.f32 %v558_v0, %v219_v9  ;;  %v243_v13 = vmul.f32 %v558_v0, %v220_v10  ;;  %v221_v14 = vld [vmem:[%s563_s28 + $0x30] sm:$0xff]  ;;  %v222_v15 = vld [vmem:[%s563_s28 + $0x38] sm:$0xff]  ;;  %v223_v24 = vld [vmem:[%s563_s28 + $0x40] sm:$0xff] }
  0x18   : > { %v261_v16 = vadd.f32 %v568_v1, %v238_v5  ;;  %v262_v17 = vadd.f32 %v568_v1, %v239_v6  ;;  %v263_v18 = vadd.f32 %v568_v1, %v240_v7  ;;  %v244_v19 = vmul.f32 %v558_v0, %v221_v14  ;;  %v224_v25 = vld [vmem:[%s563_s28 + $0x48] sm:$0xff]  ;;  %v225_v26 = vld [vmem:[%s563_s28 + $0x50] sm:$0xff]  ;;  %v226_v31 = vld [vmem:[%s563_s28 + $0x58] sm:$0xff] }
  0x19   : > { %v264_v20 = vadd.f32 %v568_v1, %v241_v11  ;;  %v265_v21 = vadd.f32 %v568_v1, %v242_v12  ;;  %v266_v22 = vadd.f32 %v568_v1, %v243_v13  ;;  %v245_v23 = vmul.f32 %v558_v0, %v222_v15  ;;  %v227_v32 = vld [vmem:[%s563_s28 + $0x60] sm:$0xff]  ;;  %v228_v33 = vld [vmem:[%s563_s28 + $0x68] sm:$0xff]  ;;  %v229_v38 = vld [vmem:[%s563_s28 + $0x70] sm:$0xff] }
  0x1a   : > { %v277_v27 = vmax.f32 %v261_v16, 0.0  ;;  %v278_v28 = vmax.f32 %v262_v17, 0.0  ;;  %v279_v29 = vmax.f32 %v263_v18, 0.0  ;;  %v267_v30 = vadd.f32 %v568_v1, %v244_v19  ;;  %v230_v43 = vld [vmem:[%s563_s28 + $0x78] sm:$0xff] }
  0x1b   : > { %v280_v34 = vmax.f32 %v264_v20, 0.0  ;;  %v281_v35 = vmax.f32 %v265_v21, 0.0  ;;  %v282_v36 = vmax.f32 %v266_v22, 0.0  ;;  %v268_v37 = vadd.f32 %v568_v1, %v245_v23 }
  0x1c   : > { %293 = vst [vmem:[%s591_s6] sm:$0xff] %v277_v27  ;;  %294 = vst [vmem:[%s591_s6 + $0x8] sm:$0xff] %v278_v28  ;;  %v283_v39 = vmax.f32 %v267_v30, 0.0  ;;  %v246_v40 = vmul.f32 %v558_v0, %v223_v24  ;;  %v247_v41 = vmul.f32 %v558_v0, %v224_v25  ;;  %v248_v42 = vmul.f32 %v558_v0, %v225_v26 }
  0x1d   : > { %295 = vst [vmem:[%s591_s6 + $0x10] sm:$0xff] %v279_v29  ;;  %296 = vst [vmem:[%s591_s6 + $0x18] sm:$0xff] %v280_v34  ;;  %v284_v44 = vmax.f32 %v268_v37, 0.0  ;;  %v249_v45 = vmul.f32 %v558_v0, %v226_v31  ;;  %v250_v46 = vmul.f32 %v558_v0, %v227_v32  ;;  %v251_v47 = vmul.f32 %v558_v0, %v228_v33 }
  0x1e   : > { %297 = vst [vmem:[%s591_s6 + $0x20] sm:$0xff] %v281_v35  ;;  %298 = vst [vmem:[%s591_s6 + $0x28] sm:$0xff] %v282_v36  ;;  %v269_v48 = vadd.f32 %v568_v1, %v246_v40  ;;  %v270_v49 = vadd.f32 %v568_v1, %v247_v41  ;;  %v271_v50 = vadd.f32 %v568_v1, %v248_v42 }
  0x1f   : > { %299 = vst [vmem:[%s591_s6 + $0x30] sm:$0xff] %v283_v39  ;;  %v252_v51 = vmul.f32 %v558_v0, %v229_v38  ;;  %300 = vst [vmem:[%s591_s6 + $0x38] sm:$0xff] %v284_v44  ;;  %v272_v52 = vadd.f32 %v568_v1, %v249_v45  ;;  %v273_v53 = vadd.f32 %v568_v1, %v250_v46 }
  0x20   : > { %v274_v54 = vadd.f32 %v568_v1, %v251_v47  ;;  %v253_v55 = vmul.f32 %v558_v0, %v230_v43  ;;  %v285_v56 = vmax.f32 %v269_v48, 0.0  ;;  %v286_v57 = vmax.f32 %v270_v49, 0.0 }
  0x21   : > { %v287_v58 = vmax.f32 %v271_v50, 0.0  ;;  %v275_v59 = vadd.f32 %v568_v1, %v252_v51  ;;  %v288_v60 = vmax.f32 %v272_v52, 0.0  ;;  %v289_v61 = vmax.f32 %v273_v53, 0.0 }
  0x22   : > { %v290_v62 = vmax.f32 %v274_v54, 0.0  ;;  %v276_v63 = vadd.f32 %v568_v1, %v253_v55  ;;  %301 = vst [vmem:[%s591_s6 + $0x40] sm:$0xff] %v285_v56  ;;  %302 = vst [vmem:[%s591_s6 + $0x48] sm:$0xff] %v286_v57 }
  0x23   : > { %303 = vst [vmem:[%s591_s6 + $0x50] sm:$0xff] %v287_v58  ;;  %v291_v2 = vmax.f32 %v275_v59, 0.0  ;;  %304 = vst [vmem:[%s591_s6 + $0x58] sm:$0xff] %v288_v60 }
  0x24   : > { %305 = vst [vmem:[%s591_s6 + $0x60] sm:$0xff] %v289_v61  ;;  %306 = vst [vmem:[%s591_s6 + $0x68] sm:$0xff] %v290_v62  ;;  %v292_v0 = vmax.f32 %v276_v63, 0.0 }
  0x25   : > { %307 = vst [vmem:[%s591_s6 + $0x70] sm:$0xff] %v291_v2 }
  0x26   : > { %308 = vst [vmem:[%s591_s6 + $0x78] sm:$0xff] %v292_v0 }
  0x27 PF: > { %s13_s16 = sadd.s32 1, %s503_s16   ;;  %s658_s12 = smov %s495_s14 }
  0x28   : > { %p10_p7 = scmp.ge.s32.totalorder %s13_s16, 6   ;;  %s659_s13 = smov %s499_s15 }
  0x29   : > { %s660_s14 = smov %s663_s17  ;;  %s661_s15 = smov %s667_s18 }
  0x2a   :  { %12 = sbr.rel (!%p10_p7) target bundleno = 3 (0x3), region = 62 }

// kernel: _lambda_.3
= control target key start
LH: loop header
LB: loop body
LE: loop exit
PB: predicated region body
PF: predicated region fallthrough
CT: control target
= control target key end

     0   :  { %s3647_s18 = smov 0   ;;  %s3649_s19 = smov 0   ;;  %s4361_s0 = inlined_call_operand.vmem [shape: f32[1,128], index: 0, kind: input, shape index: {}, may-alias: {0,1}]   ;;  %s4362_s1 = inlined_call_operand.vmem [shape: f32[1,128], index: 1, kind: input, shape index: {}, may-alias: {0,1}]   ;;  %s4363_s2 = inlined_call_operand.vmem [shape: bf16[9,128,128], index: 2, kind: input, shape index: {}]   ;;  %s4364_s3 = inlined_call_operand.vmem [shape: f32[2,18,18,128], index: 3, kind: input, shape index: {}]   ;;  %s4365_s4 = inlined_call_operand.vmem [shape: f32[2,16,16,128], index: 4, kind: output, shape index: {0}]   ;;  %s4366_s5 = inlined_call_operand.vmem [shape: f32[2,2,8,128], index: 5, kind: output, shape index: {1}]  }
   0x1   :  { %s3651_s0 = smov 0   ;;  %s3653_s20 = smov 0  }
   0x2   :  { %s3655_s1 = smov 0  }
   0x3 LB: > { %s25_s21 = sadd.s32 1, %s3607_s0  ;;  %s28_s22 = sadd.s32 1, %s3611_s20  ;;  %s3615_s1 = sphi %s3655_s1, %s16_s1   ;;  %s3611_s20 = sphi %s3653_s20, %s4370_s20   ;;  %s3607_s0 = sphi %s3651_s0, %s4369_s0   ;;  %s3603_s19 = sphi %s3649_s19, %s4368_s19   ;;  %s3599_s18 = sphi %s3647_s18, %s4367_s18  }
   0x4   : > { %p26_p0 = scmp.ge.s32.totalorder %s25_s21, 2  ;;  %p2600_p1 = scmp.ge.s32.totalorder %s3615_s1, 1 }
   0x5   : > { %p172_p2 = scmp.lt.s32.totalorder %s3615_s1, 5 }
   0x6   : > { %s4372_s21 = smov (%p26_p0, %s25_s21), 0  ;;  %s4374_s22 = smov (!%p26_p0, %s28_s22), %s3611_s20 }
   0x7   : > { %p173_p3 = pnand %p2600_p1, %p172_p2  ;;  %p30_p4 = scmp.ge.s32.totalorder %s4374_s22, 2 }
   0x8   : > { %s2601_s23 = sshll.u32 (!%p173_p3), %s3599_s18, 3  ;;  %p207_p5 = scmp.lt.s32.totalorder (!%p173_p3), %s3603_s19, 1 }
   0x9   : > { %s4376_s22 = smov (%p30_p4, %s4374_s22), 0  ;;  %176 = sbr.rel (%p173_p3) target bundleno = 501 (0x1f5), region = 32 }
   0xa   : > { %p209_p6 = scmp.lt.s32.totalorder (!%p173_p3), %s2601_s23, 15  ;;  %p219_p7 = scmp.lt.s32.totalorder (!%p173_p3), %s3599_s18, 1 }
   0xb   : > { %s227_s29 = ssub.s32 (!%p173_p3), 0, %s3599_s18  ;;  %p226_p8 = scmp.lt.s32.totalorder (!%p173_p3), %s3599_s18, 0 }
   0xc   : > { %s2607_s6 = smin.u32 (!%p173_p3), %s3599_s18, %s227_s29  ;;  %p2610_p10 = scmp.ne.s32.totalorder (!%p173_p3), %s3599_s18, 0 }
   0xd   : > { %s229_s10 = sand.u32 (!%p173_p3), 1, %s2607_s6  }
   0xe   : > { %s230_s13 = ssub.s32 (!%p173_p3), 0, %s229_s10 }
  0x10   : > { %s208_s24 = scalar_select %p207_p5, %s3603_s19, 1 }
  0x11   : > { %s4378_s23 = smov (!%p209_p6, %s2601_s23), 15  ;;  %s4380_s13 = smov (!%p226_p8, %s230_s13), %s229_s10 }
  0x12   : > { %s2603_s25 = sshll.u32 %s208_s24, 5  ;;  %s2602_s26 = sshll.u32 %s4378_s23, 1 }
  0x13   : > { %s2605_s27 = sshll.u32 %s208_s24, 1  ;;  %s213_s28 = sadd.s32 %s2603_s25, %s2602_s26 }
  0x14   : > { %s2604_s30 = sshll.u32 %s213_s28, 3  ;;  %p2609_p9 = scmp.lt.s32.totalorder %s4380_s13, 0 }
  0x15   : > { %s3690_s9 = scalar_lea.vmem %s4365_s4, %s2604_s30  ;;  %s236_s23 = sadd.s32 2, %s4380_s13 }
  0x16   : > { %s220_s11 = scalar_select %p219_p7, %s3599_s18, 1 }
  0x17   : > { %s4382_s23 = smov (!%p2609_p9, %s236_s23), %s4380_s13  ;;  %241 = sbr.rel (%p2610_p10) target bundleno = 45 (0x2d), region = 36 }
  0x18   : > { %s222_s12 = sadd.s32 %s2605_s27, %s220_s11  ;;  %s242_s24 = smul.u32 (!%p2610_p10), 432, %s3603_s19 }
  0x19   : > { %s2606_s14 = sshll.u32 %s222_s12, 3  ;;  %s244_s25 = smul.u32 (!%p2610_p10), 240, %s4382_s23 }
  0x1a   : > { %s3697_s17 = scalar_lea.vmem %s4366_s5, %s2606_s14  ;;  %s3707_s28 = scalar_lea.vmem (!%p2610_p10), %s4364_s3, %s242_s24 }
  0x1b   : > { %v302_v0 = vld [vmem:[%s3707_s28] sm:$0xff] (!%p2610_p10)  ;;  %v304_v1 = vld [vmem:[%s3707_s28 + $0x8] sm:$0xff] (!%p2610_p10)  ;;  %v306_v2 = vld [vmem:[%s3707_s28 + $0x18] sm:$0xff] (!%p2610_p10)  ;;  %s3712_s29 = scalar_lea.vmem (!%p2610_p10), [#allocation2], %s244_s25  ;;  %s246_s30 = scalar_lea.sflag (!%p2610_p10), [#allocation3], %s4382_s23 }
  0x1c   : > { %303 = vst [vmem:[%s3712_s29] sm:$0xff] (!%p2610_p10), %v302_v0  ;;  %305 = vst [vmem:[%s3712_s29 + $0x8] sm:$0xff] (!%p2610_p10), %v304_v1  ;;  %v308_v3 = vld [vmem:[%s3707_s28 + $0x20] sm:$0xff] (!%p2610_p10)  ;;  %v310_v4 = vld [vmem:[%s3707_s28 + $0x30] sm:$0xff] (!%p2610_p10) }
  0x1d   : > { %307 = vst [vmem:[%s3712_s29 + $0x18] sm:$0xff] (!%p2610_p10), %v306_v2  ;;  %v312_v5 = vld [vmem:[%s3707_s28 + $0x38] sm:$0xff] (!%p2610_p10)  ;;  %309 = vst [vmem:[%s3712_s29 + $0x20] sm:$0xff] (!%p2610_p10), %v308_v3  ;;  %v314_v6 = vld [vmem:[%s3707_s28 + $0x48] sm:$0xff] (!%p2610_p10) }
  0x1e   : > { %311 = vst [vmem:[%s3712_s29 + $0x30] sm:$0xff] %v310_v4  ;;  %313 = vst [vmem:[%s3712_s29 + $0x38] sm:$0xff] %v312_v5  ;;  %v316_v7 = vld [vmem:[%s3707_s28 + $0x50] sm:$0xff]  ;;  %v318_v8 = vld [vmem:[%s3707_s28 + $0x60] sm:$0xff] }
  0x1f   : > { %315 = vst [vmem:[%s3712_s29 + $0x48] sm:$0xff] %v314_v6  ;;  %317 = vst [vmem:[%s3712_s29 + $0x50] sm:$0xff] %v316_v7  ;;  %v320_v9 = vld [vmem:[%s3707_s28 + $0x68] sm:$0xff]  ;;  %v322_v10 = vld [vmem:[%s3707_s28 + $0x78] sm:$0xff] }
  0x20   : > { %319 = vst [vmem:[%s3712_s29 + $0x60] sm:$0xff] %v318_v8  ;;  %v324_v11 = vld [vmem:[%s3707_s28 + $0x80] sm:$0xff]  ;;  %321 = vst [vmem:[%s3712_s29 + $0x68] sm:$0xff] %v320_v9  ;;  %v326_v12 = vld [vmem:[%s3707_s28 + $0x90] sm:$0xff] }
  0x21   : > { %323 = vst [vmem:[%s3712_s29 + $0x78] sm:$0xff] %v322_v10  ;;  %325 = vst [vmem:[%s3712_s29 + $0x80] sm:$0xff] %v324_v11  ;;  %v328_v13 = vld [vmem:[%s3707_s28 + $0x98] sm:$0xff]  ;;  %v330_v14 = vld [vmem:[%s3707_s28 + $0xa8] sm:$0xff] }
  0x22   : > { %327 = vst [vmem:[%s3712_s29 + $0x90] sm:$0xff] %v326_v12  ;;  %329 = vst [vmem:[%s3712_s29 + $0x98] sm:$0xff] %v328_v13  ;;  %v332_v15 = vld [vmem:[%s3707_s28 + $0xb0] sm:$0xff]  ;;  %v334_v16 = vld [vmem:[%s3707_s28 + $0xc0] sm:$0xff] }
  0x23   : > { %331 = vst [vmem:[%s3712_s29 + $0xa8] sm:$0xff] %v330_v14  ;;  %v336_v17 = vld [vmem:[%s3707_s28 + $0xc8] sm:$0xff]  ;;  %333 = vst [vmem:[%s3712_s29 + $0xb0] sm:$0xff] %v332_v15  ;;  %v338_v18 = vld [vmem:[%s3707_s28 + $0xd8] sm:$0xff] }
  0x24   : > { %335 = vst [vmem:[%s3712_s29 + $0xc0] sm:$0xff] %v334_v16  ;;  %337 = vst [vmem:[%s3712_s29 + $0xc8] sm:$0xff] %v336_v17  ;;  %v340_v19 = vld [vmem:[%s3707_s28 + $0xe0] sm:$0xff]  ;;  %v2611_v20 = vld [vmem:[%s3707_s28 + $0x10] sm:$0x3] }
  0x25   : > { %339 = vst [vmem:[%s3712_s29 + $0xd8] sm:$0xff] %v338_v18  ;;  %341 = vst [vmem:[%s3712_s29 + $0xe0] sm:$0xff] %v340_v19  ;;  %v2613_v21 = vld [vmem:[%s3707_s28 + $0x28] sm:$0x3]  ;;  %v2615_v22 = vld [vmem:[%s3707_s28 + $0x40] sm:$0x3] }
  0x26   : > { %2612 = vst [vmem:[%s3712_s29 + $0x10] sm:$0x3] %v2611_v20  ;;  %v2617_v23 = vld [vmem:[%s3707_s28 + $0x58] sm:$0x3]  ;;  %2614 = vst [vmem:[%s3712_s29 + $0x28] sm:$0x3] %v2613_v21 }
  0x27   : > { %2616 = vst [vmem:[%s3712_s29 + $0x40] sm:$0x3] %v2615_v22  ;;  %2618 = vst [vmem:[%s3712_s29 + $0x58] sm:$0x3] %v2617_v23  ;;  %v2619_v24 = vld [vmem:[%s3707_s28 + $0x70] sm:$0x3] }
  0x28   : > { %v2621_v25 = vld [vmem:[%s3707_s28 + $0x88] sm:$0x3]  ;;  %v2623_v26 = vld [vmem:[%s3707_s28 + $0xa0] sm:$0x3]  ;;  %2620 = vst [vmem:[%s3712_s29 + $0x70] sm:$0x3] %v2619_v24 }
  0x29   : > { %2622 = vst [vmem:[%s3712_s29 + $0x88] sm:$0x3] %v2621_v25  ;;  %2624 = vst [vmem:[%s3712_s29 + $0xa0] sm:$0x3] %v2623_v26  ;;  %v2625_v27 = vld [vmem:[%s3707_s28 + $0xb8] sm:$0x3] }
  0x2a   : > { %v2627_v28 = vld [vmem:[%s3707_s28 + $0xd0] sm:$0x3]  ;;  %v2629_v29 = vld [vmem:[%s3707_s28 + $0xe8] sm:$0x3]  ;;  %2626 = vst [vmem:[%s3712_s29 + $0xb8] sm:$0x3] %v2625_v27 }
  0x2b   : > { %2628 = vst [vmem:[%s3712_s29 + $0xd0] sm:$0x3] %v2627_v28  ;;  %2630 = vst [vmem:[%s3712_s29 + $0xe8] sm:$0x3] %v2629_v29 }
  0x2c   : > { %374 = vsyncadd %s246_s30, 2880 }
  0x2d PF: > { %s375_s6 = smul.u32 240, %s4382_s23  ;;  %s377_s8 = scalar_lea.sflag [#allocation3], %s4382_s23 }
  0x2f   : > { %s3773_s7 = scalar_lea.vmem [#allocation2], %s375_s6 }
  0x30   : > { %3595 = dma.done.wait %s377_s8, 2880 }
  0x31   : > { %3596 = vsyncadd %s377_s8, 4294964416  ;;  %s382_s10 = sadd.s32 1, %s3599_s18 }
  0x32   : > { %p2631_p11 = scmp.ge.s32.totalorder %s382_s10, 2 }
  0x33   : > { %s387_s11 = ssub.s32 (!%p2631_p11), 1, %s4382_s23  ;;  %s2509_s12 = smul.u32 (!%p2631_p11), 192, %s3599_s18 }
  0x34   : > { %386 = sbr.rel (%p2631_p11) target bundleno = 75 (0x4b), region = 77 }
  0x35   : > { %s2510_s13 = smul.u32 (!%p2631_p11), 432, %s3603_s19  ;;  %s395_s19 = scalar_lea.sflag (!%p2631_p11), [#allocation3], %s387_s11 }
  0x36   : > { %s393_s14 = smul.u32 (!%p2631_p11), 240, %s387_s11 }
  0x37   : > { %s2511_s15 = sadd.s32 (!%p2631_p11), %s2510_s13, %s2509_s12 }
  0x38   : > { %s3785_s25 = scalar_lea.vmem (!%p2631_p11), %s4364_s3, %s2511_s15  ;;  %s3790_s18 = scalar_lea.vmem (!%p2631_p11), [#allocation2], %s393_s14 }
  0x39   : > { %v2633_v30 = vld [vmem:[%s3785_s25 + $0xc0] sm:$0xff] (!%p2631_p11)  ;;  %v2634_v31 = vld [vmem:[%s3785_s25 + $0xc8] sm:$0xff] (!%p2631_p11)  ;;  %v2635_v32 = vld [vmem:[%s3785_s25 + $0xd8] sm:$0xff] (!%p2631_p11) }
  0x3a   : > { %452 = vst [vmem:[%s3790_s18] sm:$0xff] (!%p2631_p11), %v2633_v30  ;;  %454 = vst [vmem:[%s3790_s18 + $0x8] sm:$0xff] (!%p2631_p11), %v2634_v31  ;;  %v2636_v33 = vld [vmem:[%s3785_s25 + $0xe0] sm:$0xff] (!%p2631_p11)  ;;  %v2637_v34 = vld [vmem:[%s3785_s25 + $0xf0] sm:$0xff] (!%p2631_p11) }
  0x3b   : > { %456 = vst [vmem:[%s3790_s18 + $0x18] sm:$0xff] %v2635_v32  ;;  %v2638_v35 = vld [vmem:[%s3785_s25 + $0xf8] sm:$0xff]  ;;  %458 = vst [vmem:[%s3790_s18 + $0x20] sm:$0xff] %v2636_v33  ;;  %v2639_v36 = vld [vmem:[%s3785_s25 + $0x108] sm:$0xff] }
  0x3c   : > { %460 = vst [vmem:[%s3790_s18 + $0x30] sm:$0xff] %v2637_v34  ;;  %462 = vst [vmem:[%s3790_s18 + $0x38] sm:$0xff] %v2638_v35  ;;  %v2640_v37 = vld [vmem:[%s3785_s25 + $0x110] sm:$0xff]  ;;  %v2641_v38 = vld [vmem:[%s3785_s25 + $0x120] sm:$0xff] }
  0x3d   : > { %464 = vst [vmem:[%s3790_s18 + $0x48] sm:$0xff] %v2639_v36  ;;  %466 = vst [vmem:[%s3790_s18 + $0x50] sm:$0xff] %v2640_v37  ;;  %v2642_v39 = vld [vmem:[%s3785_s25 + $0x128] sm:$0xff]  ;;  %v2643_v40 = vld [vmem:[%s3785_s25 + $0x138] sm:$0xff] }
  0x3e   : > { %468 = vst [vmem:[%s3790_s18 + $0x60] sm:$0xff] %v2641_v38  ;;  %v2644_v41 = vld [vmem:[%s3785_s25 + $0x140] sm:$0xff]  ;;  %470 = vst [vmem:[%s3790_s18 + $0x68] sm:$0xff] %v2642_v39  ;;  %v2645_v42 = vld [vmem:[%s3785_s25 + $0x150] sm:$0xff] }
  0x3f   : > { %472 = vst [vmem:[%s3790_s18 + $0x78] sm:$0xff] %v2643_v40  ;;  %474 = vst [vmem:[%s3790_s18 + $0x80] sm:$0xff] %v2644_v41  ;;  %v2646_v43 = vld [vmem:[%s3785_s25 + $0x158] sm:$0xff]  ;;  %v2647_v44 = vld [vmem:[%s3785_s25 + $0x168] sm:$0xff] }
  0x40   : > { %476 = vst [vmem:[%s3790_s18 + $0x90] sm:$0xff] %v2645_v42  ;;  %478 = vst [vmem:[%s3790_s18 + $0x98] sm:$0xff] %v2646_v43  ;;  %v2648_v45 = vld [vmem:[%s3785_s25 + $0x170] sm:$0xff]  ;;  %v2649_v46 = vld [vmem:[%s3785_s25 + $0x180] sm:$0xff] }
  0x41   : > { %480 = vst [vmem:[%s3790_s18 + $0xa8] sm:$0xff] %v2647_v44  ;;  %v2650_v47 = vld [vmem:[%s3785_s25 + $0x188] sm:$0xff]  ;;  %482 = vst [vmem:[%s3790_s18 + $0xb0] sm:$0xff] %v2648_v45  ;;  %v2651_v48 = vld [vmem:[%s3785_s25 + $0x198] sm:$0xff] }
  0x42   : > { %484 = vst [vmem:[%s3790_s18 + $0xc0] sm:$0xff] %v2649_v46  ;;  %486 = vst [vmem:[%s3790_s18 + $0xc8] sm:$0xff] %v2650_v47  ;;  %v2652_v49 = vld [vmem:[%s3785_s25 + $0x1a0] sm:$0xff]  ;;  %v2653_v50 = vld [vmem:[%s3785_s25 + $0xd0] sm:$0x3] }
  0x43   : > { %488 = vst [vmem:[%s3790_s18 + $0xd8] sm:$0xff] %v2651_v48  ;;  %490 = vst [vmem:[%s3790_s18 + $0xe0] sm:$0xff] %v2652_v49  ;;  %v2655_v51 = vld [vmem:[%s3785_s25 + $0xe8] sm:$0x3]  ;;  %v2657_v52 = vld [vmem:[%s3785_s25 + $0x100] sm:$0x3] }
  0x44   : > { %2654 = vst [vmem:[%s3790_s18 + $0x10] sm:$0x3] %v2653_v50  ;;  %v2659_v53 = vld [vmem:[%s3785_s25 + $0x118] sm:$0x3]  ;;  %2656 = vst [vmem:[%s3790_s18 + $0x28] sm:$0x3] %v2655_v51 }
  0x45   : > { %2658 = vst [vmem:[%s3790_s18 + $0x40] sm:$0x3] %v2657_v52  ;;  %2660 = vst [vmem:[%s3790_s18 + $0x58] sm:$0x3] %v2659_v53  ;;  %v2661_v54 = vld [vmem:[%s3785_s25 + $0x130] sm:$0x3] }
  0x46   : > { %v2663_v55 = vld [vmem:[%s3785_s25 + $0x148] sm:$0x3]  ;;  %v2665_v56 = vld [vmem:[%s3785_s25 + $0x160] sm:$0x3]  ;;  %2662 = vst [vmem:[%s3790_s18 + $0x70] sm:$0x3] %v2661_v54 }
  0x47   : > { %2664 = vst [vmem:[%s3790_s18 + $0x88] sm:$0x3] %v2663_v55  ;;  %2666 = vst [vmem:[%s3790_s18 + $0xa0] sm:$0x3] %v2665_v56  ;;  %v2667_v57 = vld [vmem:[%s3785_s25 + $0x178] sm:$0x3] }
  0x48   : > { %v2669_v58 = vld [vmem:[%s3785_s25 + $0x190] sm:$0x3]  ;;  %v2671_v59 = vld [vmem:[%s3785_s25 + $0x1a8] sm:$0x3]  ;;  %2668 = vst [vmem:[%s3790_s18 + $0xb8] sm:$0x3] %v2667_v57 }
  0x49   : > { %2670 = vst [vmem:[%s3790_s18 + $0xd0] sm:$0x3] %v2669_v58  ;;  %2672 = vst [vmem:[%s3790_s18 + $0xe8] sm:$0x3] %v2671_v59 }
  0x4a   : > { %523 = vsyncadd %s395_s19, 2880 }
  0x4b PF: > { %v3503_v60 = vld [vmem:[%s4363_s2 + $0x40] sm:$0xff]   ;;  %v3505_v62 = vld [vmem:[%s4363_s2 + $0x48] sm:$0xff]   ;;  %v3507_v0 = vld [vmem:[%s4363_s2 + $0x50] sm:$0xff]   ;;  %vm590_vm0 = vsmask.f32 7424  ;;  %vm1018_vm1 = vcmask 1046528  }
  0x4c   : > { %v3504_v61 = vld [vmem:[%s4363_s2 + $0x100] sm:$0xff]   ;;  %3031 = vmatprep.subr.bf16.mxu1 %v3503_v60  ;;  %v3506_v63 = vld [vmem:[%s4363_s2 + $0x108] sm:$0xff]   ;;  %v3508_v1 = vld [vmem:[%s4363_s2 + $0x110] sm:$0xff]   ;;  %vm2409_vm2 = vcmask 1040384   ;;  %vm2411_vm3 = vcmask 1041408  }
  0x4d   : > { %3159 = vmatprep.subr.bf16.mxu0 %v3504_v61  ;;  %3032 = vmatpush3.bf16.msra.mxu1 %v3503_v60  ;;  %v3509_v2 = vld [vmem:[%s4363_s2 + $0x58] sm:$0xff]   ;;  %v3511_v4 = vld [vmem:[%s4363_s2 + $0x60] sm:$0xff]   ;;  %v3513_v6 = vld [vmem:[%s4363_s2 + $0x68] sm:$0xff]  }
  0x4e   : > { %3160 = vmatpush3.bf16.msra.mxu0 %v3504_v61  ;;  %3033 = vmatprep.subr.bf16.mxu1 %v3505_v62  ;;  %v3510_v3 = vld [vmem:[%s4363_s2 + $0x118] sm:$0xff]   ;;  %v3512_v5 = vld [vmem:[%s4363_s2 + $0x120] sm:$0xff]   ;;  %v3514_v7 = vld [vmem:[%s4363_s2 + $0x128] sm:$0xff]  }
  0x4f   : > { %3161 = vmatprep.subr.bf16.mxu0 %v3506_v63  ;;  %v3515_v18 = vld [vmem:[%s4363_s2 + $0x70] sm:$0xff]   ;;  %v3517_v36 = vld [vmem:[%s4363_s2 + $0x78] sm:$0xff]   ;;  %v3519_v49 = vld [vmem:[%s4363_s2] sm:$0xff]  }
  0x50   : > { %v3516_v24 = vld [vmem:[%s4363_s2 + $0x130] sm:$0xff]   ;;  %v3518_v44 = vld [vmem:[%s4363_s2 + $0x138] sm:$0xff]   ;;  %v3520_v61 = vld [vmem:[%s4363_s2 + $0x140] sm:$0xff]  }
  0x51   : > { %3034 = vmatpush3.bf16.msra.mxu1 %v3505_v62  ;;  %v532_v28 = vld [vmem:[%s3773_s7 + $0x40] sm:$0x3]  ;;  %v534_v43 = vld [vmem:[%s3773_s7 + $0x50] sm:$0xff]  ;;  %v535_v46 = vld [vmem:[%s3773_s7 + $0x58] sm:$0x3] }
  0x52   : > { %3162 = vmatpush3.bf16.msra.mxu0 %v3506_v63  ;;  %3035 = vmatprep.subr.bf16.mxu1 %v3507_v0  ;;  %v524_v8 = vld [vmem:[%s3773_s7] sm:$0xff]  ;;  %v525_v9 = vld [vmem:[%s3773_s7 + $0x8] sm:$0xff]  ;;  %v526_v10 = vld [vmem:[%s3773_s7 + $0x10] sm:$0x3]  ;;  %v3918_v32 = vpack.c.bf16 %v532_v28, %v532_v28  ;;  %v3939_v50 = vpack.c.bf16 %v535_v46, %v535_v46 }
  0x53   : > { %3163 = vmatprep.subr.bf16.mxu0 %v3508_v1  ;;  %v3890_v11 = vpack.c.bf16 %v525_v9, %v524_v8  ;;  %v3892_v12 = vpack.c.bf16 %v526_v10, %v526_v10  ;;  %v527_v13 = vld [vmem:[%s3773_s7 + $0x18] sm:$0xff]  ;;  %v528_v14 = vld [vmem:[%s3773_s7 + $0x20] sm:$0xff]  ;;  %v529_v15 = vld [vmem:[%s3773_s7 + $0x28] sm:$0x3] }
  0x54   : > { %v3897_v16 = vpack.c.bf16 %v528_v14, %v527_v13  ;;  %v3899_v17 = vpack.c.bf16 %v529_v15, %v529_v15  ;;  %v530_v22 = vld [vmem:[%s3773_s7 + $0x30] sm:$0xff]  ;;  %v531_v23 = vld [vmem:[%s3773_s7 + $0x38] sm:$0xff]  ;;  %v623_v41 = vshll.u32 %v3918_v32, 16  ;;  %v533_v42 = vld [vmem:[%s3773_s7 + $0x48] sm:$0xff]  ;;  %v635_v59 = vshll.u32 %v3939_v50, 16 }
  0x55   : > { %3036 = vmatpush3.bf16.msra.mxu1 %v3507_v0  ;;  %v592_v19 = vshrl.u32 %v3890_v11, 16  ;;  %v594_v20 = vshll.u32 %v3890_v11, 16  ;;  %v599_v21 = vshll.u32 %v3892_v12, 16  ;;  %v3916_v29 = vpack.c.bf16 %v531_v23, %v530_v22  ;;  %v536_v51 = vld [vmem:[%s3773_s7 + $0x60] sm:$0xff]  ;;  %v537_v52 = vld [vmem:[%s3773_s7 + $0x68] sm:$0xff]  ;;  %v542_v15 = vld [vmem:[%s3773_s7 + $0x90] sm:$0xff] }
  0x56   : > { %3164 = vmatpush3.bf16.msra.mxu0 %v3508_v1  ;;  %3037 = vmatprep.subr.bf16.mxu1 %v3509_v2  ;;  %v604_v25 = vshrl.u32 %v3897_v16, 16  ;;  %v606_v26 = vshll.u32 %v3897_v16, 16  ;;  %v611_v27 = vshll.u32 %v3899_v17, 16  ;;  %v3933_v47 = vpack.c.bf16 %v534_v43, %v533_v42  ;;  %v538_v55 = vld [vmem:[%s3773_s7 + $0x70] sm:$0x3]  ;;  %v3521_v0 = vld [vmem:[%s4363_s2 + $0x8] sm:$0xff]  }
  0x57   : > { %3165 = vmatprep.subr.bf16.mxu0 %v3510_v3  ;;  %v596_v30 = vrot.slane %v594_v20, 1  ;;  %v601_v31 = vrot.slane %v599_v21, 1  ;;  %v618_v35 = vshll.u32 %v3916_v29, 16  ;;  %v616_v38 = vshrl.u32 %v3916_v29, 16  ;;  %v541_v10 = vld [vmem:[%s3773_s7 + $0x88] sm:$0x3] }
  0x58   : > { %v608_v33 = vrot.slane %v606_v26, 1  ;;  %v613_v34 = vrot.slane %v611_v27, 1  ;;  %v628_v53 = vshrl.u32 %v3933_v47, 16  ;;  %v630_v54 = vshll.u32 %v3933_v47, 16  ;;  %v544_v21 = vld [vmem:[%s3773_s7 + $0xa0] sm:$0x3] }
  0x59   : > { %3038 = vmatpush3.bf16.msra.mxu1 %v3509_v2  ;;  %v597_v37 = vor.u32 %v596_v30, %v592_v19  ;;  %v620_v40 = vrot.slane %v618_v35, 1  ;;  %v3946_v56 = vpack.c.bf16 %v537_v52, %v536_v51  ;;  %v625_v58 = vrot.slane %v623_v41, 1  ;;  %v3522_v2 = vld [vmem:[%s4363_s2 + $0x148] sm:$0xff]   ;;  %v3523_v26 = vld [vmem:[%s4363_s2 + $0x10] sm:$0xff]  }
  0x5a   : > { %3166 = vmatpush3.bf16.msra.mxu0 %v3510_v3  ;;  %3039 = vmatprep.subr.bf16.mxu1 %v3511_v4  ;;  %v609_v39 = vor.u32 %v608_v33, %v604_v25  ;;  %v3949_v60 = vpack.c.bf16 %v538_v55, %v538_v55  ;;  %v632_v62 = vrot.slane %v630_v54, 1  ;;  %v3971_v14 = vpack.c.bf16 %v541_v10, %v541_v10  ;;  %v3524_v33 = vld [vmem:[%s4363_s2 + $0x150] sm:$0xff]   ;;  %v545_v35 = vld [vmem:[%s3773_s7 + $0xa8] sm:$0xff]  ;;  %v3527_v55 = vld [vmem:[%s4363_s2 + $0x20] sm:$0xff]  }
  0x5b   : > { %3167 = vmatprep.subr.bf16.mxu0 %v3512_v5  ;;  %v602_v45 = vsel %vm590_vm0, %v597_v37, %v601_v31  ;;  %v621_v57 = vor.u32 %v620_v40, %v616_v38  ;;  %v642_v63 = vshll.u32 %v3946_v56, 16  ;;  %v640_v8 = vshrl.u32 %v3946_v56, 16  ;;  %v547_v40 = vld [vmem:[%s3773_s7 + $0xb8] sm:$0x3]  ;;  %v548_v46 = vld [vmem:[%s3773_s7 + $0xc0] sm:$0xff] }
  0x5c   : > { %3047 = vmatprep.mubr.bf16.mxu1 %v602_v45  ;;  %v614_v48 = vsel %vm590_vm0, %v609_v39, %v613_v34  ;;  %v647_v1 = vshll.u32 %v3949_v60, 16  ;;  %v633_v3 = vor.u32 %v632_v62, %v628_v53  ;;  %v659_v25 = vshll.u32 %v3971_v14, 16  ;;  %v3525_v34 = vld [vmem:[%s4363_s2 + $0x18] sm:$0xff]   ;;  %v550_v52 = vld [vmem:[%s3773_s7 + $0xd0] sm:$0x3]  ;;  %v3530_v10 = vld [vmem:[%s4363_s2 + $0x168] sm:$0xff]  }
  0x5d   : > { %3040 = vmatpush3.bf16.msra.mxu1 %v3511_v4  ;;  %3175 = vmatprep.mubr.bf16.mxu0 %v614_v48  ;;  %v637_v4 = vrot.slane %v635_v59, 1  ;;  %v644_v9 = vrot.slane %v642_v63, 1  ;;  %v3988_v30 = vpack.c.bf16 %v544_v21, %v544_v21  ;;  %v4009_v45 = vpack.c.bf16 %v547_v40, %v547_v40  ;;  %v3532_v21 = vld [vmem:[%s4363_s2 + $0x170] sm:$0xff]  }
  0x5e   : > { %3168 = vmatpush3.bf16.msra.mxu0 %v3512_v5  ;;  %3041 = vmatprep.subr.bf16.mxu1 %v3513_v6  ;;  %v539_v5 = vld [vmem:[%s3773_s7 + $0x78] sm:$0xff]  ;;  %v649_v19 = vrot.slane %v647_v1, 1  ;;  %v661_v38 = vrot.slane %v659_v25, 1  ;;  %v4030_v63 = vpack.c.bf16 %v550_v52, %v550_v52  ;;  %v3528_v1 = vld [vmem:[%s4363_s2 + $0x160] sm:$0xff]   ;;  %v1023_v25 = vrot.slane %v3899_v17, 1 }
  0x5f   : > { %3169 = vmatprep.subr.bf16.mxu0 %v3514_v7  ;;  %v3981_v23 = vsel %vm590_vm0, %v633_v3, %v637_v4  ;;  %v645_v27 = vor.u32 %v644_v9, %v640_v8  ;;  %v683_v59 = vshll.u32 %v4009_v45, 16 }
  0x60   : > { %v1415_v9 = vshll.u32 %v4030_v63, 16 }
  0x61   : > { %3042 = vmatpush3.bf16.msra.mxu1 %v3513_v6  ;;  %v540_v6 = vld [vmem:[%s3773_s7 + $0x80] sm:$0xff]  ;;  %v4006_v42 = vsel %vm590_vm0, %v645_v27, %v649_v19  ;;  %v685_v4 = vrot.slane %v683_v59, 1  ;;  %v3533_v27 = vld [vmem:[%s4363_s2 + $0x38] sm:$0xff]   ;;  %v1038_v59 = vrot.slane %v3988_v30, 1 }
  0x62   : > { %3170 = vmatpush3.bf16.msra.mxu0 %v3514_v7  ;;  %3043 = vmatprep.subr.bf16.mxu1 %v3515_v18  ;;  %v3965_v7 = vsel %vm590_vm0, %v621_v57, %v625_v58  ;;  %v3969_v13 = vpack.c.bf16 %v540_v6, %v539_v5 }
  0x63   : > { %3171 = vmatprep.subr.bf16.mxu0 %v3516_v24 }
  0x64   : > { %v654_v20 = vshll.u32 %v3969_v13, 16 }
  0x65   : > { %3044 = vmatpush3.bf16.msra.mxu1 %v3515_v18  ;;  %v543_v18 = vld [vmem:[%s3773_s7 + $0x98] sm:$0xff] }
  0x66   : > { %3172 = vmatpush3.bf16.msra.mxu0 %v3516_v24  ;;  %3045 = vmatprep.subr.bf16.mxu1 %v3517_v36  ;;  %v3977_v22 = vpack.c.bf16 %v543_v18, %v542_v15  ;;  %v652_v24 = vshrl.u32 %v3969_v13, 16  ;;  %v656_v28 = vrot.slane %v654_v20, 1  ;;  %v3531_v18 = vld [vmem:[%s4363_s2 + $0x30] sm:$0xff]   ;;  %v1417_v20 = vrot.slane %v1415_v9, 1 }
  0x67   : > { %3173 = vmatprep.subr.bf16.mxu0 %v3518_v44 }
  0x68   : > { %v666_v31 = vshll.u32 %v3977_v22, 16  ;;  %v657_v37 = vor.u32 %v656_v28, %v652_v24  ;;  %v664_v39 = vshrl.u32 %v3977_v22, 16  ;;  %v1022_v24 = vrot.slane %v3897_v16, 1 }
  0x69   : > { %3046 = vmatpush3.bf16.msra.mxu1 %v3517_v36  ;;  %v546_v36 = vld [vmem:[%s3773_s7 + $0xb0] sm:$0xff]  ;;  %v1019_v28 = vrot.slane %v3890_v11, 1 }
  0x6a   : > { %3174 = vmatpush3.bf16.msra.mxu0 %v3518_v44  ;;  %3063 = vmatprep.subr.bf16.mxu1 %v3519_v49  ;;  %v4003_v41 = vpack.c.bf16 %v546_v36, %v545_v35  ;;  %v668_v43 = vrot.slane %v666_v31, 1  ;;  %v671_v44 = vshll.u32 %v3988_v30, 16  ;;  %v4023_v54 = vsel %vm590_vm0, %v657_v37, %v661_v38  ;;  %v3534_v31 = vld [vmem:[%s4363_s2 + $0x178] sm:$0xff]   ;;  %v3535_v36 = vld [vmem:[%s4363_s2 + $0x80] sm:$0xff]   ;;  %v3545_v30 = vld [vmem:[%s4363_s2 + $0xa8] sm:$0xff]  }
  0x6b   : > { %3191 = vmatprep.subr.bf16.mxu0 %v3520_v61  ;;  %v4078_v17 = vsel %vm1018_vm1, %v1022_v24, %v1023_v25  ;;  %v3536_v37 = vld [vmem:[%s4363_s2 + $0x180] sm:$0xff]   ;;  %v1028_v38 = vrot.slane %v3933_v47, 1  ;;  %v3555_v24 = vld [vmem:[%s4363_s2 + $0xd0] sm:$0xff]  }
  0x6c   : > { %3048 = vmatmul.mubr.bf16.vlgmr.msra.gmra.mrb[0].mxu1 %v614_v48  ;;  %v549_v48 = vld [vmem:[%s3773_s7 + $0xc8] sm:$0xff]  ;;  %v678_v51 = vshll.u32 %v4003_v41, 16  ;;  %v676_v57 = vshrl.u32 %v4003_v41, 16  ;;  %v673_v62 = vrot.slane %v671_v44, 1  ;;  %v3539_v44 = vld [vmem:[%s4363_s2 + $0x90] sm:$0xff]  }
  0x6d   : > { %3176 = vmatmul.mubr.bf16.vlgmr.msra.gmra.mrb[0].mxu0 %v3965_v7  ;;  %3064 = vmatpush3.bf16.msra.mxu1 %v3519_v49  ;;  %v3526_v49 = vld [vmem:[%s4363_s2 + $0x158] sm:$0xff]   ;;  %v4018_v53 = vpack.c.bf16 %v549_v48, %v548_v46  ;;  %v1032_v46 = vrot.slane %v3949_v60, 1  ;;  %v3540_v48 = vld [vmem:[%s4363_s2 + $0x190] sm:$0xff]  }
  0x6e   : > { %3192 = vmatpush3.bf16.msra.mxu0 %v3520_v61  ;;  %3065 = vmatprep.subr.bf16.mxu1 %v3521_v0  ;;  %v680_v58 = vrot.slane %v678_v51, 1  ;;  %v669_v61 = vor.u32 %v668_v43, %v664_v39  ;;  %v1029_v39 = vrot.slane %v3939_v50, 1  ;;  %v1031_v43 = vrot.slane %v3946_v56, 1  ;;  %v3541_v60 = vld [vmem:[%s4363_s2 + $0x98] sm:$0xff]   ;;  %v3556_v25 = vld [vmem:[%s4363_s2 + $0x1d0] sm:$0xff]  }
  0x6f   : > { %3193 = vmatprep.subr.bf16.mxu0 %v3522_v2  ;;  %3051 = vmatprep.mubr.bf16.mxu1 %v3965_v7  ;;  %v1408_v5 = vshrl.u32 %v4018_v53, 16  ;;  %v1035_v51 = vrot.slane %v3971_v14, 1 }
  0x70   : > { %3179 = vmatprep.mubr.bf16.mxu0 %v3981_v23  ;;  %v681_v3 = vor.u32 %v680_v58, %v676_v57  ;;  %v4043_v6 = vsel %vm590_vm0, %v669_v61, %v673_v62  ;;  %v4107_v50 = vsel %vm1018_vm1, %v1028_v38, %v1029_v39  ;;  %v4122_v52 = vsel %vm1018_vm1, %v1031_v43, %v1032_v46  ;;  %v3543_v58 = vld [vmem:[%s4363_s2 + $0xa0] sm:$0xff]   ;;  %v3565_v39 = vld [vmem:[%s4363_s2 + $0xf8] sm:$0xff]   ;;  %v3568_v43 = vld [vmem:[%s4363_s2 + $0x208] sm:$0xff]  }
  0x71   : > { %3066 = vmatpush3.bf16.msra.mxu1 %v3521_v0  ;;  %v1410_v0 = vshll.u32 %v4018_v53, 16  ;;  %v1037_v57 = vrot.slane %v3977_v22, 1  ;;  %v3544_v61 = vld [vmem:[%s4363_s2 + $0x1a0] sm:$0xff]   ;;  %v1040_v62 = vrot.slane %v4003_v41, 1 }
  0x72   : > { %3194 = vmatpush3.bf16.msra.mxu0 %v3522_v2  ;;  %3067 = vmatprep.subr.bf16.mxu1 %v3523_v26  ;;  %v3529_v2 = vld [vmem:[%s4363_s2 + $0x28] sm:$0xff]   ;;  %v4052_v15 = vsel %vm590_vm0, %v681_v3, %v685_v4  ;;  %v1600_v3 = vrot.slane %v4018_v53, 1  ;;  %v3547_v4 = vld [vmem:[%s4363_s2 + $0xb0] sm:$0xff]  }
  0x73   : > { %3195 = vmatprep.subr.bf16.mxu0 %v3524_v33  ;;  %v1412_v8 = vrot.slane %v1410_v0, 1  ;;  %v1041_v0 = vrot.slane %v4009_v45, 1 }
  0x74   : > { %3052 = vmatmul.mubr.bf16.gmra.mrb[4].mxu1 %v3981_v23 }
  0x75   : > { %3180 = vmatmul.mubr.bf16.gmra.mrb[4].mxu0 %v4006_v42  ;;  %3068 = vmatpush3.bf16.msra.mxu1 %v3523_v26  ;;  %v1413_v19 = vor.u32 %v1412_v8, %v1408_v5  ;;  %v4159_v45 = vsel %vm1018_vm1, %v1040_v62, %v1041_v0  ;;  %v1601_v5 = vrot.slane %v4030_v63, 1  ;;  %v3548_v8 = vld [vmem:[%s4363_s2 + $0x1b0] sm:$0xff]   ;;  %v3550_v63 = vld [vmem:[%s4363_s2 + $0x1b8] sm:$0xff]  }
  0x76   : > { %3196 = vmatpush3.bf16.msra.mxu0 %v3524_v33  ;;  %3069 = vmatprep.subr.bf16.mxu1 %v3525_v34  ;;  %v1020_v33 = vrot.slane %v3892_v12, 1  ;;  %v1026_v12 = vrot.slane %v3918_v32, 1  ;;  %v3538_v32 = vld [vmem:[%s4363_s2 + $0x188] sm:$0xff]  }
  0x77   : > { %3197 = vmatprep.subr.bf16.mxu0 %v3526_v49  ;;  %3055 = vmatprep.mubr.bf16.mxu1 %v4006_v42  ;;  %v4065_v26 = vsel %vm590_vm0, %v1413_v19, %v1417_v20  ;;  %v4172_v9 = vsel %vm1018_vm1, %v1600_v3, %v1601_v5  ;;  %v3552_v19 = vld [vmem:[%s4363_s2 + $0x1c0] sm:$0xff]   ;;  %v3553_v20 = vld [vmem:[%s4363_s2 + $0xc8] sm:$0xff]  }
  0x78   : > { %3183 = vmatprep.mubr.bf16.mxu0 %v4023_v54  ;;  %v4082_v35 = vsel %vm1018_vm1, %v1019_v28, %v1020_v33  ;;  %v3558_v28 = vld [vmem:[%s4363_s2 + $0x1d8] sm:$0xff]   ;;  %v3560_v33 = vld [vmem:[%s4363_s2 + $0x1e0] sm:$0xff]  }
  0x79   : > { %3070 = vmatpush3.bf16.msra.mxu1 %v3525_v34  ;;  %v1025_v34 = vrot.slane %v3916_v29, 1 }
  0x7a   : > { %3198 = vmatpush3.bf16.msra.mxu0 %v3526_v49  ;;  %3071 = vmatprep.subr.bf16.mxu1 %v3527_v55  ;;  %v1034_v49 = vrot.slane %v3969_v13, 1 }
  0x7b   : > { %3199 = vmatprep.subr.bf16.mxu0 %v3528_v1  ;;  %v4096_v40 = vsel %vm1018_vm1, %v1025_v34, %v1026_v12  ;;  %v3562_v34 = vld [vmem:[%s4363_s2 + $0x1e8] sm:$0xff]   ;;  %v552_v12 = vld [vmem:[%s3773_s7 + $0xe0] sm:$0xff] }
  0x7c   : > { %3056 = vmatmul.mubr.bf16.gmra.mrb[8].mxu1 %v4023_v54  ;;  %v4133_v14 = vsel %vm1018_vm1, %v1034_v49, %v1035_v51 }
  0x7d   : > { %3184 = vmatmul.mubr.bf16.gmra.mrb[8].mxu0 %v4043_v6  ;;  %3072 = vmatpush3.bf16.msra.mxu1 %v3527_v55  ;;  %v3542_v55 = vld [vmem:[%s4363_s2 + $0x198] sm:$0xff]  }
  0x7e   : > { %3200 = vmatpush3.bf16.msra.mxu0 %v3528_v1  ;;  %3073 = vmatprep.subr.bf16.mxu1 %v3529_v2  ;;  %v4148_v1 = vsel %vm1018_vm1, %v1037_v57, %v1038_v59 }
  0x7f   : > { %3201 = vmatprep.subr.bf16.mxu0 %v3530_v10  ;;  %3059 = vmatprep.mubr.bf16.mxu1 %v4043_v6 }
  0x80   : > { %3187 = vmatprep.mubr.bf16.mxu0 %v4052_v15 }
  0x81   : > { %3074 = vmatpush3.bf16.msra.mxu1 %v3529_v2  ;;  %v3546_v2 = vld [vmem:[%s4363_s2 + $0x1a8] sm:$0xff]  }
  0x82   : > { %3202 = vmatpush3.bf16.msra.mxu0 %v3530_v10  ;;  %3075 = vmatprep.subr.bf16.mxu1 %v3531_v18  ;;  %v3549_v10 = vld [vmem:[%s4363_s2 + $0xb8] sm:$0xff]  }
  0x83   : > { %3203 = vmatprep.subr.bf16.mxu0 %v3532_v21 }
  0x84   : > { %3060 = vmatmul.mubr.bf16.gmra.mrb[12].mxu1 %v4052_v15 }
  0x85   : > { %3188 = vmatmul.mubr.bf16.gmra.mrb[12].mxu0 %v4065_v26  ;;  %3076 = vmatpush3.bf16.msra.mxu1 %v3531_v18  ;;  %v3551_v18 = vld [vmem:[%s4363_s2 + $0xc0] sm:$0xff]  }
  0x86   : > { %3204 = vmatpush3.bf16.msra.mxu0 %v3532_v21  ;;  %3077 = vmatprep.subr.bf16.mxu1 %v3533_v27  ;;  %v3554_v21 = vld [vmem:[%s4363_s2 + $0x1c8] sm:$0xff]  }
  0x87   : > { %3205 = vmatprep.subr.bf16.mxu0 %v3534_v31  ;;  %3079 = vmatprep.mubr.bf16.mxu1 %v3890_v11  ;;  %v3537_v11 = vld [vmem:[%s4363_s2 + $0x88] sm:$0xff]  }
  0x88   : > { %3207 = vmatprep.mubr.bf16.mxu0 %v4078_v17 }
  0x89   : > { %3078 = vmatpush3.bf16.msra.mxu1 %v3533_v27  ;;  %v3557_v27 = vld [vmem:[%s4363_s2 + $0xd8] sm:$0xff]  }
  0x8a   : > { %3206 = vmatpush3.bf16.msra.mxu0 %v3534_v31  ;;  %3095 = vmatprep.subr.bf16.mxu1 %v3535_v36  ;;  %v3559_v31 = vld [vmem:[%s4363_s2 + $0xe0] sm:$0xff]  }
  0x8b   : > { %3223 = vmatprep.subr.bf16.mxu0 %v3536_v37 }
  0x8c   : > { %3080 = vmatmul.mubr.bf16.vlgmr.msra.gmra.mrb[0].mxu1 %v3897_v16 }
  0x8d   : > { %3208 = vmatmul.mubr.bf16.vlgmr.msra.gmra.mrb[0].mxu0 %v4096_v40  ;;  %3096 = vmatpush3.bf16.msra.mxu1 %v3535_v36  ;;  %v551_v36 = vld [vmem:[%s3773_s7 + $0xd8] sm:$0xff] }
  0x8e   : > { %3224 = vmatpush3.bf16.msra.mxu0 %v3536_v37  ;;  %3097 = vmatprep.subr.bf16.mxu1 %v3537_v11  ;;  %v3564_v37 = vld [vmem:[%s4363_s2 + $0x1f0] sm:$0xff]   ;;  %v4240_v38 = vpack.c.bf16 %v552_v12, %v551_v36 }
  0x8f   : > { %3225 = vmatprep.subr.bf16.mxu0 %v3538_v32  ;;  %3083 = vmatprep.mubr.bf16.mxu1 %v3916_v29 }
  0x90   : > { %3211 = vmatprep.mubr.bf16.mxu0 %v4107_v50 }
  0x91   : > { %3098 = vmatpush3.bf16.msra.mxu1 %v3537_v11  ;;  %v3566_v11 = vld [vmem:[%s4363_s2 + $0x1f8] sm:$0xff]  }
  0x92   : > { %3226 = vmatpush3.bf16.msra.mxu0 %v3538_v32  ;;  %3099 = vmatprep.subr.bf16.mxu1 %v3539_v44  ;;  %v3567_v32 = vld [vmem:[%s4363_s2 + $0x200] sm:$0xff]  }
  0x93   : > { %3227 = vmatprep.subr.bf16.mxu0 %v3540_v48 }
  0x94   : > { %3084 = vmatmul.mubr.bf16.gmra.mrb[4].mxu1 %v3933_v47 }
  0x95   : > { %3212 = vmatmul.mubr.bf16.gmra.mrb[4].mxu0 %v4122_v52  ;;  %3100 = vmatpush3.bf16.msra.mxu1 %v3539_v44 }
  0x96   : > { %3228 = vmatpush3.bf16.msra.mxu0 %v3540_v48  ;;  %3101 = vmatprep.subr.bf16.mxu1 %v3541_v60  ;;  %v3573_v48 = vld [vmem:[%s4363_s2 + $0x230] sm:$0xff]  }
  0x97   : > { %3229 = vmatprep.subr.bf16.mxu0 %v3542_v55  ;;  %3087 = vmatprep.mubr.bf16.mxu1 %v3946_v56 }
  0x98   : > { %3215 = vmatprep.mubr.bf16.mxu0 %v4133_v14 }
  0x99   : > { %3102 = vmatpush3.bf16.msra.mxu1 %v3541_v60 }
  0x9a   : > { %3230 = vmatpush3.bf16.msra.mxu0 %v3542_v55  ;;  %3103 = vmatprep.subr.bf16.mxu1 %v3543_v58 }
  0x9b   : > { %3231 = vmatprep.subr.bf16.mxu0 %v3544_v61 }
  0x9c   : > { %3088 = vmatmul.mubr.bf16.gmra.mrb[8].mxu1 %v3969_v13 }
  0x9d   : > { %3216 = vmatmul.mubr.bf16.gmra.mrb[8].mxu0 %v4148_v1  ;;  %3104 = vmatpush3.bf16.msra.mxu1 %v3543_v58 }
  0x9e   : > { %3232 = vmatpush3.bf16.msra.mxu0 %v3544_v61  ;;  %3105 = vmatprep.subr.bf16.mxu1 %v3545_v30 }
  0x9f   : > { %3233 = vmatprep.subr.bf16.mxu0 %v3546_v2  ;;  %3091 = vmatprep.mubr.bf16.mxu1 %v3977_v22 }
  0xa0   : > { %3219 = vmatprep.mubr.bf16.mxu0 %v4159_v45 }
  0xa1   : > { %3106 = vmatpush3.bf16.msra.mxu1 %v3545_v30 }
  0xa2   : > { %3234 = vmatpush3.bf16.msra.mxu0 %v3546_v2  ;;  %3107 = vmatprep.subr.bf16.mxu1 %v3547_v4 }
  0xa3   : > { %3235 = vmatprep.subr.bf16.mxu0 %v3548_v8 }
  0xa4   : > { %3092 = vmatmul.mubr.bf16.gmra.mrb[12].mxu1 %v4003_v41 }
  0xa5   : > { %3220 = vmatmul.mubr.bf16.gmra.mrb[12].mxu0 %v4172_v9  ;;  %3108 = vmatpush3.bf16.msra.mxu1 %v3547_v4 }
  0xa6   : > { %3236 = vmatpush3.bf16.msra.mxu0 %v3548_v8  ;;  %3109 = vmatprep.subr.bf16.mxu1 %v3549_v10 }
  0xa7   : > { %3237 = vmatprep.subr.bf16.mxu0 %v3550_v63  ;;  %3111 = vmatprep.mubr.bf16.mxu1 %v4082_v35  ;;  %v3563_v35 = vld [vmem:[%s4363_s2 + $0xf0] sm:$0xff]  }
  0xa8   : > { %3239 = vmatprep.mubr.bf16.mxu0 %v3916_v29 }
  0xa9   : > { %3110 = vmatpush3.bf16.msra.mxu1 %v3549_v10 }
  0xaa   : > { %3238 = vmatpush3.bf16.msra.mxu0 %v3550_v63  ;;  %3127 = vmatprep.subr.bf16.mxu1 %v3551_v18 }
  0xab   : > { %3255 = vmatprep.subr.bf16.mxu0 %v3552_v19 }
  0xac   : > { %3112 = vmatmul.mubr.bf16.vlgmr.msra.gmra.mrb[0].mxu1 %v4078_v17  ;;  %v3561_v17 = vld [vmem:[%s4363_s2 + $0xe8] sm:$0xff]  }
  0xad   : > { %3240 = vmatmul.mubr.bf16.vlgmr.msra.gmra.mrb[0].mxu0 %v3933_v47  ;;  %3128 = vmatpush3.bf16.msra.mxu1 %v3551_v18 }
  0xae   : > { %3256 = vmatpush3.bf16.msra.mxu0 %v3552_v19  ;;  %3129 = vmatprep.subr.bf16.mxu1 %v3553_v20 }
  0xaf   : > { %3257 = vmatprep.subr.bf16.mxu0 %v3554_v21  ;;  %3115 = vmatprep.mubr.bf16.mxu1 %v4096_v40 }
  0xb0   : > { %3243 = vmatprep.mubr.bf16.mxu0 %v3946_v56 }
  0xb1   : > { %3130 = vmatpush3.bf16.msra.mxu1 %v3553_v20 }
  0xb2   : > { %3258 = vmatpush3.bf16.msra.mxu0 %v3554_v21  ;;  %3131 = vmatprep.subr.bf16.mxu1 %v3555_v24 }
  0xb3   : > { %3259 = vmatprep.subr.bf16.mxu0 %v3556_v25 }
  0xb4   : > { %3116 = vmatmul.mubr.bf16.gmra.mrb[4].mxu1 %v4107_v50 }
  0xb5   : > { %3244 = vmatmul.mubr.bf16.gmra.mrb[4].mxu0 %v3969_v13  ;;  %3132 = vmatpush3.bf16.msra.mxu1 %v3555_v24 }
  0xb6   : > { %3260 = vmatpush3.bf16.msra.mxu0 %v3556_v25  ;;  %3133 = vmatprep.subr.bf16.mxu1 %v3557_v27 }
  0xb7   : > { %3261 = vmatprep.subr.bf16.mxu0 %v3558_v28  ;;  %3119 = vmatprep.mubr.bf16.mxu1 %v4122_v52 }
  0xb8   : > { %3247 = vmatprep.mubr.bf16.mxu0 %v3977_v22 }
  0xb9   : > { %3134 = vmatpush3.bf16.msra.mxu1 %v3557_v27 }
  0xba   : > { %3262 = vmatpush3.bf16.msra.mxu0 %v3558_v28  ;;  %3135 = vmatprep.subr.bf16.mxu1 %v3559_v31 }
  0xbb   : > { %3263 = vmatprep.subr.bf16.mxu0 %v3560_v33 }
  0xbc   : > { %3120 = vmatmul.mubr.bf16.gmra.mrb[8].mxu1 %v4133_v14 }
  0xbd   : > { %3248 = vmatmul.mubr.bf16.gmra.mrb[8].mxu0 %v4003_v41  ;;  %3136 = vmatpush3.bf16.msra.mxu1 %v3559_v31 }
  0xbe   : > { %3264 = vmatpush3.bf16.msra.mxu0 %v3560_v33  ;;  %3137 = vmatprep.subr.bf16.mxu1 %v3561_v17 }
  0xbf   : > { %3265 = vmatprep.subr.bf16.mxu0 %v3562_v34  ;;  %3123 = vmatprep.mubr.bf16.mxu1 %v4148_v1 }
  0xc0   : > { %3251 = vmatprep.mubr.bf16.mxu0 %v4018_v53 }
  0xc1   : > { %3138 = vmatpush3.bf16.msra.mxu1 %v3561_v17 }
  0xc2   : > { %3266 = vmatpush3.bf16.msra.mxu0 %v3562_v34  ;;  %3139 = vmatprep.subr.bf16.mxu1 %v3563_v35 }
  0xc3   : > { %3267 = vmatprep.subr.bf16.mxu0 %v3564_v37 }
  0xc4   : > { %3124 = vmatmul.mubr.bf16.gmra.mrb[12].mxu1 %v4159_v45 }
  0xc5   : > { %3252 = vmatmul.mubr.bf16.gmra.mrb[12].mxu0 %v4240_v38  ;;  %3140 = vmatpush3.bf16.msra.mxu1 %v3563_v35 }
  0xc6   : > { %3268 = vmatpush3.bf16.msra.mxu0 %v3564_v37  ;;  %3141 = vmatprep.subr.bf16.mxu1 %v3565_v39 }
  0xc7   : > { %3269 = vmatprep.subr.bf16.mxu0 %v3566_v11  ;;  %3143 = vmatprep.mubr.bf16.mxu1 %v3897_v16  ;;  %v3569_v16 = vld [vmem:[%s4363_s2 + $0x210] sm:$0xff]  }
  0xc8   : > { %3271 = vmatprep.mubr.bf16.mxu0 %v3965_v7  ;;  %v553_v7 = vld [vmem:[%s3773_s7 + $0xe8] sm:$0x3] }
  0xc9   : > { %3142 = vmatpush3.bf16.msra.mxu1 %v3565_v39 }
  0xca   : > { %3270 = vmatpush3.bf16.msra.mxu0 %v3566_v11  ;;  %3319 = vmatprep.subr.bf16.mxu1 %v3567_v32 }
  0xcb   : > { %3287 = vmatprep.subr.bf16.mxu0 %v3567_v32 }
  0xcc   : > { %3144 = vmatmul.mubr.bf16.vlgmr.msra.gmra.mrb[0].mxu1 %v3916_v29  ;;  %v3570_v29 = vld [vmem:[%s4363_s2 + $0x218] sm:$0xff]  }
  0xcd   : > { %3272 = vmatmul.mubr.bf16.vlgmr.msra.gmra.mrb[0].mxu0 %v3981_v23  ;;  %3327 = vmatpush3.bf16.msra.mxu1 %v3567_v32  ;;  %v573_v23 = vpack.c.bf16 %v553_v7, %v553_v7 }
  0xce   : > { %3288 = vmatpush3.bf16.msra.mxu0 %v3567_v32  ;;  %3320 = vmatprep.subr.bf16.mxu1 %v3568_v43 }
  0xcf   : > { %3289 = vmatprep.subr.bf16.mxu0 %v3568_v43  ;;  %3147 = vmatprep.mubr.bf16.mxu1 %v3933_v47  ;;  %v3571_v47 = vld [vmem:[%s4363_s2 + $0x220] sm:$0xff]   ;;  %v1968_v46 = vshll.u32 %v573_v23, 16 }
  0xd0   : > { %3275 = vmatprep.mubr.bf16.mxu0 %v4006_v42  ;;  %v1963_v42 = vshll.u32 %v4240_v38, 16 }
  0xd1   : > { %3328 = vmatpush3.bf16.msra.mxu1 %v3568_v43 }
  0xd2   : > { %3290 = vmatpush3.bf16.msra.mxu0 %v3568_v43  ;;  %3321 = vmatprep.subr.bf16.mxu1 %v3569_v16  ;;  %v1965_v44 = vrot.slane %v1963_v42, 1 }
  0xd3   : > { %3291 = vmatprep.subr.bf16.mxu0 %v3569_v16 }
  0xd4   : > { %3148 = vmatmul.mubr.bf16.gmra.mrb[4].mxu1 %v3946_v56  ;;  %v3572_v56 = vld [vmem:[%s4363_s2 + $0x228] sm:$0xff]  }
  0xd5   : > { %3276 = vmatmul.mubr.bf16.gmra.mrb[4].mxu0 %v4023_v54  ;;  %3329 = vmatpush3.bf16.msra.mxu1 %v3569_v16  ;;  %v1961_v54 = vshrl.u32 %v4240_v38, 16 }
  0xd6   : > { %3292 = vmatpush3.bf16.msra.mxu0 %v3569_v16  ;;  %3322 = vmatprep.subr.bf16.mxu1 %v3570_v29 }
  0xd7   : > { %3293 = vmatprep.subr.bf16.mxu0 %v3570_v29  ;;  %3151 = vmatprep.mubr.bf16.mxu1 %v3969_v13  ;;  %v1966_v13 = vor.u32 %v1965_v44, %v1961_v54 }
  0xd8   : > { %3279 = vmatprep.mubr.bf16.mxu0 %v4043_v6  ;;  %v1970_v6 = vrot.slane %v1968_v46, 1 }
  0xd9   : > { %3330 = vmatpush3.bf16.msra.mxu1 %v3570_v29 }
  0xda   : > { %3294 = vmatpush3.bf16.msra.mxu0 %v3570_v29  ;;  %3323 = vmatprep.subr.bf16.mxu1 %v3571_v47 }
  0xdb   : > { %3295 = vmatprep.subr.bf16.mxu0 %v3571_v47 }
  0xdc   : > { %3152 = vmatmul.mubr.bf16.gmra.mrb[8].mxu1 %v3977_v22  ;;  %v1971_v22 = vsel %vm590_vm0, %v1966_v13, %v1970_v6 }
  0xdd   : > { %3280 = vmatmul.mubr.bf16.gmra.mrb[8].mxu0 %v4052_v15  ;;  %3331 = vmatpush3.bf16.msra.mxu1 %v3571_v47  ;;  %v3574_v15 = vld [vmem:[%s4363_s2 + $0x238] sm:$0xff]  }
  0xde   : > { %3296 = vmatpush3.bf16.msra.mxu0 %v3571_v47  ;;  %3324 = vmatprep.subr.bf16.mxu1 %v3572_v56 }
  0xdf   : > { %3297 = vmatprep.subr.bf16.mxu0 %v3572_v56  ;;  %3155 = vmatprep.mubr.bf16.mxu1 %v4003_v41  ;;  %v2153_v41 = vrot.slane %v4240_v38, 1 }
  0xe0   : > { %3283 = vmatprep.mubr.bf16.mxu0 %v4065_v26 }
  0xe1   : > { %3332 = vmatpush3.bf16.msra.mxu1 %v3572_v56 }
  0xe2   : > { %3298 = vmatpush3.bf16.msra.mxu0 %v3572_v56  ;;  %3325 = vmatprep.subr.bf16.mxu1 %v3573_v48 }
  0xe3   : > { %3299 = vmatprep.subr.bf16.mxu0 %v3573_v48 }
  0xe4   : > { %3156 = vmatmul.mubr.bf16.gmra.mrb[12].mxu1 %v4018_v53  ;;  %v2154_v53 = vrot.slane %v573_v23, 1 }
  0xe5   : > { %3284 = vmatmul.mubr.bf16.gmra.mrb[12].mxu0 %v1971_v22  ;;  %3333 = vmatpush3.bf16.msra.mxu1 %v3573_v48 }
  0xe6   : > { %3300 = vmatpush3.bf16.msra.mxu0 %v3573_v48  ;;  %3326 = vmatprep.subr.bf16.mxu1 %v3574_v15  ;;  %v2155_v26 = vsel %vm1018_vm1, %v2153_v41, %v2154_v53 }
  0xe7   : > { %3301 = vmatprep.subr.bf16.mxu0 %v3574_v15  ;;  %3303 = vmatprep.mubr.bf16.mxu0 %v4096_v40 }
  0xe8   : > { %3311 = vmatprep.mubr.bf16.mxu1 %v4148_v1 }
  0xe9   : > { %3334 = vmatpush3.bf16.msra.mxu1 %v3574_v15 }
  0xea   : > { %3302 = vmatpush3.bf16.msra.mxu0 %v3574_v15 }
  0xec   : > { %3312 = vmatmul.mubr.bf16.vlgmr.msra.gmra.mrb[16].mxu1 %v4159_v45 }
  0xed   : > { %3304 = vmatmul.mubr.bf16.vlgmr.msra.gmra.mrb[0].mxu0 %v4107_v50  ;;  %3315 = vmatprep.mubr.bf16.mxu1 %v4172_v9 }
  0xee   : > { %3307 = vmatprep.mubr.bf16.mxu0 %v4122_v52 }
  0xf4   : > { %3316 = vmatmul.mubr.bf16.gmra.mrb[20].mxu1 %v2155_v26 }
  0xf5   : > { %3308 = vmatmul.mubr.bf16.gmra.mrb[4].mxu0 %v4133_v14 }
 0x19f   : > { %v3145_v40 = vpop.f32.mrb[0].mxu1 }
 0x1a0   : > { %v1328_v49 = vpop.f32.mrb[1].mxu1 }
 0x1a1   : > { %v3146_v51 = vpop.f32.mrb[2].mxu1 }
 0x1a2   : > { %v1331_v60 = vpop.f32.mrb[3].mxu1 }
 0x1a7   : > { %v3149_v55 = vpop.f32.mrb[4].mxu1 }
 0x1a8   : > { %v4302_v57 = vpop.f32.mrb[5].mxu1 }
 0x1a9   : > { %v4304_v50 = vpop.f32.mrb[6].mxu1 }
 0x1aa   : > { %v4306_v58 = vpop.f32.mrb[7].mxu1 }
 0x1af   : > { %v3153_v59 = vpop.f32.mrb[8].mxu1 }
 0x1b0   : > { %v3281_v61 = vpop.f32.mrb[8].mxu0  ;;  %v1360_v62 = vpop.f32.mrb[9].mxu1 }
 0x1b1   : > { %v3343_v52 = vadd.f32 %v3281_v61, %v3153_v59  ;;  %v2104_v0 = vpop.f32.mrb[9].mxu0  ;;  %v3154_v1 = vpop.f32.mrb[10].mxu1 }
 0x1b2   : > { %v3345_v30 = vadd.f32 %v2104_v0, %v1360_v62  ;;  %v3282_v2 = vpop.f32.mrb[10].mxu0  ;;  %v1363_v14 = vpop.f32.mrb[11].mxu1 }
 0x1b3   : > { %v3347_v45 = vadd.f32 %v3282_v2, %v3154_v1  ;;  %v2107_v3 = vpop.f32.mrb[11].mxu0 }
 0x1b4   : > { %v3349_v4 = vadd.f32 %v2107_v3, %v1363_v14 }
 0x1b7   : > { %v3157_v5 = vpop.f32.mrb[12].mxu1 }
 0x1b8   : > { %v3285_v8 = vpop.f32.mrb[12].mxu0  ;;  %v1376_v9 = vpop.f32.mrb[13].mxu1 }
 0x1b9   : > { %v3351_v10 = vadd.f32 %v3285_v8, %v3157_v5  ;;  %v2120_v63 = vpop.f32.mrb[13].mxu0  ;;  %v3158_v18 = vpop.f32.mrb[14].mxu1 }
 0x1ba   : > { %v3353_v19 = vadd.f32 %v2120_v63, %v1376_v9  ;;  %v3286_v20 = vpop.f32.mrb[14].mxu0  ;;  %v1379_v21 = vpop.f32.mrb[15].mxu1 }
 0x1bb   : > { %v3355_v24 = vadd.f32 %v3286_v20, %v3158_v18  ;;  %v2123_v25 = vpop.f32.mrb[15].mxu0 }
 0x1bc   : > { %v3357_v27 = vadd.f32 %v2123_v25, %v1379_v21 }
 0x1bf   : > { %v3313_v28 = vpop.f32.mrb[16].mxu1 }
 0x1c0   : > { %v3305_v31 = vpop.f32.mrb[0].mxu0  ;;  %v4308_v33 = vadd.f32 %v3343_v52, %v3313_v28  ;;  %v2288_v17 = vpop.f32.mrb[17].mxu1 }
 0x1c1   : > { %v3335_v34 = vadd.f32 %v3305_v31, %v3145_v40  ;;  %v2256_v35 = vpop.f32.mrb[1].mxu0  ;;  %v4310_v36 = vadd.f32 %v3345_v30, %v2288_v17  ;;  %v3314_v12 = vpop.f32.mrb[18].mxu1 }
 0x1c2   : > { %2345 = vst [vmem:[%s3690_s9 + $0x50] sm:$0xff] %v4308_v33  ;;  %v3336_v37 = vadd.f32 %v2256_v35, %v1328_v49  ;;  %v3306_v38 = vpop.f32.mrb[2].mxu0  ;;  %v4314_v39 = vadd.f32 %v3347_v45, %v3314_v12  ;;  %v2291_v11 = vpop.f32.mrb[19].mxu1  ;;  %v2382_v20 = vmul.f32 %v4308_v33, %v4308_v33 }
 0x1c3   : > { %2337 = vst [vmem:[%s3690_s9 + $0x10] sm:$0xff] %v3335_v34  ;;  %2343 = vst [vmem:[%s3690_s9 + $0x40] sm:$0xff] %v4310_v36  ;;  %v3337_v32 = vadd.f32 %v3306_v38, %v3146_v51  ;;  %v2259_v43 = vpop.f32.mrb[3].mxu0  ;;  %v3350_v16 = vadd.f32 %v3349_v4, %v2291_v11  ;;  %v2374_v56 = vmul.f32 %v3335_v34, %v3335_v34 }
 0x1c4   : > { %2335 = vst [vmem:[%s3690_s9] sm:$0xff] %v3336_v37  ;;  %2346 = vst [vmem:[%s3690_s9 + $0x58] sm:$0xff] %v4314_v39  ;;  %v3338_v29 = vadd.f32 %v2259_v43, %v1331_v60  ;;  %v2372_v7 = vmul.f32 %v3336_v37, %v3336_v37  ;;  %v2380_v9 = vmul.f32 %v4310_v36, %v4310_v36 }
 0x1c5   : > { %2338 = vst [vmem:[%s3690_s9 + $0x18] sm:$0xff] %v3337_v32  ;;  %2344 = vst [vmem:[%s3690_s9 + $0x48] sm:$0xff] %v3350_v16  ;;  %v2375_v53 = vmul.f32 %v3337_v32, %v3337_v32  ;;  %v2381_v63 = vmul.f32 %v3350_v16, %v3350_v16  ;;  %v2383_v25 = vmul.f32 %v4314_v39, %v4314_v39 }
 0x1c6   : > { %2336 = vst [vmem:[%s3690_s9 + $0x8] sm:$0xff] %v3338_v29  ;;  %v2351_v47 = vadd.f32 %v3338_v29, %v3336_v37  ;;  %v2373_v23 = vmul.f32 %v3338_v29, %v3338_v29 }
 0x1c7   : > { %v3317_v42 = vpop.f32.mrb[20].mxu1 }
 0x1c8   : > { %v2352_v54 = vadd.f32 %v3335_v34, %v2351_v47  ;;  %v2388_v44 = vadd.f32 %v2373_v23, %v2372_v7  ;;  %v3309_v46 = vpop.f32.mrb[4].mxu0  ;;  %v3352_v13 = vadd.f32 %v3351_v10, %v3317_v42  ;;  %v2304_v6 = vpop.f32.mrb[21].mxu1 }
 0x1c9   : > { %v3339_v48 = vadd.f32 %v3309_v46, %v3149_v55  ;;  %v2272_v22 = vpop.f32.mrb[5].mxu0  ;;  %v3354_v15 = vadd.f32 %v3353_v19, %v2304_v6  ;;  %v3318_v41 = vpop.f32.mrb[22].mxu1 }
 0x1ca   : > { %v2389_v26 = vadd.f32 %v2388_v44, %v2374_v56  ;;  %2349 = vst [vmem:[%s3690_s9 + $0x70] sm:$0xff] %v3352_v13  ;;  %v3340_v40 = vadd.f32 %v2272_v22, %v4302_v57  ;;  %v2353_v49 = vadd.f32 %v3337_v32, %v2352_v54  ;;  %v3310_v51 = vpop.f32.mrb[6].mxu0  ;;  %v2307_v60 = vpop.f32.mrb[23].mxu1  ;;  %v3356_v59 = vadd.f32 %v3355_v24, %v3318_v41 }
 0x1cb   : > { %2341 = vst [vmem:[%s3690_s9 + $0x30] sm:$0xff] %v3339_v48  ;;  %2347 = vst [vmem:[%s3690_s9 + $0x60] sm:$0xff] %v3354_v15  ;;  %v3341_v55 = vadd.f32 %v3310_v51, %v4304_v50  ;;  %v2275_v61 = vpop.f32.mrb[7].mxu0  ;;  %v3358_v57 = vadd.f32 %v3357_v27, %v2307_v60  ;;  %v2378_v45 = vmul.f32 %v3339_v48, %v3339_v48 }
 0x1cc   : > { %2339 = vst [vmem:[%s3690_s9 + $0x20] sm:$0xff] %v3340_v40  ;;  %v2354_v62 = vadd.f32 %v3340_v40, %v2353_v49  ;;  %v2376_v52 = vmul.f32 %v3340_v40, %v3340_v40  ;;  %v2390_v0 = vadd.f32 %v2389_v26, %v2375_v53  ;;  %v3342_v1 = vadd.f32 %v2275_v61, %v4306_v58 }
 0x1cd   : > { %2342 = vst [vmem:[%s3690_s9 + $0x38] sm:$0xff] %v3341_v55  ;;  %2350 = vst [vmem:[%s3690_s9 + $0x78] sm:$0xff] %v3356_v59  ;;  %v2379_v50 = vmul.f32 %v3341_v55, %v3341_v55  ;;  %v2384_v31 = vmul.f32 %v3354_v15, %v3354_v15  ;;  %v2386_v37 = vmul.f32 %v3352_v13, %v3352_v13 }
 0x1ce   : > { %v2391_v30 = vadd.f32 %v2390_v0, %v2376_v52  ;;  %2340 = vst [vmem:[%s3690_s9 + $0x28] sm:$0xff] %v3342_v1  ;;  %v2355_v2 = vadd.f32 %v3342_v1, %v2354_v62  ;;  %v2377_v14 = vmul.f32 %v3342_v1, %v3342_v1  ;;  %2348 = vst [vmem:[%s3690_s9 + $0x68] sm:$0xff] %v3358_v57 }
 0x1cf   : > { %v2387_v32 = vmul.f32 %v3356_v59, %v3356_v59 }
 0x1d0   : > { %v2356_v3 = vadd.f32 %v3339_v48, %v2355_v2  ;;  %v2392_v4 = vadd.f32 %v2391_v30, %v2377_v14 }
 0x1d2   : > { %v2357_v5 = vadd.f32 %v3341_v55, %v2356_v3  ;;  %v2393_v8 = vadd.f32 %v2392_v4, %v2378_v45 }
 0x1d4   : > { %v2358_v10 = vadd.f32 %v4310_v36, %v2357_v5  ;;  %v2394_v58 = vadd.f32 %v2393_v8, %v2379_v50  ;;  %v2385_v36 = vmul.f32 %v3358_v57, %v3358_v57 }
 0x1d6   : > { %v2395_v18 = vadd.f32 %v2394_v58, %v2380_v9  ;;  %v2359_v19 = vadd.f32 %v3350_v16, %v2358_v10 }
 0x1d8   : > { %v2360_v21 = vadd.f32 %v4308_v33, %v2359_v19  ;;  %v2396_v24 = vadd.f32 %v2395_v18, %v2381_v63 }
 0x1da   : > { %v2361_v27 = vadd.f32 %v4314_v39, %v2360_v21  ;;  %v2397_v28 = vadd.f32 %v2396_v24, %v2382_v20 }
 0x1dc   : > { %v2362_v17 = vadd.f32 %v3354_v15, %v2361_v27  ;;  %v2398_v34 = vadd.f32 %v2397_v28, %v2383_v25 }
 0x1de   : > { %v2363_v35 = vadd.f32 %v3358_v57, %v2362_v17  ;;  %v2399_v12 = vadd.f32 %v2398_v34, %v2384_v31 }
 0x1e0   : > { %v2364_v38 = vadd.f32 %v3352_v13, %v2363_v35  ;;  %v2400_v11 = vadd.f32 %v2399_v12, %v2385_v36 }
 0x1e2   : > { %v2365_v43 = vadd.f32 %v3356_v59, %v2364_v38  ;;  %v2401_v16 = vadd.f32 %v2400_v11, %v2386_v37 }
 0x1e4   : > { %v2366_v33 = vrot.slane %v2365_v43, 4  ;;  %v2402_v29 = vadd.f32 %v2401_v16, %v2387_v32 }
 0x1e6   : > { %v2367_v7 = vadd.f32 %v2366_v33, %v2365_v43  ;;  %v2403_v47 = vrot.slane %v2402_v29, 4 }
 0x1e8   : > { %v2368_v23 = vrot.slane %v2367_v7, 2  ;;  %v2404_v39 = vadd.f32 %v2403_v47, %v2402_v29 }
 0x1ea   : > { %v2369_v42 = vadd.f32 %v2368_v23, %v2367_v7  ;;  %v2405_v56 = vrot.slane %v2404_v39, 2 }
 0x1ec   : > { %v2370_v54 = vrot.slane %v2369_v42, 1  ;;  %v2406_v44 = vadd.f32 %v2405_v56, %v2404_v39 }
 0x1ee   : > { %v2407_v46 = vrot.slane %v2406_v44, 1  ;;  %v2371_v6 = vadd.f32 %v2370_v54, %v2369_v42 }
 0x1f0   : > { %v2408_v48 = vadd.f32 %v2407_v46, %v2406_v44 }
 0x1f2   : > { %v2410_v13 = vsel %vm2409_vm2, %v2371_v6, %v2408_v48 }
 0x1f3   : > { %v2412_v22 = vsel %vm2411_vm3, %v2410_v13, 0.0 }
 0x1f4   : > { %2413 = vst [vmem:[%s3697_s17] sm:$0xff] %v2412_v22 }
 0x1f5 PF: > { %s16_s1 = sadd.s32 1, %s3615_s1   ;;  %s4367_s18 = smov %s3607_s0 }
 0x1f6   : > { %p13_p12 = scmp.ge.s32.totalorder %s16_s1, 6   ;;  %s4368_s19 = smov %s3611_s20 }
 0x1f7   : > { %s4369_s0 = smov %s4372_s21  ;;  %s4370_s20 = smov %s4376_s22 }
 0x1f8   :  { %15 = sbr.rel (!%p13_p12) target bundleno = 3 (0x3), region = 198 }
 0x1ff   :  { %2468 = vsyncmov [#allocation3] }
 0x202   :  { %s2469_s9 = vpop.sfrf %2468 }
 0x203   :  { %p2885_p13 = scmp.ne.s32.totalorder %s2469_s9, 0 }
 0x205   :  { %2473 = shalt.err (%p2885_p13)  }
 0x206   :  { %2475 = vsyncmov [#allocation3 + $0x1] }
 0x209   :  { %s2476_s17 = vpop.sfrf %2475 }
 0x20a   :  { %p2886_p0 = scmp.ne.s32.totalorder %s2476_s17, 0 }
 0x20c   :  { %2480 = shalt.err (%p2886_p0)  }

// kernel: _lambda_.4
= control target key start
LH: loop header
LB: loop body
LE: loop exit
PB: predicated region body
PF: predicated region fallthrough
CT: control target
= control target key end

     0   :  { %s3969_s18 = smov 0   ;;  %s3971_s19 = smov 0   ;;  %s5329_s0 = inlined_call_operand.vmem [shape: f32[1,128], index: 0, kind: input, shape index: {}]   ;;  %s5330_s1 = inlined_call_operand.vmem [shape: f32[1,128], index: 1, kind: input, shape index: {}]   ;;  %s5331_s2 = inlined_call_operand.vmem [shape: bf16[9,128,128], index: 2, kind: input, shape index: {}]   ;;  %s5332_s3 = inlined_call_operand.vmem [shape: f32[2,18,18,128], index: 3, kind: input, shape index: {}]   ;;  %s5333_s4 = inlined_call_operand.vmem [shape: f32[2,16,16,128], index: 4, kind: output, shape index: {0}]   ;;  %s5334_s5 = inlined_call_operand.vmem [shape: f32[2,2,8,128], index: 5, kind: output, shape index: {1}]  }
   0x1   :  { %s3973_s20 = smov 0   ;;  %s3975_s21 = smov 0  }
   0x2   :  { %s3977_s22 = smov 0  }
   0x3 LB: > { %s25_s23 = sadd.s32 1, %s3929_s20  ;;  %s28_s24 = sadd.s32 1, %s3933_s21  ;;  %s3937_s22 = sphi %s3977_s22, %s16_s22   ;;  %s3933_s21 = sphi %s3975_s21, %s5498_s21   ;;  %s3929_s20 = sphi %s3973_s20, %s5497_s20   ;;  %s3925_s19 = sphi %s3971_s19, %s5496_s19   ;;  %s3921_s18 = sphi %s3969_s18, %s5495_s18  }
   0x4   : > { %p26_p0 = scmp.ge.s32.totalorder %s25_s23, 2  ;;  %p2845_p1 = scmp.ge.s32.totalorder %s3937_s22, 1 }
   0x5   : > { %p172_p2 = scmp.lt.s32.totalorder %s3937_s22, 5 }
   0x6   : > { %s5500_s23 = smov (%p26_p0, %s25_s23), 0  ;;  %s5502_s24 = smov (!%p26_p0, %s28_s24), %s3933_s21 }
   0x7   : > { %5371 = sst [smem:[#allocation7_spill]] %s5500_s23  ;;  %p173_p3 = pnand %p2845_p1, %p172_p2 }
   0x8   : > { %p30_p4 = scmp.ge.s32.totalorder %s5502_s24, 2 }
   0x9   : > { %176 = sbr.rel (%p173_p3) target bundleno = 527 (0x20f), region = 32 }
   0xa   : > { %s5504_s24 = smov (%p30_p4, %s5502_s24), 0 }
   0xb   : > { %5372 = sst [smem:[#allocation8_spill]] %s5504_s24 }
  0x10   : > { %s4004_s25 = sshll.u32 %s3921_s18, 3  ;;  %p207_p5 = scmp.lt.s32.totalorder %s3925_s19, 1 }
  0x11   : > { %p209_p6 = scmp.lt.s32.totalorder %s4004_s25, 15  ;;  %p219_p7 = scmp.lt.s32.totalorder %s3921_s18, 1 }
  0x12   : > { %s208_s26 = scalar_select %p207_p5, %s3925_s19, 1 }
  0x13   : > { %s210_s27 = scalar_select %p209_p6, %s4004_s25, 15 }
  0x14   : > { %s2848_s28 = sshll.u32 %s208_s26, 5  ;;  %s2850_s30 = sshll.u32 %s208_s26, 1 }
  0x15   : > { %s2847_s29 = sshll.u32 %s210_s27, 1  ;;  %s227_s7 = ssub.s32 0, %s3921_s18 }
  0x16   : > { %s213_s6 = sadd.s32 %s2848_s28, %s2847_s29  ;;  %s2852_s9 = smin.u32 %s3921_s18, %s227_s7 }
  0x17   : > { %s2849_s8 = sshll.u32 %s213_s6, 3  ;;  %s229_s13 = sand.u32 1, %s2852_s9  }
  0x18   : > { %s4016_s12 = scalar_lea.vmem %s5333_s4, %s2849_s8  ;;  %p226_p8 = scmp.lt.s32.totalorder %s3921_s18, 0 }
  0x19   : > { %s220_s14 = scalar_select %p219_p7, %s3921_s18, 1 }
  0x1a   : > { %s230_s16 = ssub.s32 0, %s229_s13  ;;  %p2855_p10 = scmp.ne.s32.totalorder %s3921_s18, 0 }
  0x1b   : > { %s222_s15 = sadd.s32 %s2850_s30, %s220_s14  ;;  %s5506_s16 = smov (!%p226_p8, %s230_s16), %s229_s13 }
  0x1c   : > { %s2851_s17 = sshll.u32 %s222_s15, 3  ;;  %p2854_p9 = scmp.lt.s32.totalorder %s5506_s16, 0 }
  0x1d   : > { %s4023_s27 = scalar_lea.vmem %s5334_s5, %s2851_s17  ;;  %s236_s26 = sadd.s32 2, %s5506_s16 }
  0x1e   : > { %s5508_s26 = smov (!%p2854_p9, %s236_s26), %s5506_s16  ;;  %241 = sbr.rel (%p2855_p10) target bundleno = 52 (0x34), region = 36 }
  0x1f   : > { %s242_s28 = smul.u32 (!%p2855_p10), 432, %s3925_s19  ;;  %s246_s24 = scalar_lea.sflag (!%p2855_p10), [#allocation3], %s5508_s26 }
  0x20   : > { %s244_s29 = smul.u32 (!%p2855_p10), 240, %s5508_s26 }
  0x21   : > { %s4033_s7 = scalar_lea.vmem (!%p2855_p10), %s5332_s3, %s242_s28 }
  0x22   : > { %v302_v0 = vld [vmem:[%s4033_s7] sm:$0xff] (!%p2855_p10)  ;;  %v304_v1 = vld [vmem:[%s4033_s7 + $0x8] sm:$0xff] (!%p2855_p10)  ;;  %v306_v2 = vld [vmem:[%s4033_s7 + $0x18] sm:$0xff] (!%p2855_p10)  ;;  %s4038_s23 = scalar_lea.vmem (!%p2855_p10), [#allocation2], %s244_s29 }
  0x23   : > { %303 = vst [vmem:[%s4038_s23] sm:$0xff] (!%p2855_p10), %v302_v0  ;;  %305 = vst [vmem:[%s4038_s23 + $0x8] sm:$0xff] (!%p2855_p10), %v304_v1  ;;  %v308_v3 = vld [vmem:[%s4033_s7 + $0x20] sm:$0xff] (!%p2855_p10)  ;;  %v310_v4 = vld [vmem:[%s4033_s7 + $0x30] sm:$0xff] (!%p2855_p10) }
  0x24   : > { %307 = vst [vmem:[%s4038_s23 + $0x18] sm:$0xff] (!%p2855_p10), %v306_v2  ;;  %v312_v5 = vld [vmem:[%s4033_s7 + $0x38] sm:$0xff] (!%p2855_p10)  ;;  %309 = vst [vmem:[%s4038_s23 + $0x20] sm:$0xff] (!%p2855_p10), %v308_v3  ;;  %v314_v6 = vld [vmem:[%s4033_s7 + $0x48] sm:$0xff] (!%p2855_p10) }
  0x25   : > { %311 = vst [vmem:[%s4038_s23 + $0x30] sm:$0xff] %v310_v4  ;;  %313 = vst [vmem:[%s4038_s23 + $0x38] sm:$0xff] %v312_v5  ;;  %v316_v7 = vld [vmem:[%s4033_s7 + $0x50] sm:$0xff]  ;;  %v318_v8 = vld [vmem:[%s4033_s7 + $0x60] sm:$0xff] }
  0x26   : > { %315 = vst [vmem:[%s4038_s23 + $0x48] sm:$0xff] %v314_v6  ;;  %317 = vst [vmem:[%s4038_s23 + $0x50] sm:$0xff] %v316_v7  ;;  %v320_v9 = vld [vmem:[%s4033_s7 + $0x68] sm:$0xff]  ;;  %v322_v10 = vld [vmem:[%s4033_s7 + $0x78] sm:$0xff] }
  0x27   : > { %319 = vst [vmem:[%s4038_s23 + $0x60] sm:$0xff] %v318_v8  ;;  %v324_v11 = vld [vmem:[%s4033_s7 + $0x80] sm:$0xff]  ;;  %321 = vst [vmem:[%s4038_s23 + $0x68] sm:$0xff] %v320_v9  ;;  %v326_v12 = vld [vmem:[%s4033_s7 + $0x90] sm:$0xff] }
  0x28   : > { %323 = vst [vmem:[%s4038_s23 + $0x78] sm:$0xff] %v322_v10  ;;  %325 = vst [vmem:[%s4038_s23 + $0x80] sm:$0xff] %v324_v11  ;;  %v328_v13 = vld [vmem:[%s4033_s7 + $0x98] sm:$0xff]  ;;  %v330_v14 = vld [vmem:[%s4033_s7 + $0xa8] sm:$0xff] }
  0x29   : > { %327 = vst [vmem:[%s4038_s23 + $0x90] sm:$0xff] %v326_v12  ;;  %329 = vst [vmem:[%s4038_s23 + $0x98] sm:$0xff] %v328_v13  ;;  %v332_v15 = vld [vmem:[%s4033_s7 + $0xb0] sm:$0xff]  ;;  %v334_v16 = vld [vmem:[%s4033_s7 + $0xc0] sm:$0xff] }
  0x2a   : > { %331 = vst [vmem:[%s4038_s23 + $0xa8] sm:$0xff] %v330_v14  ;;  %v336_v17 = vld [vmem:[%s4033_s7 + $0xc8] sm:$0xff]  ;;  %333 = vst [vmem:[%s4038_s23 + $0xb0] sm:$0xff] %v332_v15  ;;  %v338_v18 = vld [vmem:[%s4033_s7 + $0xd8] sm:$0xff] }
  0x2b   : > { %335 = vst [vmem:[%s4038_s23 + $0xc0] sm:$0xff] %v334_v16  ;;  %337 = vst [vmem:[%s4038_s23 + $0xc8] sm:$0xff] %v336_v17  ;;  %v340_v19 = vld [vmem:[%s4033_s7 + $0xe0] sm:$0xff]  ;;  %v2856_v20 = vld [vmem:[%s4033_s7 + $0x10] sm:$0x3] }
  0x2c   : > { %339 = vst [vmem:[%s4038_s23 + $0xd8] sm:$0xff] %v338_v18  ;;  %341 = vst [vmem:[%s4038_s23 + $0xe0] sm:$0xff] %v340_v19  ;;  %v2858_v21 = vld [vmem:[%s4033_s7 + $0x28] sm:$0x3]  ;;  %v2860_v22 = vld [vmem:[%s4033_s7 + $0x40] sm:$0x3] }
  0x2d   : > { %2857 = vst [vmem:[%s4038_s23 + $0x10] sm:$0x3] %v2856_v20  ;;  %v2862_v23 = vld [vmem:[%s4033_s7 + $0x58] sm:$0x3]  ;;  %2859 = vst [vmem:[%s4038_s23 + $0x28] sm:$0x3] %v2858_v21 }
  0x2e   : > { %2861 = vst [vmem:[%s4038_s23 + $0x40] sm:$0x3] %v2860_v22  ;;  %2863 = vst [vmem:[%s4038_s23 + $0x58] sm:$0x3] %v2862_v23  ;;  %v2864_v24 = vld [vmem:[%s4033_s7 + $0x70] sm:$0x3] }
  0x2f   : > { %v2866_v25 = vld [vmem:[%s4033_s7 + $0x88] sm:$0x3]  ;;  %v2868_v26 = vld [vmem:[%s4033_s7 + $0xa0] sm:$0x3]  ;;  %2865 = vst [vmem:[%s4038_s23 + $0x70] sm:$0x3] %v2864_v24 }
  0x30   : > { %2867 = vst [vmem:[%s4038_s23 + $0x88] sm:$0x3] %v2866_v25  ;;  %2869 = vst [vmem:[%s4038_s23 + $0xa0] sm:$0x3] %v2868_v26  ;;  %v2870_v27 = vld [vmem:[%s4033_s7 + $0xb8] sm:$0x3] }
  0x31   : > { %v2872_v28 = vld [vmem:[%s4033_s7 + $0xd0] sm:$0x3]  ;;  %v2874_v29 = vld [vmem:[%s4033_s7 + $0xe8] sm:$0x3]  ;;  %2871 = vst [vmem:[%s4038_s23 + $0xb8] sm:$0x3] %v2870_v27 }
  0x32   : > { %2873 = vst [vmem:[%s4038_s23 + $0xd0] sm:$0x3] %v2872_v28  ;;  %2875 = vst [vmem:[%s4038_s23 + $0xe8] sm:$0x3] %v2874_v29 }
  0x33   : > { %374 = vsyncadd %s246_s24, 2880 }
  0x34 PF: > { %s376_s8 = smul.u32 240, %s5508_s26  ;;  %s378_s10 = scalar_lea.sflag [#allocation3], %s5508_s26 }
  0x36   : > { %s4099_s9 = scalar_lea.vmem [#allocation2], %s376_s8 }
  0x37   : > { %3917 = dma.done.wait %s378_s10, 2880 }
  0x38   : > { %3918 = vsyncadd %s378_s10, 4294964416  ;;  %s383_s11 = sadd.s32 1, %s3921_s18 }
  0x39   : > { %p2877_p11 = scmp.ge.s32.totalorder %s383_s11, 2 }
  0x3a   : > { %s388_s13 = ssub.s32 (!%p2877_p11), 1, %s5508_s26  ;;  %s2754_s14 = smul.u32 (!%p2877_p11), 192, %s3921_s18 }
  0x3b   : > { %387 = sbr.rel (%p2877_p11) target bundleno = 82 (0x52), region = 77 }
  0x3c   : > { %s2755_s15 = smul.u32 (!%p2877_p11), 432, %s3925_s19  ;;  %s396_s19 = scalar_lea.sflag (!%p2877_p11), [#allocation3], %s388_s13 }
  0x3d   : > { %s394_s16 = smul.u32 (!%p2877_p11), 240, %s388_s13 }
  0x3e   : > { %s2756_s17 = sadd.s32 (!%p2877_p11), %s2755_s15, %s2754_s14 }
  0x3f   : > { %s4111_s30 = scalar_lea.vmem (!%p2877_p11), %s5332_s3, %s2756_s17  ;;  %s4116_s18 = scalar_lea.vmem (!%p2877_p11), [#allocation2], %s394_s16 }
  0x40   : > { %v2879_v30 = vld [vmem:[%s4111_s30 + $0xc0] sm:$0xff] (!%p2877_p11)  ;;  %v2880_v31 = vld [vmem:[%s4111_s30 + $0xc8] sm:$0xff] (!%p2877_p11)  ;;  %v2881_v32 = vld [vmem:[%s4111_s30 + $0xd8] sm:$0xff] (!%p2877_p11) }
  0x41   : > { %453 = vst [vmem:[%s4116_s18] sm:$0xff] (!%p2877_p11), %v2879_v30  ;;  %455 = vst [vmem:[%s4116_s18 + $0x8] sm:$0xff] (!%p2877_p11), %v2880_v31  ;;  %v2882_v33 = vld [vmem:[%s4111_s30 + $0xe0] sm:$0xff] (!%p2877_p11)  ;;  %v2883_v34 = vld [vmem:[%s4111_s30 + $0xf0] sm:$0xff] (!%p2877_p11) }
  0x42   : > { %457 = vst [vmem:[%s4116_s18 + $0x18] sm:$0xff] %v2881_v32  ;;  %v2884_v35 = vld [vmem:[%s4111_s30 + $0xf8] sm:$0xff]  ;;  %459 = vst [vmem:[%s4116_s18 + $0x20] sm:$0xff] %v2882_v33  ;;  %v2885_v36 = vld [vmem:[%s4111_s30 + $0x108] sm:$0xff] }
  0x43   : > { %461 = vst [vmem:[%s4116_s18 + $0x30] sm:$0xff] %v2883_v34  ;;  %463 = vst [vmem:[%s4116_s18 + $0x38] sm:$0xff] %v2884_v35  ;;  %v2886_v37 = vld [vmem:[%s4111_s30 + $0x110] sm:$0xff]  ;;  %v2887_v38 = vld [vmem:[%s4111_s30 + $0x120] sm:$0xff] }
  0x44   : > { %465 = vst [vmem:[%s4116_s18 + $0x48] sm:$0xff] %v2885_v36  ;;  %467 = vst [vmem:[%s4116_s18 + $0x50] sm:$0xff] %v2886_v37  ;;  %v2888_v39 = vld [vmem:[%s4111_s30 + $0x128] sm:$0xff]  ;;  %v2889_v40 = vld [vmem:[%s4111_s30 + $0x138] sm:$0xff] }
  0x45   : > { %469 = vst [vmem:[%s4116_s18 + $0x60] sm:$0xff] %v2887_v38  ;;  %v2890_v41 = vld [vmem:[%s4111_s30 + $0x140] sm:$0xff]  ;;  %471 = vst [vmem:[%s4116_s18 + $0x68] sm:$0xff] %v2888_v39  ;;  %v2891_v42 = vld [vmem:[%s4111_s30 + $0x150] sm:$0xff] }
  0x46   : > { %473 = vst [vmem:[%s4116_s18 + $0x78] sm:$0xff] %v2889_v40  ;;  %475 = vst [vmem:[%s4116_s18 + $0x80] sm:$0xff] %v2890_v41  ;;  %v2892_v43 = vld [vmem:[%s4111_s30 + $0x158] sm:$0xff]  ;;  %v2893_v44 = vld [vmem:[%s4111_s30 + $0x168] sm:$0xff] }
  0x47   : > { %477 = vst [vmem:[%s4116_s18 + $0x90] sm:$0xff] %v2891_v42  ;;  %479 = vst [vmem:[%s4116_s18 + $0x98] sm:$0xff] %v2892_v43  ;;  %v2894_v45 = vld [vmem:[%s4111_s30 + $0x170] sm:$0xff]  ;;  %v2895_v46 = vld [vmem:[%s4111_s30 + $0x180] sm:$0xff] }
  0x48   : > { %481 = vst [vmem:[%s4116_s18 + $0xa8] sm:$0xff] %v2893_v44  ;;  %v2896_v47 = vld [vmem:[%s4111_s30 + $0x188] sm:$0xff]  ;;  %483 = vst [vmem:[%s4116_s18 + $0xb0] sm:$0xff] %v2894_v45  ;;  %v2897_v48 = vld [vmem:[%s4111_s30 + $0x198] sm:$0xff] }
  0x49   : > { %485 = vst [vmem:[%s4116_s18 + $0xc0] sm:$0xff] %v2895_v46  ;;  %487 = vst [vmem:[%s4116_s18 + $0xc8] sm:$0xff] %v2896_v47  ;;  %v2898_v49 = vld [vmem:[%s4111_s30 + $0x1a0] sm:$0xff]  ;;  %v2899_v50 = vld [vmem:[%s4111_s30 + $0xd0] sm:$0x3] }
  0x4a   : > { %489 = vst [vmem:[%s4116_s18 + $0xd8] sm:$0xff] %v2897_v48  ;;  %491 = vst [vmem:[%s4116_s18 + $0xe0] sm:$0xff] %v2898_v49  ;;  %v2901_v51 = vld [vmem:[%s4111_s30 + $0xe8] sm:$0x3]  ;;  %v2903_v52 = vld [vmem:[%s4111_s30 + $0x100] sm:$0x3] }
  0x4b   : > { %2900 = vst [vmem:[%s4116_s18 + $0x10] sm:$0x3] %v2899_v50  ;;  %v2905_v53 = vld [vmem:[%s4111_s30 + $0x118] sm:$0x3]  ;;  %2902 = vst [vmem:[%s4116_s18 + $0x28] sm:$0x3] %v2901_v51 }
  0x4c   : > { %2904 = vst [vmem:[%s4116_s18 + $0x40] sm:$0x3] %v2903_v52  ;;  %2906 = vst [vmem:[%s4116_s18 + $0x58] sm:$0x3] %v2905_v53  ;;  %v2907_v54 = vld [vmem:[%s4111_s30 + $0x130] sm:$0x3] }
  0x4d   : > { %v2909_v55 = vld [vmem:[%s4111_s30 + $0x148] sm:$0x3]  ;;  %v2911_v56 = vld [vmem:[%s4111_s30 + $0x160] sm:$0x3]  ;;  %2908 = vst [vmem:[%s4116_s18 + $0x70] sm:$0x3] %v2907_v54 }
  0x4e   : > { %2910 = vst [vmem:[%s4116_s18 + $0x88] sm:$0x3] %v2909_v55  ;;  %2912 = vst [vmem:[%s4116_s18 + $0xa0] sm:$0x3] %v2911_v56  ;;  %v2913_v57 = vld [vmem:[%s4111_s30 + $0x178] sm:$0x3] }
  0x4f   : > { %v2915_v58 = vld [vmem:[%s4111_s30 + $0x190] sm:$0x3]  ;;  %v2917_v59 = vld [vmem:[%s4111_s30 + $0x1a8] sm:$0x3]  ;;  %2914 = vst [vmem:[%s4116_s18 + $0xb8] sm:$0x3] %v2913_v57 }
  0x50   : > { %2916 = vst [vmem:[%s4116_s18 + $0xd0] sm:$0x3] %v2915_v58  ;;  %2918 = vst [vmem:[%s4116_s18 + $0xe8] sm:$0x3] %v2917_v59 }
  0x51   : > { %524 = vsyncadd %s396_s19, 2880 }
  0x52 PF: > { %v3823_v60 = vld [vmem:[%s5331_s2 + $0x40] sm:$0xff]   ;;  %v3825_v62 = vld [vmem:[%s5331_s2 + $0x48] sm:$0xff]   ;;  %v3827_v0 = vld [vmem:[%s5331_s2 + $0x50] sm:$0xff]   ;;  %v669_v1 = vlaneseq  ;;  %v4204_v6 = vstv %s4004_s25  ;;  %vm5343_vm14 = vsmask.f32 7424 }
  0x53   : > { %v3824_v61 = vld [vmem:[%s5331_s2 + $0x100] sm:$0xff]   ;;  %3351 = vmatprep.subr.bf16.mxu1 %v3823_v60  ;;  %v3826_v63 = vld [vmem:[%s5331_s2 + $0x108] sm:$0xff]   ;;  %v3828_v2 = vld [vmem:[%s5331_s2 + $0x110] sm:$0xff]   ;;  %vm673_vm0 = vcmp.ge.s32.totalorder %v4204_v6, 1  ;;  %vm683_vm1 = vcmp.le.s32.totalorder %v4204_v6, 16  ;;  %v660_v10 = vadd.s32 1, %v4204_v6 }
  0x54   : > { %3479 = vmatprep.subr.bf16.mxu0 %v3824_v61  ;;  %3352 = vmatpush3.bf16.msra.mxu1 %v3823_v60  ;;  %v3829_v3 = vld [vmem:[%s5331_s2 + $0x58] sm:$0xff]   ;;  %v4198_v4 = vshrl.u32 %v669_v1, 7  ;;  %v3831_v7 = vld [vmem:[%s5331_s2 + $0x60] sm:$0xff]   ;;  %v3833_v11 = vld [vmem:[%s5331_s2 + $0x68] sm:$0xff]   ;;  %v4222_v12 = vadd.s32 2, %v4204_v6  ;;  %v4233_v17 = vadd.s32 3, %v4204_v6 }
  0x55   : > { %3480 = vmatpush3.bf16.msra.mxu0 %v3824_v61  ;;  %3353 = vmatprep.subr.bf16.mxu1 %v3825_v62  ;;  %v3830_v5 = vld [vmem:[%s5331_s2 + $0x118] sm:$0xff]   ;;  %v3832_v9 = vld [vmem:[%s5331_s2 + $0x120] sm:$0xff]   ;;  %v3834_v13 = vld [vmem:[%s5331_s2 + $0x128] sm:$0xff]   ;;  %vm674_vm5 = vcmp.ge.s32.totalorder %v660_v10, 1  ;;  %vm684_vm6 = vcmp.le.s32.totalorder %v660_v10, 16  ;;  %v4277_v31 = vadd.s32 4, %v4204_v6 }
  0x56   : > { %3481 = vmatprep.subr.bf16.mxu0 %v3826_v63  ;;  %5373 = vst [vmem:[#allocation9_spill] sm:$0xff] %v4198_v4  ;;  %v4212_v8 = vadd.s32 16, %v4198_v4  ;;  %vm5349_vm2 = vcmp.ge.s32.totalorder %v4198_v4, 1  ;;  %v4238_v18 = vld [vmem:[%s5329_s0] ss:$0 sm:$0xff]  ;;  %vm4249_vm4 = vmand %vm673_vm0, %vm683_vm1  ;;  %v4256_v21 = vld [vmem:[%s5331_s2 + $0x70] sm:$0xff]  }
  0x57   : > { %v4243_v19 = vld [vmem:[%s5330_s1] ss:$0 sm:$0xff]  ;;  %vm675_vm7 = vcmp.ge.s32.totalorder %v4222_v12, 1  ;;  %vm4268_vm8 = vmand %vm4249_vm4, %vm5349_vm2  ;;  %vm685_vm9 = vcmp.le.s32.totalorder %v4222_v12, 16  ;;  %v3836_v32 = vld [vmem:[%s5331_s2 + $0x130] sm:$0xff]   ;;  %vm676_vm11 = vcmp.ge.s32.totalorder %v4233_v17, 1 }
  0x58   : > { %3354 = vmatpush3.bf16.msra.mxu1 %v3825_v62  ;;  %vm5348_vm3 = vcmp.le.s32.totalorder %v4212_v8, 16  ;;  %v529_v26 = vld [vmem:[%s4099_s9 + $0x20] sm:$0xff]  ;;  %vm4291_vm10 = vmand %vm674_vm5, %vm684_vm6  ;;  %vm686_vm12 = vcmp.le.s32.totalorder %v4233_v17, 16  ;;  %v4298_v37 = vadd.s32 5, %v4204_v6  ;;  %v531_v42 = vld [vmem:[%s4099_s9 + $0x30] sm:$0xff]  ;;  %v4318_v44 = vadd.s32 6, %v4204_v6 }
  0x59   : > { %3482 = vmatpush3.bf16.msra.mxu0 %v3826_v63  ;;  %3355 = vmatprep.subr.bf16.mxu1 %v3827_v0  ;;  %v525_v14 = vld [vmem:[%s4099_s9] sm:$0xff]  ;;  %v526_v15 = vld [vmem:[%s4099_s9 + $0x8] sm:$0xff]  ;;  %v527_v16 = vld [vmem:[%s4099_s9 + $0x10] sm:$0x3]  ;;  %v566_v30 = vmul.f32 %v4238_v18, %v529_v26  ;;  %v568_v51 = vmul.f32 %v4238_v18, %v531_v42  ;;  %vm677_vm5 = vcmp.ge.s32.totalorder %v4277_v31, 1  ;;  %vm687_vm6 = vcmp.le.s32.totalorder %v4277_v31, 16 }
  0x5a   : > { %3483 = vmatprep.subr.bf16.mxu0 %v3828_v2  ;;  %v562_v22 = vmul.f32 %v4238_v18, %v525_v14  ;;  %v563_v23 = vmul.f32 %v4238_v18, %v526_v15  ;;  %v564_v24 = vmul.f32 %v4238_v18, %v527_v16  ;;  %v528_v25 = vld [vmem:[%s4099_s9 + $0x18] sm:$0xff]  ;;  %v530_v28 = vld [vmem:[%s4099_s9 + $0x28] sm:$0x3]  ;;  %vm4304_vm13 = vmand %vm4249_vm4, %vm5348_vm3  ;;  %v4392_v10 = vadd.s32 7, %v4204_v6 }
  0x5b   : > { %v565_v29 = vmul.f32 %v4238_v18, %v528_v25  ;;  %v567_v39 = vmul.f32 %v4238_v18, %v530_v28  ;;  %v4313_v41 = vadd.f32 %v4243_v19, %v566_v30  ;;  %v532_v43 = vld [vmem:[%s4099_s9 + $0x38] sm:$0xff]  ;;  %vm4329_vm15 = vmand %vm4291_vm10, %vm5349_vm2  ;;  %v533_v50 = vld [vmem:[%s4099_s9 + $0x40] sm:$0x3] }
  0x5c   : > { %3356 = vmatpush3.bf16.msra.mxu1 %v3827_v0  ;;  %v4283_v33 = vadd.f32 %v4243_v19, %v562_v22  ;;  %v4286_v34 = vadd.f32 %v4243_v19, %v563_v23  ;;  %v601_v35 = vadd.f32 %v4243_v19, %v564_v24  ;;  %v3837_v45 = vld [vmem:[%s5331_s2 + $0x78] sm:$0xff]   ;;  %v569_v55 = vmul.f32 %v4238_v18, %v532_v43  ;;  %vm4357_vm0 = vmand %vm4291_vm10, %vm5348_vm3  ;;  %v4403_v15 = vld [vmem:[%s5331_s2] sm:$0xff]  }
  0x5d   : > { %3484 = vmatpush3.bf16.msra.mxu0 %v3828_v2  ;;  %3357 = vmatprep.subr.bf16.mxu1 %v3829_v3  ;;  %v4310_v40 = vadd.f32 %v4243_v19, %v565_v29  ;;  %v604_v52 = vadd.f32 %v4243_v19, %v567_v39  ;;  %v5341_v54 = vmax.f32 %v4313_v41, 0.0  ;;  %v3838_v56 = vld [vmem:[%s5331_s2 + $0x138] sm:$0xff]   ;;  %v570_v61 = vmul.f32 %v4238_v18, %v533_v50  ;;  %vm4374_vm1 = vmand %vm675_vm7, %vm685_vm9  ;;  %v535_v25 = vld [vmem:[%s4099_s9 + $0x50] sm:$0xff] }
  0x5e   : > { %3485 = vmatprep.subr.bf16.mxu0 %v3830_v5  ;;  %v5346_v46 = vmax.f32 %v4283_v33, 0.0  ;;  %v5344_v47 = vmax.f32 %v4286_v34, 0.0  ;;  %v631_v48 = vmax.f32 %v601_v35, 0.0  ;;  %vm4415_vm7 = vmand %vm4374_vm1, %vm5349_vm2  ;;  %v3886_v36 = vld [vmem:[%s5331_s2 + $0x1f8] sm:$0xff]  }
  0x5f   : > { %v5342_v53 = vmax.f32 %v4310_v40, 0.0  ;;  %v634_v0 = vmax.f32 %v604_v52, 0.0  ;;  %vm4425_vm9 = vmand %vm4374_vm1, %vm5348_vm3  ;;  %v554_v49 = vld [vmem:[%s4099_s9 + $0xe8] sm:$0x3] }
  0x60   : > { %3358 = vmatpush3.bf16.msra.mxu1 %v3829_v3  ;;  %v769_v57 = vsel %vm4268_vm8, %v5346_v46, 0.0  ;;  %v770_v58 = vsel %vm4249_vm4, %v5344_v47, 0.0  ;;  %v771_v59 = vsel %vm4304_vm13, %v631_v48, 0.0  ;;  %v773_v3 = vsel %vm4291_vm10, %v5341_v54, 0.0  ;;  %v536_v48 = vld [vmem:[%s4099_s9 + $0x58] sm:$0x3]  ;;  %vm4452_vm13 = vmand %vm676_vm11, %vm686_vm12 }
  0x61   : > { %3486 = vmatpush3.bf16.msra.mxu0 %v3830_v5  ;;  %3359 = vmatprep.subr.bf16.mxu1 %v3831_v7  ;;  %v4362_v62 = vpack.c.bf16 %v770_v58, %v769_v57  ;;  %v4364_v63 = vpack.c.bf16 %v771_v59, %v771_v59  ;;  %v772_v1 = vsel %vm4329_vm15, %v5342_v53, 0.0  ;;  %v4385_v5 = vadd.f32 %v4243_v19, %v568_v51  ;;  %vm4480_vm11 = vmand %vm4452_vm13, %vm5349_vm2 }
  0x62   : > { %3487 = vmatprep.subr.bf16.mxu0 %v3832_v9  ;;  %v774_v14 = vsel %vm4357_vm0, %v634_v0, 0.0  ;;  %v4405_v16 = vpack.c.bf16 %v773_v3, %v772_v1  ;;  %v538_v0 = vld [vmem:[%s4099_s9 + $0x68] sm:$0xff]  ;;  %vm4495_vm12 = vmand %vm4452_vm13, %vm5348_vm3  ;;  %v5408_v53 = vmov 0 }
  0x63   : > { %v839_v12 = vshll.u32 %v4362_v62, 16  ;;  %v4407_v22 = vpack.c.bf16 %v774_v14, %v774_v14  ;;  %v5340_v23 = vmax.f32 %v4385_v5, 0.0  ;;  %vm4508_vm0 = vmand %vm677_vm5, %vm687_vm6  ;;  %v1265_v2 = vrot.slane %v4364_v63, 1 }
  0x64   : > { %3360 = vmatpush3.bf16.msra.mxu1 %v3831_v7  ;;  %v4388_v7 = vadd.f32 %v4243_v19, %v569_v55  ;;  %v849_v38 = vshrl.u32 %v4405_v16, 16  ;;  %v851_v39 = vshll.u32 %v4405_v16, 16  ;;  %v572_v55 = vmul.f32 %v4238_v18, %v535_v25  ;;  %vm4546_vm5 = vmand %vm4508_vm0, %vm5349_vm2 }
  0x65   : > { %3488 = vmatpush3.bf16.msra.mxu0 %v3832_v9  ;;  %3361 = vmatprep.subr.bf16.mxu1 %v3833_v11  ;;  %v534_v9 = vld [vmem:[%s4099_s9 + $0x48] sm:$0xff]  ;;  %v841_v26 = vrot.slane %v839_v12, 1  ;;  %v856_v42 = vshll.u32 %v4407_v22, 16  ;;  %v775_v51 = vsel %vm4415_vm7, %v5340_v23, 0.0  ;;  %vm4562_vm6 = vmand %vm4508_vm0, %vm5348_vm3  ;;  %v543_v23 = vld [vmem:[%s4099_s9 + $0x90] sm:$0xff]  ;;  %v1268_v27 = vrot.slane %v4407_v22, 1 }
  0x66   : > { %3489 = vmatprep.subr.bf16.mxu0 %v3834_v13  ;;  %v5339_v29 = vmax.f32 %v4388_v7, 0.0  ;;  %v571_v35 = vmul.f32 %v4238_v18, %v534_v9  ;;  %v853_v58 = vrot.slane %v851_v39, 1  ;;  %v540_v39 = vld [vmem:[%s4099_s9 + $0x78] sm:$0xff] }
  0x67   : > { %v858_v59 = vrot.slane %v856_v42, 1 }
  0x68   : > { %3362 = vmatpush3.bf16.msra.mxu1 %v3833_v11  ;;  %v837_v11 = vshrl.u32 %v4362_v62, 16  ;;  %v776_v52 = vsel %vm4374_vm1, %v5339_v29, 0.0  ;;  %v4469_v3 = vadd.f32 %v4243_v19, %v571_v35  ;;  %v854_v9 = vor.u32 %v853_v58, %v849_v38  ;;  %v3843_v58 = vld [vmem:[%s5331_s2 + $0x10] sm:$0xff]  }
  0x69   : > { %3490 = vmatpush3.bf16.msra.mxu0 %v3834_v13  ;;  %3363 = vmatprep.subr.bf16.mxu1 %v4256_v21  ;;  %v844_v13 = vshll.u32 %v4364_v63, 16 }
  0x6a   : > { %3491 = vmatprep.subr.bf16.mxu0 %v3836_v32  ;;  %v842_v50 = vor.u32 %v841_v26, %v837_v11  ;;  %v3841_v26 = vld [vmem:[%s5331_s2 + $0x8] sm:$0xff]   ;;  %v5338_v30 = vmax.f32 %v4469_v3, 0.0  ;;  %v859_v42 = vsel %vm5343_vm14, %v854_v9, %v858_v59  ;;  %v541_v9 = vld [vmem:[%s4099_s9 + $0x80] sm:$0xff] }
  0x6b   : > { %v846_v28 = vrot.slane %v844_v13, 1  ;;  %v4474_v13 = vadd.f32 %v4243_v19, %v572_v55  ;;  %3495 = vmatprep.mubr.bf16.mxu0 %v859_v42  ;;  %v3842_v55 = vld [vmem:[%s5331_s2 + $0x148] sm:$0xff]  }
  0x6c   : > { %3364 = vmatpush3.bf16.msra.mxu1 %v4256_v21  ;;  %v607_v21 = vadd.f32 %v4243_v19, %v570_v61  ;;  %v4460_v61 = vpack.c.bf16 %v776_v52, %v775_v51  ;;  %v778_v31 = vsel %vm4480_vm11, %v5338_v30, 0.0 }
  0x6d   : > { %3492 = vmatpush3.bf16.msra.mxu0 %v3836_v32  ;;  %3365 = vmatprep.subr.bf16.mxu1 %v3837_v45  ;;  %v4432_v32 = vld [vmem:[%s5331_s2 + $0x140] sm:$0xff]   ;;  %v847_v1 = vsel %vm5343_vm14, %v842_v50, %v846_v28  ;;  %v575_v50 = vmul.f32 %v4238_v18, %v538_v0 }
  0x6e   : > { %3493 = vmatprep.subr.bf16.mxu0 %v3838_v56  ;;  %v637_v43 = vmax.f32 %v607_v21, 0.0  ;;  %3367 = vmatprep.mubr.bf16.mxu1 %v847_v1  ;;  %v861_v11 = vshrl.u32 %v4460_v61, 16  ;;  %v863_v12 = vshll.u32 %v4460_v61, 16  ;;  %v539_v21 = vld [vmem:[%s4099_s9 + $0x70] sm:$0x3] }
  0x6f   : > { %v576_v59 = vmul.f32 %v4238_v18, %v539_v21 }
  0x70   : > { %3366 = vmatpush3.bf16.msra.mxu1 %v3837_v45  ;;  %v537_v45 = vld [vmem:[%s4099_s9 + $0x60] sm:$0xff]  ;;  %v777_v60 = vsel %vm4425_vm9, %v637_v43, 0.0  ;;  %v865_v43 = vrot.slane %v863_v12, 1  ;;  %vm678_vm9 = vcmp.ge.s32.totalorder %v4298_v37, 1  ;;  %v542_v12 = vld [vmem:[%s4099_s9 + $0x88] sm:$0x3] }
  0x71   : > { %3494 = vmatpush3.bf16.msra.mxu0 %v3838_v56  ;;  %3383 = vmatprep.subr.bf16.mxu1 %v4403_v15  ;;  %v4464_v17 = vpack.c.bf16 %v777_v60, %v777_v60  ;;  %v573_v56 = vmul.f32 %v4238_v18, %v536_v48  ;;  %v574_v38 = vmul.f32 %v4238_v18, %v537_v45  ;;  %v5337_v48 = vmax.f32 %v4474_v13, 0.0 }
  0x72   : > { %3511 = vmatprep.subr.bf16.mxu0 %v4432_v32  ;;  %v866_v60 = vor.u32 %v865_v43, %v861_v11 }
  0x73   : > { %v868_v25 = vshll.u32 %v4464_v17, 16  ;;  %v610_v28 = vadd.f32 %v4243_v19, %v573_v56  ;;  %3368 = vmatmul.mubr.bf16.vlgmr.msra.gmra.mrb[0].mxu1 %v859_v42  ;;  %v779_v0 = vsel %vm4452_vm13, %v5337_v48, 0.0  ;;  %v4530_v1 = vadd.f32 %v4243_v19, %v574_v38 }
  0x74   : > { %3384 = vmatpush3.bf16.msra.mxu1 %v4403_v15  ;;  %v4533_v56 = vadd.f32 %v4243_v19, %v575_v50  ;;  %v4539_v11 = vpack.c.bf16 %v779_v0, %v778_v31  ;;  %v613_v15 = vadd.f32 %v4243_v19, %v576_v59  ;;  %v578_v31 = vmul.f32 %v4238_v18, %v541_v9  ;;  %v3844_v9 = vld [vmem:[%s5331_s2 + $0x150] sm:$0xff]  }
  0x75   : > { %v870_v52 = vrot.slane %v868_v25, 1  ;;  %v640_v45 = vmax.f32 %v610_v28, 0.0  ;;  %3385 = vmatprep.subr.bf16.mxu1 %v3841_v26  ;;  %v577_v28 = vmul.f32 %v4238_v18, %v540_v39  ;;  %v5335_v35 = vmax.f32 %v4530_v1, 0.0 }
  0x76   : > { %v5336_v43 = vmax.f32 %v4533_v56, 0.0  ;;  %v873_v39 = vshrl.u32 %v4539_v11, 16  ;;  %v4598_v29 = vadd.f32 %v4243_v19, %v578_v31  ;;  %v3847_v31 = vld [vmem:[%s5331_s2 + $0x20] sm:$0xff]   ;;  %v1271_v22 = vrot.slane %v4464_v17, 1 }
  0x77   : > { %v780_v21 = vsel %vm4495_vm12, %v640_v45, 0.0  ;;  %v4552_v38 = vsel %vm5343_vm14, %v866_v60, %v870_v52  ;;  %v875_v52 = vshll.u32 %v4539_v11, 16  ;;  %v643_v45 = vmax.f32 %v613_v15, 0.0 }
  0x78   : > { %5402 = vst [vmem:[#allocation10_spill] sm:$0xff] %v4552_v38  ;;  %v4554_v42 = vpack.c.bf16 %v780_v21, %v780_v21  ;;  %3496 = vmatmul.mubr.bf16.vlgmr.msra.gmra.mrb[0].mxu0 %v4552_v38  ;;  %3371 = vmatprep.mubr.bf16.mxu1 %v4552_v38  ;;  %v781_v60 = vsel %vm4546_vm5, %v5335_v35, 0.0  ;;  %v782_v0 = vsel %vm4508_vm0, %v5336_v43, 0.0  ;;  %v4593_v43 = vadd.f32 %v4243_v19, %v577_v28  ;;  %v3846_v28 = vld [vmem:[%s5331_s2 + $0x158] sm:$0xff]  }
  0x79   : > { %3512 = vmatpush3.bf16.msra.mxu0 %v4432_v32  ;;  %3386 = vmatpush3.bf16.msra.mxu1 %v3841_v26  ;;  %v3845_v32 = vld [vmem:[%s5331_s2 + $0x18] sm:$0xff]   ;;  %v579_v26 = vmul.f32 %v4238_v18, %v542_v12  ;;  %v877_v21 = vrot.slane %v875_v52, 1  ;;  %v783_v15 = vsel %vm4562_vm6, %v643_v45, 0.0  ;;  %v4590_v35 = vpack.c.bf16 %v782_v0, %v781_v60  ;;  %5406 = vst [vmem:[#allocation12_spill] sm:$0xff] %v4598_v29  ;;  %v545_v60 = vld [vmem:[%s4099_s9 + $0xa0] sm:$0x3] }
  0x7a   : > { %v880_v59 = vshll.u32 %v4554_v42, 16  ;;  %3513 = vmatprep.subr.bf16.mxu0 %v3842_v55  ;;  %3387 = vmatprep.subr.bf16.mxu1 %v3843_v58  ;;  %5405 = vst [vmem:[#allocation11_spill] sm:$0xff] %v4593_v43  ;;  %v4595_v30 = vpack.c.bf16 %v783_v15, %v783_v15  ;;  %v544_v52 = vld [vmem:[%s4099_s9 + $0x98] sm:$0xff]  ;;  %vm688_vm12 = vcmp.le.s32.totalorder %v4298_v37, 16  ;;  %v5448_v17 = vmax.f32 %v4388_v7, 0.0  ;;  %v3859_v7 = vld [vmem:[%s5331_s2 + $0x90] sm:$0xff]  }
  0x7b   : > { %v616_v12 = vadd.f32 %v4243_v19, %v579_v26  ;;  %v878_v54 = vor.u32 %v877_v21, %v873_v39  ;;  %v885_v50 = vshrl.u32 %v4590_v35, 16  ;;  %v887_v45 = vshll.u32 %v4590_v35, 16  ;;  %vm4621_vm6 = vmand %vm678_vm9, %vm688_vm12 }
  0x7c   : > { %v882_v48 = vrot.slane %v880_v59, 1  ;;  %v5347_v59 = vmax.f32 %v4593_v43, 0.0  ;;  %v892_v0 = vshll.u32 %v4595_v30, 16  ;;  %v5345_v39 = vmax.f32 %v4598_v29, 0.0  ;;  %vm756_vm12 = vmand %vm4621_vm6, %vm5348_vm3 }
  0x7d   : > { %3514 = vmatpush3.bf16.msra.mxu0 %v3842_v55  ;;  %3388 = vmatpush3.bf16.msra.mxu1 %v3843_v58  ;;  %v646_v26 = vmax.f32 %v616_v12, 0.0  ;;  %v889_v15 = vrot.slane %v887_v45, 1  ;;  %v5409_v53 = vsel %vm4621_vm6, 4294967295, %v5408_v53  ;;  %v580_v55 = vmul.f32 %v4238_v18, %v543_v23  ;;  %v546_v12 = vld [vmem:[%s4099_s9 + $0xa8] sm:$0xff] }
  0x7e   : > { %v4617_v21 = vsel %vm5343_vm14, %v878_v54, %v882_v48  ;;  %3515 = vmatprep.subr.bf16.mxu0 %v3844_v9  ;;  %3389 = vmatprep.subr.bf16.mxu1 %v3845_v32  ;;  %v581_v58 = vmul.f32 %v4238_v18, %v544_v52  ;;  %v894_v54 = vrot.slane %v892_v0, 1  ;;  %vm4634_vm14 = vmand %vm4621_vm6, %vm5349_vm2  ;;  %v785_v23 = vsel %vm4621_vm6, %v5345_v39, 0.0  ;;  %v547_v52 = vld [vmem:[%s4099_s9 + $0xb0] sm:$0xff] }
  0x7f   : > { %5407 = vst [vmem:[#allocation13_spill] sm:$0xff] %v4617_v21  ;;  %3499 = vmatprep.mubr.bf16.mxu0 %v4617_v21  ;;  %3372 = vmatmul.mubr.bf16.gmra.mrb[4].mxu1 %v4617_v21  ;;  %v582_v48 = vmul.f32 %v4238_v18, %v545_v60  ;;  %vm679_vm9 = vcmp.ge.s32.totalorder %v4318_v44, 1  ;;  %v890_v45 = vor.u32 %v889_v15, %v885_v50  ;;  %v784_v0 = vsel %vm4634_vm14, %v5347_v59, 0.0  ;;  %v3848_v50 = vld [vmem:[%s5331_s2 + $0x160] sm:$0xff]   ;;  %v3849_v15 = vld [vmem:[%s5331_s2 + $0x28] sm:$0xff]  }
  0x80   : > { %v4654_v47 = vadd.f32 %v4243_v19, %v580_v55  ;;  %v4657_v60 = vadd.f32 %v4243_v19, %v581_v58  ;;  %v786_v39 = vsel %vm756_vm12, %v646_v26, 0.0  ;;  %v4665_v46 = vpack.c.bf16 %v785_v23, %v784_v0  ;;  %v548_v55 = vld [vmem:[%s4099_s9 + $0xb8] sm:$0x3] }
  0x81   : > { %3516 = vmatpush3.bf16.msra.mxu0 %v3844_v9  ;;  %3390 = vmatpush3.bf16.msra.mxu1 %v3845_v32  ;;  %v619_v59 = vadd.f32 %v4243_v19, %v582_v48  ;;  %vm689_vm3 = vcmp.le.s32.totalorder %v4318_v44, 16  ;;  %vm5414_vm2 = vsmask.f32 7424  ;;  %v4673_v21 = vpack.c.bf16 %v786_v39, %v786_v39 }
  0x82   : > { %5412 = vst [vmem:[#allocation14_spill] sm:$0xff] %v4654_v47  ;;  %5413 = vst [vmem:[#allocation15_spill] sm:$0xff] %v4657_v60  ;;  %v4671_v58 = vsel %vm5414_vm2, %v890_v45, %v894_v54  ;;  %3517 = vmatprep.subr.bf16.mxu0 %v3846_v28  ;;  %3391 = vmatprep.subr.bf16.mxu1 %v3847_v31  ;;  %v5356_v38 = vmax.f32 %v4654_v47, 0.0  ;;  %v5357_v9 = vmax.f32 %v4657_v60, 0.0  ;;  %v5416_v32 = vmov 0  ;;  %v3850_v47 = vld [vmem:[%s5331_s2 + $0x168] sm:$0xff]  }
  0x83   : > { %5415 = vst [vmem:[#allocation16_spill] sm:$0xff] %v4671_v58  ;;  %vm4679_vm12 = vmand %vm679_vm9, %vm689_vm3  ;;  %3500 = vmatmul.mubr.bf16.gmra.mrb[4].mxu0 %v4671_v58  ;;  %3375 = vmatprep.mubr.bf16.mxu1 %v4671_v58  ;;  %v897_v26 = vshrl.u32 %v4665_v46, 16  ;;  %v899_v39 = vshll.u32 %v4665_v46, 16  ;;  %v649_v54 = vmax.f32 %v619_v59, 0.0  ;;  %vm5419_vm2 = vcmp.ge.s32.totalorder %v4198_v4, 1  ;;  %v549_v60 = vld [vmem:[%s4099_s9 + $0xc0] sm:$0xff] }
  0x84   : > { %v5417_v32 = vsel %vm4679_vm12, 4294967295, %v5416_v32  ;;  %vm4691_vm6 = vmand %vm4679_vm12, %vm5419_vm2  ;;  %v5420_v44 = vmov 0  ;;  %v583_v23 = vmul.f32 %v4238_v18, %v546_v12  ;;  %v904_v48 = vshll.u32 %v4673_v21, 16 }
  0x85   : > { %5418 = vst [vmem:[#allocation17_spill] sm:$0xff] %v5417_v32  ;;  %v5421_v44 = vsel %vm4691_vm6, 4294967295, %v5420_v44  ;;  %vm5423_vm3 = vcmp.le.s32.totalorder %v4212_v8, 16  ;;  %v787_v59 = vsel %vm4691_vm6, %v5356_v38, 0.0  ;;  %v788_v45 = vsel %vm4679_vm12, %v5357_v9, 0.0  ;;  %3518 = vmatpush3.bf16.msra.mxu0 %v3846_v28  ;;  %3392 = vmatpush3.bf16.msra.mxu1 %v3847_v31  ;;  %v3851_v9 = vld [vmem:[%s5331_s2 + $0x30] sm:$0xff]  }
  0x86   : > { %5422 = vst [vmem:[#allocation18_spill] sm:$0xff] %v5421_v44  ;;  %vm759_vm9 = vmand %vm4679_vm12, %vm5423_vm3  ;;  %v584_v0 = vmul.f32 %v4238_v18, %v547_v52  ;;  %v901_v12 = vrot.slane %v899_v39, 1  ;;  %v4710_v29 = vpack.c.bf16 %v788_v45, %v787_v59  ;;  %v585_v38 = vmul.f32 %v4238_v18, %v548_v55  ;;  %3519 = vmatprep.subr.bf16.mxu0 %v3848_v50  ;;  %v550_v39 = vld [vmem:[%s4099_s9 + $0xc8] sm:$0xff]  ;;  %v551_v44 = vld [vmem:[%s4099_s9 + $0xd0] sm:$0x3] }
  0x87   : > { %v789_v58 = vsel %vm759_vm9, %v649_v54, 0.0  ;;  %v906_v52 = vrot.slane %v904_v48, 1  ;;  %3393 = vmatprep.subr.bf16.mxu1 %v3849_v15  ;;  %v4723_v28 = vadd.f32 %v4243_v19, %v583_v23  ;;  %vm680_vm2 = vcmp.ge.s32.totalorder %v4392_v10, 1 }
  0x88   : > { %v4720_v32 = vpack.c.bf16 %v789_v58, %v789_v58  ;;  %v4726_v31 = vadd.f32 %v4243_v19, %v584_v0  ;;  %v902_v54 = vor.u32 %v901_v12, %v897_v26  ;;  %v909_v55 = vshrl.u32 %v4710_v29, 16  ;;  %v3853_v12 = vld [vmem:[%s5331_s2 + $0x38] sm:$0xff]  }
  0x89   : > { %v911_v59 = vshll.u32 %v4710_v29, 16  ;;  %v622_v45 = vadd.f32 %v4243_v19, %v585_v38  ;;  %v5366_v48 = vmax.f32 %v4723_v28, 0.0  ;;  %vm5424_vm3 = vsmask.f32 7424  ;;  %3520 = vmatpush3.bf16.msra.mxu0 %v3848_v50  ;;  %3394 = vmatpush3.bf16.msra.mxu1 %v3849_v15  ;;  %v3852_v38 = vld [vmem:[%s5331_s2 + $0x170] sm:$0xff]  }
  0x8a   : > { %v916_v58 = vshll.u32 %v4720_v32, 16  ;;  %v5364_v43 = vmax.f32 %v4726_v31, 0.0  ;;  %v4738_v23 = vsel %vm5424_vm3, %v902_v54, %v906_v52  ;;  %vm690_vm9 = vcmp.le.s32.totalorder %v4392_v10, 16  ;;  %3521 = vmatprep.subr.bf16.mxu0 %v3850_v47  ;;  %3395 = vmatprep.subr.bf16.mxu1 %v3851_v9 }
  0x8b   : > { %5425 = vst [vmem:[#allocation19_spill] sm:$0xff] %v4738_v23  ;;  %v913_v0 = vrot.slane %v911_v59, 1  ;;  %v652_v26 = vmax.f32 %v622_v45, 0.0  ;;  %3503 = vmatprep.mubr.bf16.mxu0 %v4738_v23  ;;  %3376 = vmatmul.mubr.bf16.gmra.mrb[8].mxu1 %v4738_v23  ;;  %vm4749_vm3 = vmand %vm680_vm2, %vm690_vm9  ;;  %v5426_v54 = vmov 0  ;;  %v586_v50 = vmul.f32 %v4238_v18, %v549_v60 }
  0x8c   : > { %v918_v52 = vrot.slane %v916_v58, 1  ;;  %v5427_v54 = vsel %vm4749_vm3, 4294967295, %v5426_v54  ;;  %v587_v10 = vmul.f32 %v4238_v18, %v550_v39  ;;  %v588_v15 = vmul.f32 %v4238_v18, %v551_v44  ;;  %v5466_v37 = vld [vmem:[#allocation17_spill] sm:$0xff] }
  0x8d   : > { %v914_v59 = vor.u32 %v913_v0, %v909_v55  ;;  %vm5428_vm12 = vcmp.ge.s32.totalorder %v4198_v4, 1  ;;  %v5429_v45 = vmov 0  ;;  %v791_v58 = vsel %vm4749_vm3, %v5364_v43, 0.0  ;;  %3522 = vmatpush3.bf16.msra.mxu0 %v3850_v47  ;;  %3396 = vmatpush3.bf16.msra.mxu1 %v3851_v9  ;;  %v3855_v47 = vld [vmem:[%s5331_s2 + $0x80] sm:$0xff]  }
  0x8e   : > { %vm4760_vm6 = vmand %vm4749_vm3, %vm5428_vm12  ;;  %v667_v60 = vadd.s32 8, %v4204_v6  ;;  %vm5431_vm2 = vcmp.le.s32.totalorder %v4212_v8, 16  ;;  %v4778_v44 = vadd.f32 %v4243_v19, %v586_v50  ;;  %v4781_v39 = vadd.f32 %v4243_v19, %v587_v10  ;;  %3523 = vmatprep.subr.bf16.mxu0 %v3852_v38  ;;  %3397 = vmatprep.subr.bf16.mxu1 %v3853_v12 }
  0x8f   : > { %v5430_v45 = vsel %vm4760_vm6, 4294967295, %v5429_v45  ;;  %vm762_vm9 = vmand %vm4749_vm3, %vm5431_vm2  ;;  %v790_v18 = vsel %vm4760_vm6, %v5366_v48, 0.0  ;;  %v625_v55 = vadd.f32 %v4243_v19, %v588_v15  ;;  %vm5432_vm12 = vsmask.f32 7424  ;;  %v3854_v19 = vld [vmem:[%s5331_s2 + $0x178] sm:$0xff]  }
  0x90   : > { %v4785_v0 = vsel %vm5432_vm12, %v914_v59, %v918_v52  ;;  %v792_v43 = vsel %vm762_vm9, %v652_v26, 0.0  ;;  %v4787_v23 = vpack.c.bf16 %v791_v58, %v790_v18  ;;  %vm681_vm2 = vcmp.ge.s32.totalorder %v667_v60, 1 }
  0x91   : > { %5433 = vst [vmem:[#allocation20_spill] sm:$0xff] %v4785_v0  ;;  %3504 = vmatmul.mubr.bf16.gmra.mrb[8].mxu0 %v4785_v0  ;;  %3379 = vmatprep.mubr.bf16.mxu1 %v4785_v0  ;;  %v4791_v50 = vpack.c.bf16 %v792_v43, %v792_v43  ;;  %v653_v10 = vmax.f32 %v4778_v44, 0.0  ;;  %v654_v48 = vmax.f32 %v4781_v39, 0.0  ;;  %v655_v52 = vmax.f32 %v625_v55, 0.0 }
  0x92   : > { %v921_v9 = vshrl.u32 %v4787_v23, 16  ;;  %v923_v26 = vshll.u32 %v4787_v23, 16  ;;  %vm691_vm9 = vcmp.le.s32.totalorder %v667_v60, 16  ;;  %vm5436_vm3 = vcmp.ge.s32.totalorder %v4198_v4, 1  ;;  %3524 = vmatpush3.bf16.msra.mxu0 %v3852_v38  ;;  %3398 = vmatpush3.bf16.msra.mxu1 %v3853_v12  ;;  %v3856_v60 = vld [vmem:[%s5331_s2 + $0x180] sm:$0xff]  }
  0x93   : > { %v928_v43 = vshll.u32 %v4791_v50, 16  ;;  %vm4805_vm12 = vmand %vm681_vm2, %vm691_vm9  ;;  %vm5439_vm2 = vcmp.le.s32.totalorder %v4212_v8, 16  ;;  %3525 = vmatprep.subr.bf16.mxu0 %v3854_v19  ;;  %3415 = vmatprep.subr.bf16.mxu1 %v3855_v47  ;;  %v5440_v38 = vmax.f32 %v4283_v33, 0.0  ;;  %v5441_v12 = vmax.f32 %v4286_v34, 0.0 }
  0x94   : > { %v925_v59 = vrot.slane %v923_v26, 1  ;;  %vm4813_vm6 = vmand %vm4805_vm12, %vm5436_vm3  ;;  %v794_v18 = vsel %vm4805_vm12, %v654_v48, 0.0  ;;  %v1274_v63 = vrot.slane %v4554_v42, 1  ;;  %v3858_v42 = vld [vmem:[%s5331_s2 + $0x188] sm:$0xff]   ;;  %v5455_v14 = vmax.f32 %v4530_v1, 0.0  ;;  %v3860_v1 = vld [vmem:[%s5331_s2 + $0x190] sm:$0xff]  }
  0x95   : > { %v930_v44 = vrot.slane %v928_v43, 1  ;;  %vm765_vm9 = vmand %vm4805_vm12, %vm5439_vm2  ;;  %v793_v39 = vsel %vm4813_vm6, %v653_v10, 0.0  ;;  %v2964_v4 = vpack.c.bf16 %v5441_v12, %v5440_v38  ;;  %v3857_v38 = vld [vmem:[%s5331_s2 + $0x88] sm:$0xff]   ;;  %v4891_v12 = vpack.c.bf16 %v654_v48, %v653_v10 }
  0x96   : > { %v926_v55 = vor.u32 %v925_v59, %v921_v9  ;;  %v795_v26 = vsel %vm765_vm9, %v655_v52, 0.0  ;;  %v4828_v0 = vpack.c.bf16 %v794_v18, %v793_v39  ;;  %vm3056_vm3 = vmpackc.low %vm4805_vm12, %vm4813_vm6  ;;  %vm5442_vm9 = vsmask.f32 7424  ;;  %3526 = vmatpush3.bf16.msra.mxu0 %v3854_v19 }
  0x97   : > { %v4838_v43 = vpack.c.bf16 %v795_v26, %v795_v26  ;;  %vm2963_vm2 = vmpackc.low %vm4249_vm4, %vm4268_vm8  ;;  %v1267_v59 = vrot.slane %v4405_v16, 1  ;;  %vm1263_vm4 = vcmask 1046528   ;;  %3543 = vmatprep.subr.bf16.mxu0 %v3856_v60  ;;  %v5444_v39 = vmax.f32 %v4313_v41, 0.0 }
  0x98   : > { %v4845_v9 = vsel %vm5442_vm9, %v926_v55, %v930_v44  ;;  %v1653_v33 = vshrl.u32 %v4828_v0, 16  ;;  %v1655_v34 = vshll.u32 %v4828_v0, 16  ;;  %v5443_v44 = vmax.f32 %v4310_v40, 0.0  ;;  %vm2966_vm8 = vmpackc.low %vm4291_vm10, %vm4329_vm15  ;;  %v3890_v40 = vld [vmem:[%s5331_s2 + $0x218] sm:$0xff]  }
  0x99   : > { %3507 = vmatprep.mubr.bf16.mxu0 %v4845_v9  ;;  %3380 = vmatmul.mubr.bf16.gmra.mrb[12].mxu1 %v4845_v9  ;;  %v1660_v52 = vshll.u32 %v4838_v43, 16  ;;  %v4865_v16 = vsel %vm1263_vm4, %v1267_v59, %v1268_v27  ;;  %v1264_v41 = vrot.slane %v4362_v62, 1  ;;  %v1277_v51 = vrot.slane %v4595_v30, 1  ;;  %v3863_v30 = vld [vmem:[%s5331_s2 + $0xa0] sm:$0xff]   ;;  %v5460_v27 = vld [vmem:[#allocation11_spill] sm:$0xff] }
  0x9a   : > { %v1657_v20 = vrot.slane %v1655_v34, 1  ;;  %3399 = vmatprep.mubr.msk.bf16.mxu1 %vm2963_vm2, %v2964_v4  ;;  %v4858_v19 = vpack.c.bf16 %v5444_v39, %v5443_v44  ;;  %v1270_v4 = vrot.slane %v4460_v61, 1  ;;  %vm4873_vm2 = vmpackc.low %vm4374_vm1, %vm4415_vm7  ;;  %v5447_v61 = vmax.f32 %v4385_v5, 0.0 }
  0x9b   : > { %v1662_v18 = vrot.slane %v1660_v52, 1  ;;  %v4896_v62 = vsel %vm1263_vm4, %v1264_v41, %v1265_v2  ;;  %v1273_v5 = vrot.slane %v4539_v11, 1  ;;  %vm4919_vm1 = vmpackc.low %vm4452_vm13, %vm4480_vm11  ;;  %v5456_v52 = vmax.f32 %v4533_v56, 0.0  ;;  %v5472_v41 = vld [vmem:[#allocation15_spill] sm:$0xff]  ;;  %v3865_v2 = vld [vmem:[%s5331_s2 + $0xa8] sm:$0xff]  }
  0x9c   : > { %v1658_v55 = vor.u32 %v1657_v20, %v1653_v33  ;;  %v4888_v24 = vpack.c.bf16 %v5448_v17, %v5447_v61  ;;  %v4913_v48 = vsel %vm1263_vm4, %v1270_v4, %v1271_v22  ;;  %v5452_v33 = vmax.f32 %v4474_v13, 0.0  ;;  %vm4939_vm7 = vmpackc.low %vm4508_vm0, %vm4546_vm5  ;;  %v5470_v4 = vld [vmem:[#allocation14_spill] sm:$0xff]  ;;  %v3864_v17 = vld [vmem:[%s5331_s2 + $0x1a0] sm:$0xff]  }
  0x9d   : > { %v4927_v10 = vsel %vm1263_vm4, %v1273_v5, %v1274_v63  ;;  %v4947_v59 = vpack.c.bf16 %v5456_v52, %v5455_v14  ;;  %v1276_v13 = vrot.slane %v4590_v35, 1  ;;  %v1279_v56 = vrot.slane %v4665_v46, 1  ;;  %v5491_v46 = vld [vmem:[#allocation20_spill] sm:$0xff] }
  0x9e   : > { %v4879_v26 = vsel %vm5442_vm9, %v1658_v55, %v1662_v18  ;;  %v1280_v25 = vrot.slane %v4673_v21, 1  ;;  %vm5457_vm13 = vnez %v5409_v53  ;;  %v3862_v21 = vld [vmem:[%s5331_s2 + $0x198] sm:$0xff]   ;;  %v5461_v20 = vmax.f32 %v5460_v27, 0.0  ;;  %v5464_v53 = vld [vmem:[#allocation18_spill] sm:$0xff] }
  0x9f   : > { %3508 = vmatmul.mubr.bf16.gmra.mrb[12].mxu0 %v4879_v26  ;;  %v4971_v35 = vsel %vm1263_vm4, %v1276_v13, %v1277_v51  ;;  %vm4977_vm11 = vmpackc.low %vm5457_vm13, %vm4634_vm14  ;;  %v5462_v18 = vld [vmem:[#allocation12_spill] sm:$0xff]  ;;  %vm5465_vm14 = vnez %v5464_v53  ;;  %vm5467_vm0 = vnez %v5466_v37  ;;  %v5471_v22 = vmax.f32 %v5470_v4, 0.0  ;;  %v3872_v13 = vld [vmem:[%s5331_s2 + $0x1c0] sm:$0xff]  }
  0xa0   : > { %3527 = vmatprep.mubr.bf16.mxu0 %v4865_v16  ;;  %v5463_v44 = vmax.f32 %v5462_v18, 0.0  ;;  %vm4997_vm5 = vmpackc.low %vm5467_vm0, %vm5465_vm14  ;;  %v1282_v5 = vrot.slane %v4710_v29, 1  ;;  %v1283_v63 = vrot.slane %v4720_v32, 1  ;;  %v3867_v29 = vld [vmem:[%s5331_s2 + $0xb0] sm:$0xff]   ;;  %vm5476_vm9 = vnez %v5430_v45  ;;  %v3878_v27 = vld [vmem:[%s5331_s2 + $0x1d8] sm:$0xff]  }
  0xa1   : > { %3400 = vmatmul.mubr.msk.bf16.vlgmr.msra.gmra.mrb[0].mxu1 %vm2966_vm8, %v4858_v19  ;;  %vm5477_vm13 = vnez %v5427_v54  ;;  %v1846_v45 = vrot.slane %v4838_v43, 1  ;;  %v3868_v54 = vld [vmem:[%s5331_s2 + $0x1b0] sm:$0xff]   ;;  %v3870_v43 = vld [vmem:[%s5331_s2 + $0x1b8] sm:$0xff]   ;;  %v3895_v18 = vld [vmem:[%s5329_s0] ss:$0 sm:$0xff]  ;;  %v668_v37 = vadd.s32 9, %v4204_v6 }
  0xa2   : > { %3416 = vmatpush3.bf16.msra.mxu1 %v3855_v47  ;;  %3403 = vmatprep.mubr.msk.bf16.mxu1 %vm4873_vm2, %v4888_v24  ;;  %v5451_v47 = vmax.f32 %v4469_v3, 0.0  ;;  %v3861_v3 = vld [vmem:[%s5331_s2 + $0x98] sm:$0xff]   ;;  %v4991_v39 = vpack.c.bf16 %v5463_v44, %v5461_v20  ;;  %v5029_v32 = vsel %vm1263_vm4, %v1282_v5, %v1283_v63  ;;  %vm5047_vm14 = vmpackc.low %vm5477_vm13, %vm5476_vm9  ;;  %v3875_v51 = vld [vmem:[%s5331_s2 + $0xd0] sm:$0xff]   ;;  %vm5489_vm10 = vcmp.le.s32.totalorder %v4212_v8, 16 }
  0xa3   : > { %3417 = vmatprep.subr.bf16.mxu1 %v3857_v38  ;;  %v3881_v20 = vld [vmem:[%s5331_s2 + $0xe8] sm:$0xff]   ;;  %v3880_v4 = vld [vmem:[%s5331_s2 + $0x1e0] sm:$0xff]   ;;  %v3883_v6 = vld [vmem:[%s5331_s2 + $0xf0] sm:$0xff]   ;;  %vm682_vm0 = vcmp.ge.s32.totalorder %v668_v37, 1  ;;  %vm692_vm9 = vcmp.le.s32.totalorder %v668_v37, 16  ;;  %vm2654_vm6 = vcmask 1040384  }
  0xa4   : > { %v4933_v34 = vpack.c.bf16 %v5452_v33, %v5451_v47  ;;  %v5474_v47 = vmax.f32 %v4723_v28, 0.0  ;;  %v5475_v33 = vmax.f32 %v4726_v31, 0.0  ;;  %v3869_v28 = vld [vmem:[%s5331_s2 + $0xb8] sm:$0xff]   ;;  %v1845_v31 = vrot.slane %v4828_v0, 1  ;;  %vm5141_vm13 = vmand %vm682_vm0, %vm692_vm9  ;;  %v3892_v8 = vld [vmem:[%s5331_s2 + $0x228] sm:$0xff]  }
  0xa5   : > { %vm768_vm15 = vmand %vm5141_vm13, %vm5489_vm10  ;;  %v3894_v55 = vld [vmem:[%s5331_s2 + $0x238] sm:$0xff]   ;;  %vm2656_vm12 = vcmask 1041408  }
  0xa6   : > { %3418 = vmatpush3.bf16.msra.mxu1 %v3857_v38  ;;  %v5473_v38 = vmax.f32 %v5472_v41, 0.0  ;;  %v5041_v14 = vpack.c.bf16 %v5475_v33, %v5474_v47  ;;  %v5069_v0 = vsel %vm1263_vm4, %v1845_v31, %v1846_v45  ;;  %v3887_v33 = vld [vmem:[%s5331_s2 + $0x200] sm:$0xff]   ;;  %v591_v31 = vmul.f32 %v3895_v18, %v554_v49  ;;  %v3889_v45 = vld [vmem:[%s5331_s2 + $0x210] sm:$0xff]  }
  0xa7   : > { %3528 = vmatmul.mubr.bf16.vlgmr.msra.gmra.mrb[0].mxu0 %v4913_v48  ;;  %3419 = vmatprep.subr.bf16.mxu1 %v3859_v7 }
  0xa8   : > { %3544 = vmatpush3.bf16.msra.mxu0 %v3856_v60  ;;  %3531 = vmatprep.mubr.bf16.mxu0 %v4927_v10  ;;  %v4985_v60 = vsel %vm1263_vm4, %v1279_v56, %v1280_v25  ;;  %v5005_v61 = vpack.c.bf16 %v5473_v38, %v5471_v22  ;;  %v3876_v56 = vld [vmem:[%s5331_s2 + $0x1d0] sm:$0xff]   ;;  %v3879_v25 = vld [vmem:[%s5331_s2 + $0xe0] sm:$0xff]  }
  0xa9   : > { %3545 = vmatprep.subr.bf16.mxu0 %v3858_v42  ;;  %3404 = vmatmul.mubr.msk.bf16.gmra.mrb[4].mxu1 %vm4919_vm1, %v4933_v34  ;;  %v3896_v22 = vld [vmem:[%s5330_s1] ss:$0 sm:$0xff] }
  0xaa   : > { %3420 = vmatpush3.bf16.msra.mxu1 %v3859_v7  ;;  %3407 = vmatprep.mubr.msk.bf16.mxu1 %vm4939_vm7, %v4947_v59  ;;  %v1285_v7 = vrot.slane %v4787_v23, 1  ;;  %v3866_v23 = vld [vmem:[%s5331_s2 + $0x1a8] sm:$0xff]  }
  0xab   : > { %3421 = vmatprep.subr.bf16.mxu1 %v3861_v3 }
  0xac   : > { %3546 = vmatpush3.bf16.msra.mxu0 %v3858_v42  ;;  %v1286_v42 = vrot.slane %v4791_v50, 1 }
  0xad   : > { %3547 = vmatprep.subr.bf16.mxu0 %v3860_v1 }
  0xae   : > { %3422 = vmatpush3.bf16.msra.mxu1 %v3861_v3  ;;  %v5035_v50 = vsel %vm1263_vm4, %v1285_v7, %v1286_v42  ;;  %v3871_v3 = vld [vmem:[%s5331_s2 + $0xc0] sm:$0xff]   ;;  %v3885_v7 = vld [vmem:[%s5331_s2 + $0xf8] sm:$0xff]  }
  0xaf   : > { %3532 = vmatmul.mubr.bf16.gmra.mrb[4].mxu0 %v4971_v35  ;;  %3423 = vmatprep.subr.bf16.mxu1 %v3863_v30  ;;  %v5482_v42 = vld [vmem:[#allocation9_spill] sm:$0xff] }
  0xb0   : > { %3548 = vmatpush3.bf16.msra.mxu0 %v3860_v1  ;;  %3535 = vmatprep.mubr.bf16.mxu0 %v4985_v60  ;;  %v3874_v1 = vld [vmem:[%s5331_s2 + $0x1c8] sm:$0xff]   ;;  %vm5483_vm0 = vcmp.ge.s32.totalorder %v5482_v42, 1 }
  0xb1   : > { %3549 = vmatprep.subr.bf16.mxu0 %v3862_v21  ;;  %3408 = vmatmul.mubr.msk.bf16.gmra.mrb[8].mxu1 %vm4977_vm11, %v4991_v39  ;;  %vm5162_vm9 = vmand %vm5141_vm13, %vm5483_vm0 }
  0xb2   : > { %3424 = vmatpush3.bf16.msra.mxu1 %v3863_v30  ;;  %3411 = vmatprep.mubr.msk.bf16.mxu1 %vm4997_vm5, %v5005_v61  ;;  %v552_v30 = vld [vmem:[%s4099_s9 + $0xd8] sm:$0xff]  ;;  %vm3152_vm0 = vmpackc.low %vm5141_vm13, %vm5162_vm9 }
  0xb3   : > { %3425 = vmatprep.subr.bf16.mxu1 %v3865_v2  ;;  %v589_v44 = vmul.f32 %v3895_v18, %v552_v30 }
  0xb4   : > { %3550 = vmatpush3.bf16.msra.mxu0 %v3862_v21  ;;  %v553_v21 = vld [vmem:[%s4099_s9 + $0xe0] sm:$0xff] }
  0xb5   : > { %3551 = vmatprep.subr.bf16.mxu0 %v3864_v17  ;;  %v590_v53 = vmul.f32 %v3895_v18, %v553_v21  ;;  %v626_v41 = vadd.f32 %v3896_v22, %v589_v44 }
  0xb6   : > { %3426 = vmatpush3.bf16.msra.mxu1 %v3865_v2 }
  0xb7   : > { %3536 = vmatmul.mubr.bf16.gmra.mrb[8].mxu0 %v5029_v32  ;;  %3427 = vmatprep.subr.bf16.mxu1 %v3867_v29  ;;  %v627_v38 = vadd.f32 %v3896_v22, %v590_v53  ;;  %v656_v5 = vmax.f32 %v626_v41, 0.0 }
  0xb8   : > { %3552 = vmatpush3.bf16.msra.mxu0 %v3864_v17  ;;  %3539 = vmatprep.mubr.bf16.mxu0 %v5035_v50  ;;  %v3882_v17 = vld [vmem:[%s5331_s2 + $0x1e8] sm:$0xff]  }
  0xb9   : > { %3553 = vmatprep.subr.bf16.mxu0 %v3866_v23  ;;  %3412 = vmatmul.mubr.msk.bf16.gmra.mrb[12].mxu1 %vm5047_vm14, %v5041_v14  ;;  %v657_v63 = vmax.f32 %v627_v38, 0.0  ;;  %v796_v11 = vsel %vm5162_vm9, %v656_v5, 0.0 }
  0xba   : > { %3428 = vmatpush3.bf16.msra.mxu1 %v3867_v29  ;;  %3431 = vmatprep.mubr.bf16.mxu1 %v4896_v62  ;;  %v3873_v62 = vld [vmem:[%s5331_s2 + $0xc8] sm:$0xff]  }
  0xbb   : > { %3429 = vmatprep.subr.bf16.mxu1 %v3869_v28  ;;  %v3153_v47 = vpack.c.bf16 %v657_v63, %v656_v5 }
  0xbc   : > { %3554 = vmatpush3.bf16.msra.mxu0 %v3866_v23  ;;  %v3884_v23 = vld [vmem:[%s5331_s2 + $0x1f0] sm:$0xff]  }
  0xbd   : > { %3555 = vmatprep.subr.bf16.mxu0 %v3868_v54 }
  0xbe   : > { %3430 = vmatpush3.bf16.msra.mxu1 %v3869_v28  ;;  %v5486_v28 = vld [vmem:[#allocation10_spill] sm:$0xff] }
  0xbf   : > { %3540 = vmatmul.mubr.bf16.gmra.mrb[12].mxu0 %v5069_v0  ;;  %3447 = vmatprep.subr.bf16.mxu1 %v3871_v3 }
  0xc0   : > { %3556 = vmatpush3.bf16.msra.mxu0 %v3868_v54  ;;  %3559 = vmatprep.mubr.msk.bf16.mxu0 %vm4873_vm2, %v4888_v24  ;;  %v628_v54 = vadd.f32 %v3896_v22, %v591_v31 }
  0xc1   : > { %3557 = vmatprep.subr.bf16.mxu0 %v3870_v43  ;;  %3432 = vmatmul.mubr.bf16.vlgmr.msra.gmra.mrb[0].mxu1 %v4865_v16  ;;  %v3877_v16 = vld [vmem:[%s5331_s2 + $0xd8] sm:$0xff]  }
  0xc2   : > { %3448 = vmatpush3.bf16.msra.mxu1 %v3871_v3  ;;  %3435 = vmatprep.mubr.bf16.mxu1 %v4913_v48  ;;  %v5487_v3 = vld [vmem:[#allocation13_spill] sm:$0xff] }
  0xc3   : > { %3449 = vmatprep.subr.bf16.mxu1 %v3873_v62 }
  0xc4   : > { %3558 = vmatpush3.bf16.msra.mxu0 %v3870_v43  ;;  %v658_v43 = vmax.f32 %v628_v54, 0.0 }
  0xc5   : > { %3575 = vmatprep.subr.bf16.mxu0 %v3872_v13 }
  0xc6   : > { %3450 = vmatpush3.bf16.msra.mxu1 %v3873_v62  ;;  %v3891_v62 = vld [vmem:[%s5331_s2 + $0x220] sm:$0xff]   ;;  %v798_v57 = vsel %vm768_vm15, %v658_v43, 0.0 }
  0xc7   : > { %3560 = vmatmul.mubr.msk.bf16.vlgmr.msra.gmra.mrb[0].mxu0 %vm4919_vm1, %v4933_v34  ;;  %3451 = vmatprep.subr.bf16.mxu1 %v3875_v51 }
  0xc8   : > { %3576 = vmatpush3.bf16.msra.mxu0 %v3872_v13  ;;  %3563 = vmatprep.mubr.msk.bf16.mxu0 %vm4939_vm7, %v4947_v59 }
  0xc9   : > { %3577 = vmatprep.subr.bf16.mxu0 %v3874_v1  ;;  %3436 = vmatmul.mubr.bf16.gmra.mrb[4].mxu1 %v4927_v10 }
  0xca   : > { %3452 = vmatpush3.bf16.msra.mxu1 %v3875_v51  ;;  %3439 = vmatprep.mubr.bf16.mxu1 %v4971_v35 }
  0xcb   : > { %3453 = vmatprep.subr.bf16.mxu1 %v3877_v16 }
  0xcc   : > { %3578 = vmatpush3.bf16.msra.mxu0 %v3874_v1  ;;  %v3893_v1 = vld [vmem:[%s5331_s2 + $0x230] sm:$0xff]  }
  0xcd   : > { %3579 = vmatprep.subr.bf16.mxu0 %v3876_v56 }
  0xce   : > { %3454 = vmatpush3.bf16.msra.mxu1 %v3877_v16 }
  0xcf   : > { %3564 = vmatmul.mubr.msk.bf16.gmra.mrb[4].mxu0 %vm4977_vm11, %v4991_v39  ;;  %3455 = vmatprep.subr.bf16.mxu1 %v3879_v25 }
  0xd0   : > { %3580 = vmatpush3.bf16.msra.mxu0 %v3876_v56  ;;  %3567 = vmatprep.mubr.msk.bf16.mxu0 %vm4997_vm5, %v5005_v61 }
  0xd1   : > { %3581 = vmatprep.subr.bf16.mxu0 %v3878_v27  ;;  %3440 = vmatmul.mubr.bf16.gmra.mrb[8].mxu1 %v4985_v60 }
  0xd2   : > { %3456 = vmatpush3.bf16.msra.mxu1 %v3879_v25  ;;  %3443 = vmatprep.mubr.bf16.mxu1 %v5029_v32 }
  0xd3   : > { %3457 = vmatprep.subr.bf16.mxu1 %v3881_v20 }
  0xd4   : > { %3582 = vmatpush3.bf16.msra.mxu0 %v3878_v27 }
  0xd5   : > { %3583 = vmatprep.subr.bf16.mxu0 %v3880_v4 }
  0xd6   : > { %3458 = vmatpush3.bf16.msra.mxu1 %v3881_v20 }
  0xd7   : > { %3568 = vmatmul.mubr.msk.bf16.gmra.mrb[8].mxu0 %vm5047_vm14, %v5041_v14  ;;  %3459 = vmatprep.subr.bf16.mxu1 %v3883_v6 }
  0xd8   : > { %3584 = vmatpush3.bf16.msra.mxu0 %v3880_v4  ;;  %3571 = vmatprep.mubr.msk.bf16.mxu0 %vm3056_vm3, %v4891_v12 }
  0xd9   : > { %3585 = vmatprep.subr.bf16.mxu0 %v3882_v17  ;;  %3444 = vmatmul.mubr.bf16.gmra.mrb[12].mxu1 %v5035_v50 }
  0xda   : > { %3460 = vmatpush3.bf16.msra.mxu1 %v3883_v6  ;;  %3463 = vmatprep.mubr.msk.bf16.mxu1 %vm2966_vm8, %v4858_v19  ;;  %v3888_v19 = vld [vmem:[%s5331_s2 + $0x208] sm:$0xff]   ;;  %vm5492_vm8 = vsmask.f32 7424 }
  0xdb   : > { %3461 = vmatprep.subr.bf16.mxu1 %v3885_v7 }
  0xdc   : > { %3586 = vmatpush3.bf16.msra.mxu0 %v3882_v17 }
  0xdd   : > { %3587 = vmatprep.subr.bf16.mxu0 %v3884_v23 }
  0xde   : > { %3462 = vmatpush3.bf16.msra.mxu1 %v3885_v7 }
  0xdf   : > { %3572 = vmatmul.mubr.msk.bf16.gmra.mrb[12].mxu0 %vm3152_vm0, %v3153_v47  ;;  %3639 = vmatprep.subr.bf16.mxu1 %v3887_v33 }
  0xe0   : > { %3588 = vmatpush3.bf16.msra.mxu0 %v3884_v23  ;;  %3591 = vmatprep.mubr.bf16.mxu0 %v5486_v28 }
  0xe1   : > { %3589 = vmatprep.subr.bf16.mxu0 %v3886_v36  ;;  %3464 = vmatmul.mubr.msk.bf16.vlgmr.msra.gmra.mrb[0].mxu1 %vm4873_vm2, %v4888_v24  ;;  %v5488_v24 = vld [vmem:[#allocation16_spill] sm:$0xff] }
  0xe2   : > { %3647 = vmatpush3.bf16.msra.mxu1 %v3887_v33  ;;  %3467 = vmatprep.mubr.msk.bf16.mxu1 %vm4919_vm1, %v4933_v34  ;;  %v797_v34 = vsel %vm5141_vm13, %v657_v63, 0.0 }
  0xe3   : > { %3640 = vmatprep.subr.bf16.mxu1 %v3888_v19  ;;  %v817_v13 = vpack.c.bf16 %v797_v34, %v796_v11 }
  0xe4   : > { %3590 = vmatpush3.bf16.msra.mxu0 %v3886_v36 }
  0xe5   : > { %3607 = vmatprep.subr.bf16.mxu0 %v3887_v33  ;;  %v2208_v51 = vshll.u32 %v817_v13, 16  ;;  %v2206_v16 = vshrl.u32 %v817_v13, 16  ;;  %v2398_v15 = vrot.slane %v817_v13, 1 }
  0xe6   : > { %3648 = vmatpush3.bf16.msra.mxu1 %v3888_v19 }
  0xe7   : > { %3592 = vmatmul.mubr.bf16.vlgmr.msra.gmra.mrb[0].mxu0 %v5487_v3  ;;  %3641 = vmatprep.subr.bf16.mxu1 %v3889_v45  ;;  %v2210_v56 = vrot.slane %v2208_v51, 1 }
  0xe8   : > { %3608 = vmatpush3.bf16.msra.mxu0 %v3887_v33  ;;  %3595 = vmatprep.mubr.bf16.mxu0 %v5488_v24 }
  0xe9   : > { %3609 = vmatprep.subr.bf16.mxu0 %v3888_v19  ;;  %3468 = vmatmul.mubr.msk.bf16.gmra.mrb[4].mxu1 %vm4939_vm7, %v4947_v59  ;;  %v5490_v59 = vld [vmem:[#allocation19_spill] sm:$0xff] }
  0xea   : > { %3649 = vmatpush3.bf16.msra.mxu1 %v3889_v45  ;;  %3471 = vmatprep.mubr.msk.bf16.mxu1 %vm4977_vm11, %v4991_v39  ;;  %v818_v39 = vpack.c.bf16 %v798_v57, %v798_v57 }
  0xeb   : > { %3642 = vmatprep.subr.bf16.mxu1 %v3890_v40 }
  0xec   : > { %3610 = vmatpush3.bf16.msra.mxu0 %v3888_v19  ;;  %v2213_v25 = vshll.u32 %v818_v39, 16  ;;  %v2399_v58 = vrot.slane %v818_v39, 1 }
  0xed   : > { %3611 = vmatprep.subr.bf16.mxu0 %v3889_v45 }
  0xee   : > { %3650 = vmatpush3.bf16.msra.mxu1 %v3890_v40 }
  0xef   : > { %3596 = vmatmul.mubr.bf16.gmra.mrb[4].mxu0 %v5490_v59  ;;  %3643 = vmatprep.subr.bf16.mxu1 %v3891_v62 }
  0xf0   : > { %3612 = vmatpush3.bf16.msra.mxu0 %v3889_v45  ;;  %3599 = vmatprep.mubr.bf16.mxu0 %v5491_v46 }
  0xf1   : > { %3613 = vmatprep.subr.bf16.mxu0 %v3890_v40  ;;  %3472 = vmatmul.mubr.msk.bf16.gmra.mrb[8].mxu1 %vm4997_vm5, %v5005_v61  ;;  %v2211_v61 = vor.u32 %v2210_v56, %v2206_v16 }
  0xf2   : > { %3651 = vmatpush3.bf16.msra.mxu1 %v3891_v62  ;;  %3475 = vmatprep.mubr.msk.bf16.mxu1 %vm5047_vm14, %v5041_v14  ;;  %v2215_v14 = vrot.slane %v2213_v25, 1 }
  0xf3   : > { %3644 = vmatprep.subr.bf16.mxu1 %v3892_v8 }
  0xf4   : > { %3614 = vmatpush3.bf16.msra.mxu0 %v3890_v40 }
  0xf5   : > { %3615 = vmatprep.subr.bf16.mxu0 %v3891_v62 }
  0xf6   : > { %3652 = vmatpush3.bf16.msra.mxu1 %v3892_v8 }
  0xf7   : > { %3600 = vmatmul.mubr.bf16.gmra.mrb[8].mxu0 %v4845_v9  ;;  %3645 = vmatprep.subr.bf16.mxu1 %v3893_v1  ;;  %v2216_v9 = vsel %vm5492_vm8, %v2211_v61, %v2215_v14 }
  0xf8   : > { %3616 = vmatpush3.bf16.msra.mxu0 %v3891_v62  ;;  %3603 = vmatprep.mubr.bf16.mxu0 %v4879_v26  ;;  %v2400_v26 = vsel %vm1263_vm4, %v2398_v15, %v2399_v58 }
  0xf9   : > { %3617 = vmatprep.subr.bf16.mxu0 %v3892_v8  ;;  %3476 = vmatmul.mubr.msk.bf16.gmra.mrb[12].mxu1 %vm3056_vm3, %v4891_v12 }
  0xfa   : > { %3653 = vmatpush3.bf16.msra.mxu1 %v3893_v1  ;;  %3631 = vmatprep.mubr.bf16.mxu1 %v5029_v32 }
  0xfb   : > { %3646 = vmatprep.subr.bf16.mxu1 %v3894_v55 }
  0xfc   : > { %3618 = vmatpush3.bf16.msra.mxu0 %v3892_v8 }
  0xfd   : > { %3619 = vmatprep.subr.bf16.mxu0 %v3893_v1 }
  0xfe   : > { %3654 = vmatpush3.bf16.msra.mxu1 %v3894_v55 }
  0xff   : > { %3604 = vmatmul.mubr.bf16.gmra.mrb[12].mxu0 %v2216_v9 }
 0x100   : > { %3620 = vmatpush3.bf16.msra.mxu0 %v3893_v1  ;;  %3623 = vmatprep.mubr.bf16.mxu0 %v4913_v48 }
 0x101   : > { %3621 = vmatprep.subr.bf16.mxu0 %v3894_v55  ;;  %3632 = vmatmul.mubr.bf16.vlgmr.msra.gmra.mrb[16].mxu1 %v5035_v50 }
 0x102   : > { %3635 = vmatprep.mubr.bf16.mxu1 %v5069_v0 }
 0x104   : > { %3622 = vmatpush3.bf16.msra.mxu0 %v3894_v55 }
 0x107   : > { %3624 = vmatmul.mubr.bf16.vlgmr.msra.gmra.mrb[0].mxu0 %v4927_v10 }
 0x108   : > { %3627 = vmatprep.mubr.bf16.mxu0 %v4971_v35 }
 0x109   : > { %3636 = vmatmul.mubr.bf16.gmra.mrb[20].mxu1 %v2400_v26 }
 0x10f   : > { %3628 = vmatmul.mubr.bf16.gmra.mrb[4].mxu0 %v4985_v60 }
 0x1b4   : > { %v3465_v12 = vpop.f32.mrb[0].mxu1 }
 0x1b5   : > { %v1573_v32 = vpop.f32.mrb[1].mxu1 }
 0x1b6   : > { %v3466_v48 = vpop.f32.mrb[2].mxu1 }
 0x1b7   : > { %v1576_v52 = vpop.f32.mrb[3].mxu1 }
 0x1bc   : > { %v5255_v30 = vpop.f32.mrb[4].mxu1 }
 0x1bd   : > { %v5257_v50 = vpop.f32.mrb[5].mxu1 }
 0x1be   : > { %v5259_v0 = vpop.f32.mrb[6].mxu1 }
 0x1bf   : > { %v5261_v21 = vpop.f32.mrb[7].mxu1 }
 0x1c4   : > { %v3473_v27 = vpop.f32.mrb[8].mxu1 }
 0x1c5   : > { %v1605_v20 = vpop.f32.mrb[9].mxu1 }
 0x1c6   : > { %v3474_v10 = vpop.f32.mrb[10].mxu1 }
 0x1c7   : > { %v1608_v18 = vpop.f32.mrb[11].mxu1 }
 0x1ca   : > { %v3601_v35 = vpop.f32.mrb[8].mxu0 }
 0x1cb   : > { %v3663_v44 = vadd.f32 %v3601_v35, %v3473_v27  ;;  %v2349_v53 = vpop.f32.mrb[9].mxu0 }
 0x1cc   : > { %v3665_v60 = vadd.f32 %v2349_v53, %v1605_v20  ;;  %v3602_v37 = vpop.f32.mrb[10].mxu0  ;;  %v3477_v4 = vpop.f32.mrb[12].mxu1 }
 0x1cd   : > { %v3667_v6 = vadd.f32 %v3602_v37, %v3474_v10  ;;  %v2352_v22 = vpop.f32.mrb[11].mxu0  ;;  %v1621_v41 = vpop.f32.mrb[13].mxu1 }
 0x1ce   : > { %v3669_v38 = vadd.f32 %v2352_v22, %v1608_v18  ;;  %v3478_v17 = vpop.f32.mrb[14].mxu1 }
 0x1cf   : > { %v1624_v2 = vpop.f32.mrb[15].mxu1 }
 0x1d2   : > { %v3605_v5 = vpop.f32.mrb[12].mxu0 }
 0x1d3   : > { %v3671_v63 = vadd.f32 %v3605_v5, %v3477_v4  ;;  %v2365_v7 = vpop.f32.mrb[13].mxu0 }
 0x1d4   : > { %v3673_v42 = vadd.f32 %v2365_v7, %v1621_v41  ;;  %v3606_v29 = vpop.f32.mrb[14].mxu0  ;;  %v3633_v23 = vpop.f32.mrb[16].mxu1 }
 0x1d5   : > { %v3675_v47 = vadd.f32 %v3606_v29, %v3478_v17  ;;  %v2368_v33 = vpop.f32.mrb[15].mxu0  ;;  %v5263_v36 = vadd.f32 %v3663_v44, %v3633_v23  ;;  %v2533_v49 = vpop.f32.mrb[17].mxu1 }
 0x1d6   : > { %v3677_v19 = vadd.f32 %v2368_v33, %v1624_v2  ;;  %v5265_v28 = vadd.f32 %v3665_v60, %v2533_v49  ;;  %v3634_v31 = vpop.f32.mrb[18].mxu1 }
 0x1d7   : > { %2590 = vst [vmem:[%s4016_s12 + $0x50] sm:$0xff] %v5263_v36  ;;  %v5269_v45 = vadd.f32 %v3667_v6, %v3634_v31  ;;  %v2536_v54 = vpop.f32.mrb[19].mxu1 }
 0x1d8   : > { %2588 = vst [vmem:[%s4016_s12 + $0x40] sm:$0xff] %v5265_v28  ;;  %v5273_v3 = vadd.f32 %v3669_v38, %v2536_v54 }
 0x1d9   : > { %2591 = vst [vmem:[%s4016_s12 + $0x58] sm:$0xff] %v5269_v45 }
 0x1da   : > { %v3625_v40 = vpop.f32.mrb[0].mxu0  ;;  %2589 = vst [vmem:[%s4016_s12 + $0x48] sm:$0xff] %v5273_v3 }
 0x1db   : > { %v3655_v24 = vadd.f32 %v3625_v40, %v3465_v12  ;;  %v2501_v11 = vpop.f32.mrb[1].mxu0 }
 0x1dc   : > { %v3656_v34 = vadd.f32 %v2501_v11, %v1573_v32  ;;  %v3626_v43 = vpop.f32.mrb[2].mxu0  ;;  %v3637_v62 = vpop.f32.mrb[20].mxu1 }
 0x1dd   : > { %2582 = vst [vmem:[%s4016_s12 + $0x10] sm:$0xff] %v3655_v24  ;;  %v3657_v13 = vadd.f32 %v3626_v43, %v3466_v48  ;;  %v2504_v57 = vpop.f32.mrb[3].mxu0  ;;  %v5280_v59 = vadd.f32 %v3671_v63, %v3637_v62  ;;  %v2549_v8 = vpop.f32.mrb[21].mxu1  ;;  %v2619_v14 = vmul.f32 %v3655_v24, %v3655_v24 }
 0x1de   : > { %2580 = vst [vmem:[%s4016_s12] sm:$0xff] %v3656_v34  ;;  %v3658_v46 = vadd.f32 %v2504_v57, %v1576_v52  ;;  %v3674_v39 = vadd.f32 %v3673_v42, %v2549_v8  ;;  %v3638_v51 = vpop.f32.mrb[22].mxu1  ;;  %v2617_v56 = vmul.f32 %v3656_v34, %v3656_v34  ;;  %v2627_v42 = vmul.f32 %v5263_v36, %v5263_v36 }
 0x1df   : > { %2583 = vst [vmem:[%s4016_s12 + $0x18] sm:$0xff] %v3657_v13  ;;  %2594 = vst [vmem:[%s4016_s12 + $0x70] sm:$0xff] %v5280_v59  ;;  %v3676_v1 = vadd.f32 %v3675_v47, %v3638_v51  ;;  %v2552_v16 = vpop.f32.mrb[23].mxu1  ;;  %v2620_v32 = vmul.f32 %v3657_v13, %v3657_v13  ;;  %v2628_v47 = vmul.f32 %v5269_v45, %v5269_v45 }
 0x1e0   : > { %2581 = vst [vmem:[%s4016_s12 + $0x8] sm:$0xff] %v3658_v46  ;;  %v2596_v25 = vadd.f32 %v3658_v46, %v3656_v34  ;;  %v2618_v55 = vmul.f32 %v3658_v46, %v3658_v46  ;;  %2592 = vst [vmem:[%s4016_s12 + $0x60] sm:$0xff] %v3674_v39  ;;  %v3678_v61 = vadd.f32 %v3677_v19, %v2552_v16 }
 0x1e1   : > { %2595 = vst [vmem:[%s4016_s12 + $0x78] sm:$0xff] %v3676_v1  ;;  %v2629_v19 = vmul.f32 %v3674_v39, %v3674_v39 }
 0x1e2   : > { %v2597_v9 = vadd.f32 %v3655_v24, %v2596_v25  ;;  %v2633_v15 = vadd.f32 %v2618_v55, %v2617_v56  ;;  %v3629_v58 = vpop.f32.mrb[4].mxu0  ;;  %2593 = vst [vmem:[%s4016_s12 + $0x68] sm:$0xff] %v3678_v61  ;;  %v2630_v40 = vmul.f32 %v3678_v61, %v3678_v61 }
 0x1e3   : > { %v3659_v26 = vadd.f32 %v3629_v58, %v5255_v30  ;;  %v2517_v12 = vpop.f32.mrb[5].mxu0 }
 0x1e4   : > { %v2634_v48 = vadd.f32 %v2633_v15, %v2619_v14  ;;  %v3660_v52 = vadd.f32 %v2517_v12, %v5257_v50  ;;  %v2598_v27 = vadd.f32 %v3657_v13, %v2597_v9  ;;  %v3630_v20 = vpop.f32.mrb[6].mxu0 }
 0x1e5   : > { %2586 = vst [vmem:[%s4016_s12 + $0x30] sm:$0xff] %v3659_v26  ;;  %v3661_v10 = vadd.f32 %v3630_v20, %v5259_v0  ;;  %v2520_v18 = vpop.f32.mrb[7].mxu0  ;;  %v2623_v6 = vmul.f32 %v3659_v26, %v3659_v26  ;;  %v2625_v0 = vmul.f32 %v5265_v28, %v5265_v28 }
 0x1e6   : > { %2584 = vst [vmem:[%s4016_s12 + $0x20] sm:$0xff] %v3660_v52  ;;  %v2599_v35 = vadd.f32 %v3660_v52, %v2598_v27  ;;  %v2621_v44 = vmul.f32 %v3660_v52, %v3660_v52  ;;  %v2635_v53 = vadd.f32 %v2634_v48, %v2620_v32  ;;  %v3662_v60 = vadd.f32 %v2520_v18, %v5261_v21 }
 0x1e7   : > { %2587 = vst [vmem:[%s4016_s12 + $0x38] sm:$0xff] %v3661_v10  ;;  %v2624_v41 = vmul.f32 %v3661_v10, %v3661_v10  ;;  %v2626_v21 = vmul.f32 %v5273_v3, %v5273_v3 }
 0x1e8   : > { %v2636_v30 = vadd.f32 %v2635_v53, %v2621_v44  ;;  %2585 = vst [vmem:[%s4016_s12 + $0x28] sm:$0xff] %v3662_v60  ;;  %v2600_v37 = vadd.f32 %v3662_v60, %v2599_v35  ;;  %v2622_v4 = vmul.f32 %v3662_v60, %v3662_v60 }
 0x1ea   : > { %v2601_v22 = vadd.f32 %v3659_v26, %v2600_v37  ;;  %v2637_v50 = vadd.f32 %v2636_v30, %v2622_v4 }
 0x1ec   : > { %v2602_v38 = vadd.f32 %v3661_v10, %v2601_v22  ;;  %v2638_v17 = vadd.f32 %v2637_v50, %v2623_v6 }
 0x1ee   : > { %v2603_v2 = vadd.f32 %v5265_v28, %v2602_v38  ;;  %v2639_v5 = vadd.f32 %v2638_v17, %v2624_v41 }
 0x1f0   : > { %v2640_v63 = vadd.f32 %v2639_v5, %v2625_v0  ;;  %v2604_v7 = vadd.f32 %v5273_v3, %v2603_v2  ;;  %v2631_v3 = vmul.f32 %v5280_v59, %v5280_v59 }
 0x1f2   : > { %v2605_v29 = vadd.f32 %v5263_v36, %v2604_v7  ;;  %v2641_v23 = vadd.f32 %v2640_v63, %v2626_v21  ;;  %v2632_v36 = vmul.f32 %v3676_v1, %v3676_v1 }
 0x1f4   : > { %v2606_v33 = vadd.f32 %v5269_v45, %v2605_v29  ;;  %v2642_v49 = vadd.f32 %v2641_v23, %v2627_v42 }
 0x1f6   : > { %v2607_v28 = vadd.f32 %v3674_v39, %v2606_v33  ;;  %v2643_v31 = vadd.f32 %v2642_v49, %v2628_v47 }
 0x1f8   : > { %v2608_v54 = vadd.f32 %v3678_v61, %v2607_v28  ;;  %v2644_v24 = vadd.f32 %v2643_v31, %v2629_v19 }
 0x1fa   : > { %v2609_v11 = vadd.f32 %v5280_v59, %v2608_v54  ;;  %v2645_v34 = vadd.f32 %v2644_v24, %v2630_v40 }
 0x1fc   : > { %v2610_v43 = vadd.f32 %v3676_v1, %v2609_v11  ;;  %v2646_v62 = vadd.f32 %v2645_v34, %v2631_v3 }
 0x1fe   : > { %v2611_v13 = vrot.slane %v2610_v43, 4  ;;  %v2647_v57 = vadd.f32 %v2646_v62, %v2632_v36 }
 0x200   : > { %v2612_v45 = vadd.f32 %v2611_v13, %v2610_v43  ;;  %v2648_v8 = vrot.slane %v2647_v57, 4 }
 0x202   : > { %v2613_v46 = vrot.slane %v2612_v45, 2  ;;  %v2649_v39 = vadd.f32 %v2648_v8, %v2647_v57 }
 0x204   : > { %v2614_v51 = vadd.f32 %v2613_v46, %v2612_v45  ;;  %v2650_v16 = vrot.slane %v2649_v39, 2 }
 0x206   : > { %v2615_v56 = vrot.slane %v2614_v51, 1  ;;  %v2651_v25 = vadd.f32 %v2650_v16, %v2649_v39 }
 0x208   : > { %v2652_v55 = vrot.slane %v2651_v25, 1  ;;  %v2616_v61 = vadd.f32 %v2615_v56, %v2614_v51 }
 0x20a   : > { %v2653_v14 = vadd.f32 %v2652_v55, %v2651_v25 }
 0x20c   : > { %v2655_v59 = vsel %vm2654_vm6, %v2616_v61, %v2653_v14 }
 0x20d   : > { %v2657_v9 = vsel %vm2656_vm12, %v2655_v59, 0.0 }
 0x20e   : > { %2658 = vst [vmem:[%s4023_s27] sm:$0xff] %v2657_v9 }
 0x20f PF: > { %s16_s22 = sadd.s32 1, %s3937_s22   ;;  %s5493_s12 = sld [smem:[#allocation7_spill]] }
 0x210   : > { %p13_p12 = scmp.ge.s32.totalorder %s16_s22, 6   ;;  %s5494_s25 = sld [smem:[#allocation8_spill]] }
 0x211   : > { %s5495_s18 = smov %s3929_s20  ;;  %s5496_s19 = smov %s3933_s21 }
 0x212   :  { %15 = sbr.rel (!%p13_p12) target bundleno = 3 (0x3), region = 198 }
 0x215   : > { %s5497_s20 = smov %s5493_s12 }
 0x216   : > { %s5498_s21 = smov %s5494_s25 }
 0x219   :  { %2713 = vsyncmov [#allocation3] }
 0x21c   :  { %s2714_s27 = vpop.sfrf %2713 }
 0x21d   :  { %p3205_p13 = scmp.ne.s32.totalorder %s2714_s27, 0 }
 0x21f   :  { %2718 = shalt.err (%p3205_p13)  }
 0x220   :  { %2720 = vsyncmov [#allocation3 + $0x1] }
 0x223   :  { %s2721_s6 = vpop.sfrf %2720 }
 0x224   :  { %p3206_p0 = scmp.ne.s32.totalorder %s2721_s6, 0 }
 0x226   :  { %2725 = shalt.err (%p3206_p0)  }

</bundles_post_ra>
